<compile_context>
chip_gen: v5e
topology: v5e:2x2
jax: 0.10.0
libtpu: 0.0.40
codegen_flags: <defaults>
</compile_context>

<pallas_src>
import math

import jax
import jax.numpy as jnp
import numpy as np
from jax.experimental import pallas as pl
from jax.experimental.pallas import tpu as pltpu  # noqa: F401  (single-block kernel; defaults suffice)


def make_rits_call(B, T, D, H, imputed_weight):
    H4 = 4 * H
    TD = T * D

    def kernel(vals_ref,                      # (B, T*D) raw values (may contain NaN), row-major (b,t,d)
               wdh_ref, bdh_ref,              # temp_decay_h: W^T (D, H), b (1, H)
               whh_whr_ref, bhr_ref,          # fused [W_hh^T | W_hr^T] (H, 4H+D) bf16, b_hr (1, D)
               wfr_ref, bfr_ref,              # feat_reg: (W*offdiag)^T (D, D), b (1, D)
               wih_c_ref, wih_m_ref, bl_ref,  # LSTM W_ih^T halves (D, 4H), b_ih+b_hh (1, 4H)
               imp_ref, loss_ref):            # outputs: (B, T*D), (1, 1)
        f32 = jnp.float32
        bf16 = jnp.bfloat16
        one = jnp.float32(1.0)
        zero = jnp.float32(0.0)

        # ---- fused preprocessing: masks + nan_to_num + hoisted m*x, (1-m) ----
        vals = vals_ref[...]                              # (B, T*D)
        nan_mask = vals != vals                           # isnan
        m_all = jnp.where(nan_mask, zero, one)            # masks (exact 0/1)
        x_all = jnp.where(nan_mask, zero, vals)           # nan_to_num(values)
        mx_all = m_all * x_all                            # hoisted m * x
        omm_all = one - m_all                             # hoisted (1 - m)

        # ---- weight / bias loads, once ----------------------------------------
        wdh = wdh_ref[...]                                # (D, H)  f32
        bdh = bdh_ref[...]                                # (1, H)
        whh_whr = whh_whr_ref[...]                        # (H, 4H+D)  bf16
        bhr = bhr_ref[...]                                # (1, D)
        wfr = wfr_ref[...]                                # (D, D)
        bfr = bfr_ref[...]                                # (1, D)
        wih_c = wih_c_ref[...]                            # (D, 4H)
        wih_m = wih_m_ref[...]                            # (D, 4H)
        bl = bl_ref[...]                                  # (1, 4H)

        def _sum11(v):                                    # full reduction, kept as (1, 1)
            return jnp.sum(jnp.sum(v, axis=1, keepdims=True), axis=0, keepdims=True)

        # ---- hoisted, input-only per-step quantities (off the h/c chain) ------
        # (a) delta recursion fused directly into the gamma_h FMA accumulation.
        #     Faithful port of the reference's d-recursion, including the
        #     Python negative-index wrap masks[b, t, -1] at d == 0.
        #     K = D = 4  ->  4 broadcast-FMAs on the VPU, no MXU, no transpose.
        gamma_h = [None] * T
        for t in range(1, T):
            acc = bdh                                      # (1, H) -> (B, H) after first FMA
            carry = jnp.zeros((B, 1), f32)                 # delta[b, t, d-1]; 0 at d == 0
            for d in range(D):
                dm1 = (d - 1) % D                          # masks[b, t, d-1] wraps to D-1
                mp = m_all[:, (t - 1) * D + d:(t - 1) * D + d + 1]   # masks[b, t-1, d]
                mc = m_all[:, t * D + dm1:t * D + dm1 + 1]           # masks[b, t, d-1]
                col = jnp.where(mp == zero, carry + one,
                                jnp.where(mc == one, one, zero))
                acc = acc + col * wdh[d:d + 1, :]
                carry = col
            gamma_h[t] = jnp.exp(-jnp.maximum(acc, zero))  # (B, H)

        # (b) mask half of the LSTM input gates + both biases (K = D = 4 FMAs)
        # (c) per-step loss weights m_t / (sum(m_t) + 1e-5): one XLU reduce and
        #     one EUP approx reciprocal each, all hoisted off the recurrence.
        gates_in = [None] * T
        w_loss = [None] * T
        for t in range(T):
            m_t = m_all[:, t * D:(t + 1) * D]              # (B, D)
            g = bl
            for d in range(D):
                g = g + m_t[:, d:d + 1] * wih_m[d:d + 1, :]
            gates_in[t] = g                                # (B, 4H)
            inv = pl.reciprocal(_sum11(m_t) + 1e-5, approx=True)   # (1, 1)
            w_loss[t] = m_t * inv                          # (B, D) loss weights

        h = jnp.zeros((B, H), f32)
        c = jnp.zeros((B, H), f32)
        loss_acc = jnp.zeros((B, D), f32)

        # ---- fully unrolled time recurrence (T is small & static) -------------
        # Serial per-step chain: 1 bf16 MXU matmul + VPU FMAs + sigmoid/tanh.
        for t in range(T):
            s0 = t * D
            x = x_all[:, s0:s0 + D]                        # (B, D)
            mx = mx_all[:, s0:s0 + D]
            omm = omm_all[:, s0:s0 + D]

            if t > 0:                                      # at t == 0 h is exactly 0
                h = h * gamma_h[t]

            # single-pass bf16 MXU op for hist_reg + LSTM W_hh on the h path
            hmat = jnp.dot(h.astype(bf16), whh_whr,
                           preferred_element_type=f32)     # (B, 4H + D)
            gates_h = hmat[:, :H4]                         # h @ W_hh^T
            x_h = jax.nn.sigmoid(hmat[:, H4:] + bhr)       # hist_reg + sigmoid

            x_c = mx + omm * x_h

            # FeatureRegression: K = D = 4 -> 4 VPU broadcast-FMAs (off the MXU)
            z = bfr
            for d in range(D):
                z = z + x_c[:, d:d + 1] * wfr[d:d + 1, :]
            z_h = jax.nn.sigmoid(z)

            # both loss terms share one (pre-inverted) denominator weight
            loss_acc = loss_acc + (jnp.abs(x - x_h) + jnp.abs(x - z_h)) * w_loss[t]

            c_h = jnp.abs(0.5 * z_h + 0.5 * x_h)
            c_c = mx + omm * c_h
            # TODO(synk): staging all T imputation tiles and doing one dense
            # store would avoid T masked 4-lane stores, but a lane-dim concat
            # of 4-wide pieces adds lowering risk for a negligible gain here.
            imp_ref[:, s0:s0 + D] = c_c                    # imputations[:, t, :]

            # LSTMCell on concat([c_c, m]) (PyTorch gate order i, f, g, o);
            # the m-half of W_ih and both biases were hoisted into gates_in.
            g = gates_h + gates_in[t]
            for d in range(D):
                g = g + c_c[:, d:d + 1] * wih_c[d:d + 1, :]
            sg = jax.nn.sigmoid(g)
            i_g = sg[:, 0 * H:1 * H]
            f_g = sg[:, 1 * H:2 * H]
            o_g = sg[:, 3 * H:4 * H]
            g_g = jnp.tanh(g[:, 2 * H:3 * H])              # tanh only on the g-gate slice
            c = f_g * c + i_g * g_g
            h = o_g * jnp.tanh(c)

        loss_ref[...] = _sum11(loss_acc) * jnp.float32(imputed_weight)

    return pl.pallas_call(
        kernel,
        out_shape=(jax.ShapeDtypeStruct((B, TD), jnp.float32),
                   jax.ShapeDtypeStruct((1, 1), jnp.float32)),
    )


def model_forward(data, params, *, rnn_hid_size, imputed_weight, direct="forward"):
    """JAX/Pallas equivalent of Model.forward(data, direct)."""
    values = data if direct == "forward" else jnp.flip(data, axis=1)
    values = values.astype(jnp.float32)
    B, T, D = values.shape
    H = rnn_hid_size

    # row-major collapse (b, t, d) -> (b, t*D + d): a free reshape, no transpose
    vals2d = values.reshape(B, T * D)

    # weights pre-transposed / pre-fused once (tiny; hoisted as constants by jit)
    wdh_t = params["W_dh"].T                                                  # (D, H)
    bdh = params["b_dh"].reshape(1, H)
    whh_whr = jnp.concatenate([params["W_hh"].T, params["W_hr"].T],
                              axis=1).astype(jnp.bfloat16)                    # (H, 4H + D) bf16
    bhr = params["b_hr"].reshape(1, D)
    wfr_t = (params["W_fr"] * (1.0 - jnp.eye(D, dtype=jnp.float32))).T        # (D, D)
    bfr = params["b_fr"].reshape(1, D)
    wih_c_t = params["W_ih"][:, :D].T                                         # (D, 4H)
    wih_m_t = params["W_ih"][:, D:].T                                         # (D, 4H)
    blstm = (params["b_ih"] + params["b_hh"]).reshape(1, 4 * H)

    call = make_rits_call(B, T, D, H, float(imputed_weight))
    imp2d, loss = call(vals2d, wdh_t, bdh, whh_whr, bhr, wfr_t, bfr,
                       wih_c_t, wih_m_t, blstm)

    # TODO(synk): the BRITS wrapper runs a second (backward) RITS pass; stacking
    # it along the batch axis (or on the second v7x TensorCore via a parallel
    # grid axis) would fill the idle sublanes/MXU rows — a single direction is
    # inherently sequential so only 2/8 sublanes are used here.
    return {"loss": loss[0, 0], "imputations": imp2d.reshape(B, T, D)}


def reference_forward(data_np, p, rnn_hid_size, imputed_weight):
    """Plain NumPy port of the PyTorch Model.forward (for self-checking)."""
    values = np.asarray(data_np, dtype=np.float32)
    B, T, D = values.shape
    H = rnn_hid_size
    masks = (~np.isnan(values)).astype(np.float32)

    delta = np.zeros_like(masks)
    for b in range(B):
        for t in range(T):
            for d in range(D):
                if t == 0:
                    delta[b, t, d] = 0
                elif masks[b, t - 1, d] == 0:
                    delta[b, t, d] = delta[b, t, d - 1] + 1
                elif masks[b, t, d - 1] == 1:
                    delta[b, t, d] = 1

    x = np.nan_to_num(values)
    eye = np.eye(D, dtype=np.float32)

    def sigmoid(z):
        return 1.0 / (1.0 + np.exp(-z))

    h = np.zeros((B, H), np.float32)
    c = np.zeros((B, H), np.float32)
    loss = 0.0
    imps = []
    for t in range(T):
        xt, mt, dt = x[:, t, :], masks[:, t, :], delta[:, t, :]
        gamma_h = np.exp(-np.maximum(dt @ p["W_dh"].T + p["b_dh"], 0.0))
        h = h * gamma_h
        x_h = sigmoid(h @ p["W_hr"].T + p["b_hr"])
        loss += np.sum(np.abs(xt - x_h) * mt) / (np.sum(mt) + 1e-5)
        x_c = mt * xt + (1 - mt) * x_h
        z_h = sigmoid(x_c @ (p["W_fr"] * (1 - eye)).T + p["b_fr"])
        loss += np.sum(np.abs(xt - z_h) * mt) / (np.sum(mt) + 1e-5)
        c_h = np.abs(0.5 * z_h + 0.5 * x_h)
        c_c = mt * xt + (1 - mt) * c_h
        gates = (np.concatenate([c_c, mt], axis=1) @ p["W_ih"].T + p["b_ih"]
                 + h @ p["W_hh"].T + p["b_hh"])
        i_g = sigmoid(gates[:, :H])
        f_g = sigmoid(gates[:, H:2 * H])
        g_g = np.tanh(gates[:, 2 * H:3 * H])
        o_g = sigmoid(gates[:, 3 * H:])
        c = f_g * c + i_g * g_g
        h = o_g * np.tanh(c)
        imps.append(c_c[:, None, :])
    return float(loss) * imputed_weight, np.concatenate(imps, axis=1)


if __name__ == "__main__":
    # args: seq_len=8, channels=4, rnn_hid_size=32, imputed_weight=1.0
    B, T, D, H = 2, 8, 4, 32
    imputed_weight = 1.0

    key = jax.random.PRNGKey(0)
    k = jax.random.split(key, 14)

    def u(kk, shape, stdv):
        return jax.random.uniform(kk, shape, jnp.float32, -stdv, stdv)

    sH = 1.0 / math.sqrt(H)
    sD = 1.0 / math.sqrt(D)
    params = {
        "W_dh": u(k[0], (H, D), sH), "b_dh": u(k[1], (H,), sH),               # temp_decay_h
        "W_dx": u(k[2], (D, D), sD), "b_dx": u(k[3], (D,), sD),               # temp_decay_x (dead)
        "W_hr": u(k[4], (D, H), sH), "b_hr": u(k[5], (D,), sH),               # hist_reg
        "W_fr": u(k[6], (D, D), sD), "b_fr": u(k[7], (D,), sD),               # feat_reg
        "W_ih": u(k[8], (4 * H, 2 * D), sH), "b_ih": u(k[9], (4 * H,), sH),   # LSTMCell
        "W_hh": u(k[10], (4 * H, H), sH), "b_hh": u(k[11], (4 * H,), sH),
    }

    data = jax.random.normal(k[12], (B, T, D), jnp.float32)
    nan_mask = jax.random.bernoulli(k[13], 0.3, (B, T, D))
    data = jnp.where(nan_mask, jnp.nan, data)   # missing values, as in RITS input

    fwd = jax.jit(lambda d: model_forward(
        d, params, rnn_hid_size=H, imputed_weight=imputed_weight,
        direct="forward"))
    out = fwd(data)
    jax.block_until_ready(out)

    assert out["imputations"].shape == (B, T, D)
    assert bool(jnp.isfinite(out["loss"]))
    assert bool(jnp.all(jnp.isfinite(out["imputations"])))

    # self-check against a NumPy port of the PyTorch reference (tolerance loose
    # enough for the bf16 MXU operands / EUP approx reciprocal, with f32 accum)
    params_np = {kk: np.asarray(vv) for kk, vv in params.items()}
    ref_loss, ref_imp = reference_forward(np.asarray(data), params_np, H, imputed_weight)
    np.testing.assert_allclose(np.asarray(out["imputations"]), ref_imp,
                               rtol=3e-2, atol=3e-2)
    np.testing.assert_allclose(float(out["loss"]), ref_loss, rtol=3e-2, atol=3e-2)

    print("KERNEL_OK")
</pallas_src>

<mosaic_0001>
module attributes {stable_mosaic.version = 11 : i64} {
  func.func @kernel(%arg0: memref<2x32xf32, #tpu.memory_space<vmem>>, %arg1: memref<4x32xf32, #tpu.memory_space<vmem>>, %arg2: memref<1x32xf32, #tpu.memory_space<vmem>>, %arg3: memref<32x132xbf16, #tpu.memory_space<vmem>>, %arg4: memref<1x4xf32, #tpu.memory_space<vmem>>, %arg5: memref<4x4xf32, #tpu.memory_space<vmem>>, %arg6: memref<1x4xf32, #tpu.memory_space<vmem>>, %arg7: memref<4x128xf32, #tpu.memory_space<vmem>>, %arg8: memref<4x128xf32, #tpu.memory_space<vmem>>, %arg9: memref<1x128xf32, #tpu.memory_space<vmem>>, %arg10: memref<2x32xf32, #tpu.memory_space<vmem>>, %arg11: memref<1x1xf32, #tpu.memory_space<vmem>>) attributes {dimension_semantics = [], scalar_prefetch = 0 : i64, scratch_operands = 0 : i64, tpu.core_type = #tpu.core_type<tc>} {
    %c0 = arith.constant 0 : index
    %c0_0 = arith.constant 0 : index
    %0 = vector.load %arg0[%c0, %c0_0] : memref<2x32xf32, #tpu.memory_space<vmem>>, vector<2x32xf32>
    %1 = arith.cmpf one, %0, %0 : vector<2x32xf32>
    %cst = arith.constant 0.000000e+00 : f32
    %cst_1 = arith.constant 1.000000e+00 : f32
    %2 = vector.broadcast %cst : f32 to vector<2x32xf32>
    %3 = vector.broadcast %cst_1 : f32 to vector<2x32xf32>
    %4 = arith.select %1, %2, %3 : vector<2x32xi1>, vector<2x32xf32>
    %cst_2 = arith.constant 0.000000e+00 : f32
    %5 = vector.broadcast %cst_2 : f32 to vector<2x32xf32>
    %6 = arith.select %1, %5, %0 : vector<2x32xi1>, vector<2x32xf32>
    %7 = arith.mulf %4, %6 : vector<2x32xf32>
    %cst_3 = arith.constant 1.000000e+00 : f32
    %8 = vector.broadcast %cst_3 : f32 to vector<2x32xf32>
    %9 = arith.subf %8, %4 : vector<2x32xf32>
    %c0_4 = arith.constant 0 : index
    %c0_5 = arith.constant 0 : index
    %10 = vector.load %arg1[%c0_4, %c0_5] : memref<4x32xf32, #tpu.memory_space<vmem>>, vector<4x32xf32>
    %c0_6 = arith.constant 0 : index
    %c0_7 = arith.constant 0 : index
    %11 = vector.load %arg2[%c0_6, %c0_7] : memref<1x32xf32, #tpu.memory_space<vmem>>, vector<1x32xf32>
    %c0_8 = arith.constant 0 : index
    %c0_9 = arith.constant 0 : index
    %12 = vector.load %arg3[%c0_8, %c0_9] : memref<32x132xbf16, #tpu.memory_space<vmem>>, vector<32x132xbf16>
    %c0_10 = arith.constant 0 : index
    %c0_11 = arith.constant 0 : index
    %13 = vector.load %arg4[%c0_10, %c0_11] : memref<1x4xf32, #tpu.memory_space<vmem>>, vector<1x4xf32>
    %c0_12 = arith.constant 0 : index
    %c0_13 = arith.constant 0 : index
    %14 = vector.load %arg5[%c0_12, %c0_13] : memref<4x4xf32, #tpu.memory_space<vmem>>, vector<4x4xf32>
    %c0_14 = arith.constant 0 : index
    %c0_15 = arith.constant 0 : index
    %15 = vector.load %arg6[%c0_14, %c0_15] : memref<1x4xf32, #tpu.memory_space<vmem>>, vector<1x4xf32>
    %c0_16 = arith.constant 0 : index
    %c0_17 = arith.constant 0 : index
    %16 = vector.load %arg7[%c0_16, %c0_17] : memref<4x128xf32, #tpu.memory_space<vmem>>, vector<4x128xf32>
    %c0_18 = arith.constant 0 : index
    %c0_19 = arith.constant 0 : index
    %17 = vector.load %arg8[%c0_18, %c0_19] : memref<4x128xf32, #tpu.memory_space<vmem>>, vector<4x128xf32>
    %c0_20 = arith.constant 0 : index
    %c0_21 = arith.constant 0 : index
    %18 = vector.load %arg9[%c0_20, %c0_21] : memref<1x128xf32, #tpu.memory_space<vmem>>, vector<1x128xf32>
    %cst_22 = arith.constant 0.000000e+00 : f32
    %19 = vector.broadcast %cst_22 : f32 to vector<2x1xf32>
    %20 = vector.extract_strided_slice %4 {offsets = [0, 0], sizes = [2, 1], strides = [1, 1]} : vector<2x32xf32> to vector<2x1xf32>
    %21 = vector.extract_strided_slice %4 {offsets = [0, 7], sizes = [2, 1], strides = [1, 1]} : vector<2x32xf32> to vector<2x1xf32>
    %cst_23 = arith.constant 0.000000e+00 : f32
    %22 = vector.broadcast %cst_23 : f32 to vector<2x1xf32>
    %23 = arith.cmpf oeq, %20, %22 : vector<2x1xf32>
    %cst_24 = arith.constant 1.000000e+00 : f32
    %24 = vector.broadcast %cst_24 : f32 to vector<2x1xf32>
    %25 = arith.addf %19, %24 : vector<2x1xf32>
    %cst_25 = arith.constant 1.000000e+00 : f32
    %26 = vector.broadcast %cst_25 : f32 to vector<2x1xf32>
    %27 = arith.cmpf oeq, %21, %26 : vector<2x1xf32>
    %cst_26 = arith.constant 1.000000e+00 : f32
    %cst_27 = arith.constant 0.000000e+00 : f32
    %28 = vector.broadcast %cst_26 : f32 to vector<2x1xf32>
    %29 = vector.broadcast %cst_27 : f32 to vector<2x1xf32>
    %30 = arith.select %27, %28, %29 : vector<2x1xi1>, vector<2x1xf32>
    %31 = arith.select %23, %25, %30 : vector<2x1xi1>, vector<2x1xf32>
    %32 = vector.extract_strided_slice %10 {offsets = [0, 0], sizes = [1, 32], strides = [1, 1]} : vector<4x32xf32> to vector<1x32xf32>
    %33 = vector.broadcast %31 : vector<2x1xf32> to vector<2x32xf32>
    %34 = vector.broadcast %32 : vector<1x32xf32> to vector<2x32xf32>
    %35 = arith.mulf %33, %34 : vector<2x32xf32>
    %36 = vector.broadcast %11 : vector<1x32xf32> to vector<2x32xf32>
    %37 = arith.addf %36, %35 : vector<2x32xf32>
    %38 = vector.extract_strided_slice %4 {offsets = [0, 1], sizes = [2, 1], strides = [1, 1]} : vector<2x32xf32> to vector<2x1xf32>
    %39 = vector.extract_strided_slice %4 {offsets = [0, 4], sizes = [2, 1], strides = [1, 1]} : vector<2x32xf32> to vector<2x1xf32>
    %cst_28 = arith.constant 0.000000e+00 : f32
    %40 = vector.broadcast %cst_28 : f32 to vector<2x1xf32>
    %41 = arith.cmpf oeq, %38, %40 : vector<2x1xf32>
    %cst_29 = arith.constant 1.000000e+00 : f32
    %42 = vector.broadcast %cst_29 : f32 to vector<2x1xf32>
    %43 = arith.addf %31, %42 : vector<2x1xf32>
    %cst_30 = arith.constant 1.000000e+00 : f32
    %44 = vector.broadcast %cst_30 : f32 to vector<2x1xf32>
    %45 = arith.cmpf oeq, %39, %44 : vector<2x1xf32>
    %cst_31 = arith.constant 1.000000e+00 : f32
    %cst_32 = arith.constant 0.000000e+00 : f32
    %46 = vector.broadcast %cst_31 : f32 to vector<2x1xf32>
    %47 = vector.broadcast %cst_32 : f32 to vector<2x1xf32>
    %48 = arith.select %45, %46, %47 : vector<2x1xi1>, vector<2x1xf32>
    %49 = arith.select %41, %43, %48 : vector<2x1xi1>, vector<2x1xf32>
    %50 = vector.extract_strided_slice %10 {offsets = [1, 0], sizes = [1, 32], strides = [1, 1]} : vector<4x32xf32> to vector<1x32xf32>
    %51 = vector.broadcast %49 : vector<2x1xf32> to vector<2x32xf32>
    %52 = vector.broadcast %50 : vector<1x32xf32> to vector<2x32xf32>
    %53 = arith.mulf %51, %52 : vector<2x32xf32>
    %54 = arith.addf %37, %53 : vector<2x32xf32>
    %55 = vector.extract_strided_slice %4 {offsets = [0, 2], sizes = [2, 1], strides = [1, 1]} : vector<2x32xf32> to vector<2x1xf32>
    %56 = vector.extract_strided_slice %4 {offsets = [0, 5], sizes = [2, 1], strides = [1, 1]} : vector<2x32xf32> to vector<2x1xf32>
    %cst_33 = arith.constant 0.000000e+00 : f32
    %57 = vector.broadcast %cst_33 : f32 to vector<2x1xf32>
    %58 = arith.cmpf oeq, %55, %57 : vector<2x1xf32>
    %cst_34 = arith.constant 1.000000e+00 : f32
    %59 = vector.broadcast %cst_34 : f32 to vector<2x1xf32>
    %60 = arith.addf %49, %59 : vector<2x1xf32>
    %cst_35 = arith.constant 1.000000e+00 : f32
    %61 = vector.broadcast %cst_35 : f32 to vector<2x1xf32>
    %62 = arith.cmpf oeq, %56, %61 : vector<2x1xf32>
    %cst_36 = arith.constant 1.000000e+00 : f32
    %cst_37 = arith.constant 0.000000e+00 : f32
    %63 = vector.broadcast %cst_36 : f32 to vector<2x1xf32>
    %64 = vector.broadcast %cst_37 : f32 to vector<2x1xf32>
    %65 = arith.select %62, %63, %64 : vector<2x1xi1>, vector<2x1xf32>
    %66 = arith.select %58, %60, %65 : vector<2x1xi1>, vector<2x1xf32>
    %67 = vector.extract_strided_slice %10 {offsets = [2, 0], sizes = [1, 32], strides = [1, 1]} : vector<4x32xf32> to vector<1x32xf32>
    %68 = vector.broadcast %66 : vector<2x1xf32> to vector<2x32xf32>
    %69 = vector.broadcast %67 : vector<1x32xf32> to vector<2x32xf32>
    %70 = arith.mulf %68, %69 : vector<2x32xf32>
    %71 = arith.addf %54, %70 : vector<2x32xf32>
    %72 = vector.extract_strided_slice %4 {offsets = [0, 3], sizes = [2, 1], strides = [1, 1]} : vector<2x32xf32> to vector<2x1xf32>
    %73 = vector.extract_strided_slice %4 {offsets = [0, 6], sizes = [2, 1], strides = [1, 1]} : vector<2x32xf32> to vector<2x1xf32>
    %cst_38 = arith.constant 0.000000e+00 : f32
    %74 = vector.broadcast %cst_38 : f32 to vector<2x1xf32>
    %75 = arith.cmpf oeq, %72, %74 : vector<2x1xf32>
    %cst_39 = arith.constant 1.000000e+00 : f32
    %76 = vector.broadcast %cst_39 : f32 to vector<2x1xf32>
    %77 = arith.addf %66, %76 : vector<2x1xf32>
    %cst_40 = arith.constant 1.000000e+00 : f32
    %78 = vector.broadcast %cst_40 : f32 to vector<2x1xf32>
    %79 = arith.cmpf oeq, %73, %78 : vector<2x1xf32>
    %cst_41 = arith.constant 1.000000e+00 : f32
    %cst_42 = arith.constant 0.000000e+00 : f32
    %80 = vector.broadcast %cst_41 : f32 to vector<2x1xf32>
    %81 = vector.broadcast %cst_42 : f32 to vector<2x1xf32>
    %82 = arith.select %79, %80, %81 : vector<2x1xi1>, vector<2x1xf32>
    %83 = arith.select %75, %77, %82 : vector<2x1xi1>, vector<2x1xf32>
    %84 = vector.extract_strided_slice %10 {offsets = [3, 0], sizes = [1, 32], strides = [1, 1]} : vector<4x32xf32> to vector<1x32xf32>
    %85 = vector.broadcast %83 : vector<2x1xf32> to vector<2x32xf32>
    %86 = vector.broadcast %84 : vector<1x32xf32> to vector<2x32xf32>
    %87 = arith.mulf %85, %86 : vector<2x32xf32>
    %88 = arith.addf %71, %87 : vector<2x32xf32>
    %cst_43 = arith.constant 0.000000e+00 : f32
    %89 = vector.broadcast %cst_43 : f32 to vector<2x32xf32>
    %90 = arith.maximumf %88, %89 : vector<2x32xf32>
    %cst_44 = arith.constant 0.000000e+00 : f32
    %91 = vector.broadcast %cst_44 : f32 to vector<2x32xf32>
    %92 = arith.subf %91, %90 : vector<2x32xf32>
    %93 = math.exp %92 : vector<2x32xf32>
    %cst_45 = arith.constant 0.000000e+00 : f32
    %94 = vector.broadcast %cst_45 : f32 to vector<2x1xf32>
    %95 = vector.extract_strided_slice %4 {offsets = [0, 4], sizes = [2, 1], strides = [1, 1]} : vector<2x32xf32> to vector<2x1xf32>
    %96 = vector.extract_strided_slice %4 {offsets = [0, 11], sizes = [2, 1], strides = [1, 1]} : vector<2x32xf32> to vector<2x1xf32>
    %cst_46 = arith.constant 0.000000e+00 : f32
    %97 = vector.broadcast %cst_46 : f32 to vector<2x1xf32>
    %98 = arith.cmpf oeq, %95, %97 : vector<2x1xf32>
    %cst_47 = arith.constant 1.000000e+00 : f32
    %99 = vector.broadcast %cst_47 : f32 to vector<2x1xf32>
    %100 = arith.addf %94, %99 : vector<2x1xf32>
    %cst_48 = arith.constant 1.000000e+00 : f32
    %101 = vector.broadcast %cst_48 : f32 to vector<2x1xf32>
    %102 = arith.cmpf oeq, %96, %101 : vector<2x1xf32>
    %cst_49 = arith.constant 1.000000e+00 : f32
    %cst_50 = arith.constant 0.000000e+00 : f32
    %103 = vector.broadcast %cst_49 : f32 to vector<2x1xf32>
    %104 = vector.broadcast %cst_50 : f32 to vector<2x1xf32>
    %105 = arith.select %102, %103, %104 : vector<2x1xi1>, vector<2x1xf32>
    %106 = arith.select %98, %100, %105 : vector<2x1xi1>, vector<2x1xf32>
    %107 = vector.extract_strided_slice %10 {offsets = [0, 0], sizes = [1, 32], strides = [1, 1]} : vector<4x32xf32> to vector<1x32xf32>
    %108 = vector.broadcast %106 : vector<2x1xf32> to vector<2x32xf32>
    %109 = vector.broadcast %107 : vector<1x32xf32> to vector<2x32xf32>
    %110 = arith.mulf %108, %109 : vector<2x32xf32>
    %111 = vector.broadcast %11 : vector<1x32xf32> to vector<2x32xf32>
    %112 = arith.addf %111, %110 : vector<2x32xf32>
    %113 = vector.extract_strided_slice %4 {offsets = [0, 5], sizes = [2, 1], strides = [1, 1]} : vector<2x32xf32> to vector<2x1xf32>
    %114 = vector.extract_strided_slice %4 {offsets = [0, 8], sizes = [2, 1], strides = [1, 1]} : vector<2x32xf32> to vector<2x1xf32>
    %cst_51 = arith.constant 0.000000e+00 : f32
    %115 = vector.broadcast %cst_51 : f32 to vector<2x1xf32>
    %116 = arith.cmpf oeq, %113, %115 : vector<2x1xf32>
    %cst_52 = arith.constant 1.000000e+00 : f32
    %117 = vector.broadcast %cst_52 : f32 to vector<2x1xf32>
    %118 = arith.addf %106, %117 : vector<2x1xf32>
    %cst_53 = arith.constant 1.000000e+00 : f32
    %119 = vector.broadcast %cst_53 : f32 to vector<2x1xf32>
    %120 = arith.cmpf oeq, %114, %119 : vector<2x1xf32>
    %cst_54 = arith.constant 1.000000e+00 : f32
    %cst_55 = arith.constant 0.000000e+00 : f32
    %121 = vector.broadcast %cst_54 : f32 to vector<2x1xf32>
    %122 = vector.broadcast %cst_55 : f32 to vector<2x1xf32>
    %123 = arith.select %120, %121, %122 : vector<2x1xi1>, vector<2x1xf32>
    %124 = arith.select %116, %118, %123 : vector<2x1xi1>, vector<2x1xf32>
    %125 = vector.extract_strided_slice %10 {offsets = [1, 0], sizes = [1, 32], strides = [1, 1]} : vector<4x32xf32> to vector<1x32xf32>
    %126 = vector.broadcast %124 : vector<2x1xf32> to vector<2x32xf32>
    %127 = vector.broadcast %125 : vector<1x32xf32> to vector<2x32xf32>
    %128 = arith.mulf %126, %127 : vector<2x32xf32>
    %129 = arith.addf %112, %128 : vector<2x32xf32>
    %130 = vector.extract_strided_slice %4 {offsets = [0, 6], sizes = [2, 1], strides = [1, 1]} : vector<2x32xf32> to vector<2x1xf32>
    %131 = vector.extract_strided_slice %4 {offsets = [0, 9], sizes = [2, 1], strides = [1, 1]} : vector<2x32xf32> to vector<2x1xf32>
    %cst_56 = arith.constant 0.000000e+00 : f32
    %132 = vector.broadcast %cst_56 : f32 to vector<2x1xf32>
    %133 = arith.cmpf oeq, %130, %132 : vector<2x1xf32>
    %cst_57 = arith.constant 1.000000e+00 : f32
    %134 = vector.broadcast %cst_57 : f32 to vector<2x1xf32>
    %135 = arith.addf %124, %134 : vector<2x1xf32>
    %cst_58 = arith.constant 1.000000e+00 : f32
    %136 = vector.broadcast %cst_58 : f32 to vector<2x1xf32>
    %137 = arith.cmpf oeq, %131, %136 : vector<2x1xf32>
    %cst_59 = arith.constant 1.000000e+00 : f32
    %cst_60 = arith.constant 0.000000e+00 : f32
    %138 = vector.broadcast %cst_59 : f32 to vector<2x1xf32>
    %139 = vector.broadcast %cst_60 : f32 to vector<2x1xf32>
    %140 = arith.select %137, %138, %139 : vector<2x1xi1>, vector<2x1xf32>
    %141 = arith.select %133, %135, %140 : vector<2x1xi1>, vector<2x1xf32>
    %142 = vector.extract_strided_slice %10 {offsets = [2, 0], sizes = [1, 32], strides = [1, 1]} : vector<4x32xf32> to vector<1x32xf32>
    %143 = vector.broadcast %141 : vector<2x1xf32> to vector<2x32xf32>
    %144 = vector.broadcast %142 : vector<1x32xf32> to vector<2x32xf32>
    %145 = arith.mulf %143, %144 : vector<2x32xf32>
    %146 = arith.addf %129, %145 : vector<2x32xf32>
    %147 = vector.extract_strided_slice %4 {offsets = [0, 7], sizes = [2, 1], strides = [1, 1]} : vector<2x32xf32> to vector<2x1xf32>
    %148 = vector.extract_strided_slice %4 {offsets = [0, 10], sizes = [2, 1], strides = [1, 1]} : vector<2x32xf32> to vector<2x1xf32>
    %cst_61 = arith.constant 0.000000e+00 : f32
    %149 = vector.broadcast %cst_61 : f32 to vector<2x1xf32>
    %150 = arith.cmpf oeq, %147, %149 : vector<2x1xf32>
    %cst_62 = arith.constant 1.000000e+00 : f32
    %151 = vector.broadcast %cst_62 : f32 to vector<2x1xf32>
    %152 = arith.addf %141, %151 : vector<2x1xf32>
    %cst_63 = arith.constant 1.000000e+00 : f32
    %153 = vector.broadcast %cst_63 : f32 to vector<2x1xf32>
    %154 = arith.cmpf oeq, %148, %153 : vector<2x1xf32>
    %cst_64 = arith.constant 1.000000e+00 : f32
    %cst_65 = arith.constant 0.000000e+00 : f32
    %155 = vector.broadcast %cst_64 : f32 to vector<2x1xf32>
    %156 = vector.broadcast %cst_65 : f32 to vector<2x1xf32>
    %157 = arith.select %154, %155, %156 : vector<2x1xi1>, vector<2x1xf32>
    %158 = arith.select %150, %152, %157 : vector<2x1xi1>, vector<2x1xf32>
    %159 = vector.extract_strided_slice %10 {offsets = [3, 0], sizes = [1, 32], strides = [1, 1]} : vector<4x32xf32> to vector<1x32xf32>
    %160 = vector.broadcast %158 : vector<2x1xf32> to vector<2x32xf32>
    %161 = vector.broadcast %159 : vector<1x32xf32> to vector<2x32xf32>
    %162 = arith.mulf %160, %161 : vector<2x32xf32>
    %163 = arith.addf %146, %162 : vector<2x32xf32>
    %cst_66 = arith.constant 0.000000e+00 : f32
    %164 = vector.broadcast %cst_66 : f32 to vector<2x32xf32>
    %165 = arith.maximumf %163, %164 : vector<2x32xf32>
    %cst_67 = arith.constant 0.000000e+00 : f32
    %166 = vector.broadcast %cst_67 : f32 to vector<2x32xf32>
    %167 = arith.subf %166, %165 : vector<2x32xf32>
    %168 = math.exp %167 : vector<2x32xf32>
    %cst_68 = arith.constant 0.000000e+00 : f32
    %169 = vector.broadcast %cst_68 : f32 to vector<2x1xf32>
    %170 = vector.extract_strided_slice %4 {offsets = [0, 8], sizes = [2, 1], strides = [1, 1]} : vector<2x32xf32> to vector<2x1xf32>
    %171 = vector.extract_strided_slice %4 {offsets = [0, 15], sizes = [2, 1], strides = [1, 1]} : vector<2x32xf32> to vector<2x1xf32>
    %cst_69 = arith.constant 0.000000e+00 : f32
    %172 = vector.broadcast %cst_69 : f32 to vector<2x1xf32>
    %173 = arith.cmpf oeq, %170, %172 : vector<2x1xf32>
    %cst_70 = arith.constant 1.000000e+00 : f32
    %174 = vector.broadcast %cst_70 : f32 to vector<2x1xf32>
    %175 = arith.addf %169, %174 : vector<2x1xf32>
    %cst_71 = arith.constant 1.000000e+00 : f32
    %176 = vector.broadcast %cst_71 : f32 to vector<2x1xf32>
    %177 = arith.cmpf oeq, %171, %176 : vector<2x1xf32>
    %cst_72 = arith.constant 1.000000e+00 : f32
    %cst_73 = arith.constant 0.000000e+00 : f32
    %178 = vector.broadcast %cst_72 : f32 to vector<2x1xf32>
    %179 = vector.broadcast %cst_73 : f32 to vector<2x1xf32>
    %180 = arith.select %177, %178, %179 : vector<2x1xi1>, vector<2x1xf32>
    %181 = arith.select %173, %175, %180 : vector<2x1xi1>, vector<2x1xf32>
    %182 = vector.extract_strided_slice %10 {offsets = [0, 0], sizes = [1, 32], strides = [1, 1]} : vector<4x32xf32> to vector<1x32xf32>
    %183 = vector.broadcast %181 : vector<2x1xf32> to vector<2x32xf32>
    %184 = vector.broadcast %182 : vector<1x32xf32> to vector<2x32xf32>
    %185 = arith.mulf %183, %184 : vector<2x32xf32>
    %186 = vector.broadcast %11 : vector<1x32xf32> to vector<2x32xf32>
    %187 = arith.addf %186, %185 : vector<2x32xf32>
    %188 = vector.extract_strided_slice %4 {offsets = [0, 9], sizes = [2, 1], strides = [1, 1]} : vector<2x32xf32> to vector<2x1xf32>
    %189 = vector.extract_strided_slice %4 {offsets = [0, 12], sizes = [2, 1], strides = [1, 1]} : vector<2x32xf32> to vector<2x1xf32>
    %cst_74 = arith.constant 0.000000e+00 : f32
    %190 = vector.broadcast %cst_74 : f32 to vector<2x1xf32>
    %191 = arith.cmpf oeq, %188, %190 : vector<2x1xf32>
    %cst_75 = arith.constant 1.000000e+00 : f32
    %192 = vector.broadcast %cst_75 : f32 to vector<2x1xf32>
    %193 = arith.addf %181, %192 : vector<2x1xf32>
    %cst_76 = arith.constant 1.000000e+00 : f32
    %194 = vector.broadcast %cst_76 : f32 to vector<2x1xf32>
    %195 = arith.cmpf oeq, %189, %194 : vector<2x1xf32>
    %cst_77 = arith.constant 1.000000e+00 : f32
    %cst_78 = arith.constant 0.000000e+00 : f32
    %196 = vector.broadcast %cst_77 : f32 to vector<2x1xf32>
    %197 = vector.broadcast %cst_78 : f32 to vector<2x1xf32>
    %198 = arith.select %195, %196, %197 : vector<2x1xi1>, vector<2x1xf32>
    %199 = arith.select %191, %193, %198 : vector<2x1xi1>, vector<2x1xf32>
    %200 = vector.extract_strided_slice %10 {offsets = [1, 0], sizes = [1, 32], strides = [1, 1]} : vector<4x32xf32> to vector<1x32xf32>
    %201 = vector.broadcast %199 : vector<2x1xf32> to vector<2x32xf32>
    %202 = vector.broadcast %200 : vector<1x32xf32> to vector<2x32xf32>
    %203 = arith.mulf %201, %202 : vector<2x32xf32>
    %204 = arith.addf %187, %203 : vector<2x32xf32>
    %205 = vector.extract_strided_slice %4 {offsets = [0, 10], sizes = [2, 1], strides = [1, 1]} : vector<2x32xf32> to vector<2x1xf32>
    %206 = vector.extract_strided_slice %4 {offsets = [0, 13], sizes = [2, 1], strides = [1, 1]} : vector<2x32xf32> to vector<2x1xf32>
    %cst_79 = arith.constant 0.000000e+00 : f32
    %207 = vector.broadcast %cst_79 : f32 to vector<2x1xf32>
    %208 = arith.cmpf oeq, %205, %207 : vector<2x1xf32>
    %cst_80 = arith.constant 1.000000e+00 : f32
    %209 = vector.broadcast %cst_80 : f32 to vector<2x1xf32>
    %210 = arith.addf %199, %209 : vector<2x1xf32>
    %cst_81 = arith.constant 1.000000e+00 : f32
    %211 = vector.broadcast %cst_81 : f32 to vector<2x1xf32>
    %212 = arith.cmpf oeq, %206, %211 : vector<2x1xf32>
    %cst_82 = arith.constant 1.000000e+00 : f32
    %cst_83 = arith.constant 0.000000e+00 : f32
    %213 = vector.broadcast %cst_82 : f32 to vector<2x1xf32>
    %214 = vector.broadcast %cst_83 : f32 to vector<2x1xf32>
    %215 = arith.select %212, %213, %214 : vector<2x1xi1>, vector<2x1xf32>
    %216 = arith.select %208, %210, %215 : vector<2x1xi1>, vector<2x1xf32>
    %217 = vector.extract_strided_slice %10 {offsets = [2, 0], sizes = [1, 32], strides = [1, 1]} : vector<4x32xf32> to vector<1x32xf32>
    %218 = vector.broadcast %216 : vector<2x1xf32> to vector<2x32xf32>
    %219 = vector.broadcast %217 : vector<1x32xf32> to vector<2x32xf32>
    %220 = arith.mulf %218, %219 : vector<2x32xf32>
    %221 = arith.addf %204, %220 : vector<2x32xf32>
    %222 = vector.extract_strided_slice %4 {offsets = [0, 11], sizes = [2, 1], strides = [1, 1]} : vector<2x32xf32> to vector<2x1xf32>
    %223 = vector.extract_strided_slice %4 {offsets = [0, 14], sizes = [2, 1], strides = [1, 1]} : vector<2x32xf32> to vector<2x1xf32>
    %cst_84 = arith.constant 0.000000e+00 : f32
    %224 = vector.broadcast %cst_84 : f32 to vector<2x1xf32>
    %225 = arith.cmpf oeq, %222, %224 : vector<2x1xf32>
    %cst_85 = arith.constant 1.000000e+00 : f32
    %226 = vector.broadcast %cst_85 : f32 to vector<2x1xf32>
    %227 = arith.addf %216, %226 : vector<2x1xf32>
    %cst_86 = arith.constant 1.000000e+00 : f32
    %228 = vector.broadcast %cst_86 : f32 to vector<2x1xf32>
    %229 = arith.cmpf oeq, %223, %228 : vector<2x1xf32>
    %cst_87 = arith.constant 1.000000e+00 : f32
    %cst_88 = arith.constant 0.000000e+00 : f32
    %230 = vector.broadcast %cst_87 : f32 to vector<2x1xf32>
    %231 = vector.broadcast %cst_88 : f32 to vector<2x1xf32>
    %232 = arith.select %229, %230, %231 : vector<2x1xi1>, vector<2x1xf32>
    %233 = arith.select %225, %227, %232 : vector<2x1xi1>, vector<2x1xf32>
    %234 = vector.extract_strided_slice %10 {offsets = [3, 0], sizes = [1, 32], strides = [1, 1]} : vector<4x32xf32> to vector<1x32xf32>
    %235 = vector.broadcast %233 : vector<2x1xf32> to vector<2x32xf32>
    %236 = vector.broadcast %234 : vector<1x32xf32> to vector<2x32xf32>
    %237 = arith.mulf %235, %236 : vector<2x32xf32>
    %238 = arith.addf %221, %237 : vector<2x32xf32>
    %cst_89 = arith.constant 0.000000e+00 : f32
    %239 = vector.broadcast %cst_89 : f32 to vector<2x32xf32>
    %240 = arith.maximumf %238, %239 : vector<2x32xf32>
    %cst_90 = arith.constant 0.000000e+00 : f32
    %241 = vector.broadcast %cst_90 : f32 to vector<2x32xf32>
    %242 = arith.subf %241, %240 : vector<2x32xf32>
    %243 = math.exp %242 : vector<2x32xf32>
    %cst_91 = arith.constant 0.000000e+00 : f32
    %244 = vector.broadcast %cst_91 : f32 to vector<2x1xf32>
    %245 = vector.extract_strided_slice %4 {offsets = [0, 12], sizes = [2, 1], strides = [1, 1]} : vector<2x32xf32> to vector<2x1xf32>
    %246 = vector.extract_strided_slice %4 {offsets = [0, 19], sizes = [2, 1], strides = [1, 1]} : vector<2x32xf32> to vector<2x1xf32>
    %cst_92 = arith.constant 0.000000e+00 : f32
    %247 = vector.broadcast %cst_92 : f32 to vector<2x1xf32>
    %248 = arith.cmpf oeq, %245, %247 : vector<2x1xf32>
    %cst_93 = arith.constant 1.000000e+00 : f32
    %249 = vector.broadcast %cst_93 : f32 to vector<2x1xf32>
    %250 = arith.addf %244, %249 : vector<2x1xf32>
    %cst_94 = arith.constant 1.000000e+00 : f32
    %251 = vector.broadcast %cst_94 : f32 to vector<2x1xf32>
    %252 = arith.cmpf oeq, %246, %251 : vector<2x1xf32>
    %cst_95 = arith.constant 1.000000e+00 : f32
    %cst_96 = arith.constant 0.000000e+00 : f32
    %253 = vector.broadcast %cst_95 : f32 to vector<2x1xf32>
    %254 = vector.broadcast %cst_96 : f32 to vector<2x1xf32>
    %255 = arith.select %252, %253, %254 : vector<2x1xi1>, vector<2x1xf32>
    %256 = arith.select %248, %250, %255 : vector<2x1xi1>, vector<2x1xf32>
    %257 = vector.extract_strided_slice %10 {offsets = [0, 0], sizes = [1, 32], strides = [1, 1]} : vector<4x32xf32> to vector<1x32xf32>
    %258 = vector.broadcast %256 : vector<2x1xf32> to vector<2x32xf32>
    %259 = vector.broadcast %257 : vector<1x32xf32> to vector<2x32xf32>
    %260 = arith.mulf %258, %259 : vector<2x32xf32>
    %261 = vector.broadcast %11 : vector<1x32xf32> to vector<2x32xf32>
    %262 = arith.addf %261, %260 : vector<2x32xf32>
    %263 = vector.extract_strided_slice %4 {offsets = [0, 13], sizes = [2, 1], strides = [1, 1]} : vector<2x32xf32> to vector<2x1xf32>
    %264 = vector.extract_strided_slice %4 {offsets = [0, 16], sizes = [2, 1], strides = [1, 1]} : vector<2x32xf32> to vector<2x1xf32>
    %cst_97 = arith.constant 0.000000e+00 : f32
    %265 = vector.broadcast %cst_97 : f32 to vector<2x1xf32>
    %266 = arith.cmpf oeq, %263, %265 : vector<2x1xf32>
    %cst_98 = arith.constant 1.000000e+00 : f32
    %267 = vector.broadcast %cst_98 : f32 to vector<2x1xf32>
    %268 = arith.addf %256, %267 : vector<2x1xf32>
    %cst_99 = arith.constant 1.000000e+00 : f32
    %269 = vector.broadcast %cst_99 : f32 to vector<2x1xf32>
    %270 = arith.cmpf oeq, %264, %269 : vector<2x1xf32>
    %cst_100 = arith.constant 1.000000e+00 : f32
    %cst_101 = arith.constant 0.000000e+00 : f32
    %271 = vector.broadcast %cst_100 : f32 to vector<2x1xf32>
    %272 = vector.broadcast %cst_101 : f32 to vector<2x1xf32>
    %273 = arith.select %270, %271, %272 : vector<2x1xi1>, vector<2x1xf32>
    %274 = arith.select %266, %268, %273 : vector<2x1xi1>, vector<2x1xf32>
    %275 = vector.extract_strided_slice %10 {offsets = [1, 0], sizes = [1, 32], strides = [1, 1]} : vector<4x32xf32> to vector<1x32xf32>
    %276 = vector.broadcast %274 : vector<2x1xf32> to vector<2x32xf32>
    %277 = vector.broadcast %275 : vector<1x32xf32> to vector<2x32xf32>
    %278 = arith.mulf %276, %277 : vector<2x32xf32>
    %279 = arith.addf %262, %278 : vector<2x32xf32>
    %280 = vector.extract_strided_slice %4 {offsets = [0, 14], sizes = [2, 1], strides = [1, 1]} : vector<2x32xf32> to vector<2x1xf32>
    %281 = vector.extract_strided_slice %4 {offsets = [0, 17], sizes = [2, 1], strides = [1, 1]} : vector<2x32xf32> to vector<2x1xf32>
    %cst_102 = arith.constant 0.000000e+00 : f32
    %282 = vector.broadcast %cst_102 : f32 to vector<2x1xf32>
    %283 = arith.cmpf oeq, %280, %282 : vector<2x1xf32>
    %cst_103 = arith.constant 1.000000e+00 : f32
    %284 = vector.broadcast %cst_103 : f32 to vector<2x1xf32>
    %285 = arith.addf %274, %284 : vector<2x1xf32>
    %cst_104 = arith.constant 1.000000e+00 : f32
    %286 = vector.broadcast %cst_104 : f32 to vector<2x1xf32>
    %287 = arith.cmpf oeq, %281, %286 : vector<2x1xf32>
    %cst_105 = arith.constant 1.000000e+00 : f32
    %cst_106 = arith.constant 0.000000e+00 : f32
    %288 = vector.broadcast %cst_105 : f32 to vector<2x1xf32>
    %289 = vector.broadcast %cst_106 : f32 to vector<2x1xf32>
    %290 = arith.select %287, %288, %289 : vector<2x1xi1>, vector<2x1xf32>
    %291 = arith.select %283, %285, %290 : vector<2x1xi1>, vector<2x1xf32>
    %292 = vector.extract_strided_slice %10 {offsets = [2, 0], sizes = [1, 32], strides = [1, 1]} : vector<4x32xf32> to vector<1x32xf32>
    %293 = vector.broadcast %291 : vector<2x1xf32> to vector<2x32xf32>
    %294 = vector.broadcast %292 : vector<1x32xf32> to vector<2x32xf32>
    %295 = arith.mulf %293, %294 : vector<2x32xf32>
    %296 = arith.addf %279, %295 : vector<2x32xf32>
    %297 = vector.extract_strided_slice %4 {offsets = [0, 15], sizes = [2, 1], strides = [1, 1]} : vector<2x32xf32> to vector<2x1xf32>
    %298 = vector.extract_strided_slice %4 {offsets = [0, 18], sizes = [2, 1], strides = [1, 1]} : vector<2x32xf32> to vector<2x1xf32>
    %cst_107 = arith.constant 0.000000e+00 : f32
    %299 = vector.broadcast %cst_107 : f32 to vector<2x1xf32>
    %300 = arith.cmpf oeq, %297, %299 : vector<2x1xf32>
    %cst_108 = arith.constant 1.000000e+00 : f32
    %301 = vector.broadcast %cst_108 : f32 to vector<2x1xf32>
    %302 = arith.addf %291, %301 : vector<2x1xf32>
    %cst_109 = arith.constant 1.000000e+00 : f32
    %303 = vector.broadcast %cst_109 : f32 to vector<2x1xf32>
    %304 = arith.cmpf oeq, %298, %303 : vector<2x1xf32>
    %cst_110 = arith.constant 1.000000e+00 : f32
    %cst_111 = arith.constant 0.000000e+00 : f32
    %305 = vector.broadcast %cst_110 : f32 to vector<2x1xf32>
    %306 = vector.broadcast %cst_111 : f32 to vector<2x1xf32>
    %307 = arith.select %304, %305, %306 : vector<2x1xi1>, vector<2x1xf32>
    %308 = arith.select %300, %302, %307 : vector<2x1xi1>, vector<2x1xf32>
    %309 = vector.extract_strided_slice %10 {offsets = [3, 0], sizes = [1, 32], strides = [1, 1]} : vector<4x32xf32> to vector<1x32xf32>
    %310 = vector.broadcast %308 : vector<2x1xf32> to vector<2x32xf32>
    %311 = vector.broadcast %309 : vector<1x32xf32> to vector<2x32xf32>
    %312 = arith.mulf %310, %311 : vector<2x32xf32>
    %313 = arith.addf %296, %312 : vector<2x32xf32>
    %cst_112 = arith.constant 0.000000e+00 : f32
    %314 = vector.broadcast %cst_112 : f32 to vector<2x32xf32>
    %315 = arith.maximumf %313, %314 : vector<2x32xf32>
    %cst_113 = arith.constant 0.000000e+00 : f32
    %316 = vector.broadcast %cst_113 : f32 to vector<2x32xf32>
    %317 = arith.subf %316, %315 : vector<2x32xf32>
    %318 = math.exp %317 : vector<2x32xf32>
    %cst_114 = arith.constant 0.000000e+00 : f32
    %319 = vector.broadcast %cst_114 : f32 to vector<2x1xf32>
    %320 = vector.extract_strided_slice %4 {offsets = [0, 16], sizes = [2, 1], strides = [1, 1]} : vector<2x32xf32> to vector<2x1xf32>
    %321 = vector.extract_strided_slice %4 {offsets = [0, 23], sizes = [2, 1], strides = [1, 1]} : vector<2x32xf32> to vector<2x1xf32>
    %cst_115 = arith.constant 0.000000e+00 : f32
    %322 = vector.broadcast %cst_115 : f32 to vector<2x1xf32>
    %323 = arith.cmpf oeq, %320, %322 : vector<2x1xf32>
    %cst_116 = arith.constant 1.000000e+00 : f32
    %324 = vector.broadcast %cst_116 : f32 to vector<2x1xf32>
    %325 = arith.addf %319, %324 : vector<2x1xf32>
    %cst_117 = arith.constant 1.000000e+00 : f32
    %326 = vector.broadcast %cst_117 : f32 to vector<2x1xf32>
    %327 = arith.cmpf oeq, %321, %326 : vector<2x1xf32>
    %cst_118 = arith.constant 1.000000e+00 : f32
    %cst_119 = arith.constant 0.000000e+00 : f32
    %328 = vector.broadcast %cst_118 : f32 to vector<2x1xf32>
    %329 = vector.broadcast %cst_119 : f32 to vector<2x1xf32>
    %330 = arith.select %327, %328, %329 : vector<2x1xi1>, vector<2x1xf32>
    %331 = arith.select %323, %325, %330 : vector<2x1xi1>, vector<2x1xf32>
    %332 = vector.extract_strided_slice %10 {offsets = [0, 0], sizes = [1, 32], strides = [1, 1]} : vector<4x32xf32> to vector<1x32xf32>
    %333 = vector.broadcast %331 : vector<2x1xf32> to vector<2x32xf32>
    %334 = vector.broadcast %332 : vector<1x32xf32> to vector<2x32xf32>
    %335 = arith.mulf %333, %334 : vector<2x32xf32>
    %336 = vector.broadcast %11 : vector<1x32xf32> to vector<2x32xf32>
    %337 = arith.addf %336, %335 : vector<2x32xf32>
    %338 = vector.extract_strided_slice %4 {offsets = [0, 17], sizes = [2, 1], strides = [1, 1]} : vector<2x32xf32> to vector<2x1xf32>
    %339 = vector.extract_strided_slice %4 {offsets = [0, 20], sizes = [2, 1], strides = [1, 1]} : vector<2x32xf32> to vector<2x1xf32>
    %cst_120 = arith.constant 0.000000e+00 : f32
    %340 = vector.broadcast %cst_120 : f32 to vector<2x1xf32>
    %341 = arith.cmpf oeq, %338, %340 : vector<2x1xf32>
    %cst_121 = arith.constant 1.000000e+00 : f32
    %342 = vector.broadcast %cst_121 : f32 to vector<2x1xf32>
    %343 = arith.addf %331, %342 : vector<2x1xf32>
    %cst_122 = arith.constant 1.000000e+00 : f32
    %344 = vector.broadcast %cst_122 : f32 to vector<2x1xf32>
    %345 = arith.cmpf oeq, %339, %344 : vector<2x1xf32>
    %cst_123 = arith.constant 1.000000e+00 : f32
    %cst_124 = arith.constant 0.000000e+00 : f32
    %346 = vector.broadcast %cst_123 : f32 to vector<2x1xf32>
    %347 = vector.broadcast %cst_124 : f32 to vector<2x1xf32>
    %348 = arith.select %345, %346, %347 : vector<2x1xi1>, vector<2x1xf32>
    %349 = arith.select %341, %343, %348 : vector<2x1xi1>, vector<2x1xf32>
    %350 = vector.extract_strided_slice %10 {offsets = [1, 0], sizes = [1, 32], strides = [1, 1]} : vector<4x32xf32> to vector<1x32xf32>
    %351 = vector.broadcast %349 : vector<2x1xf32> to vector<2x32xf32>
    %352 = vector.broadcast %350 : vector<1x32xf32> to vector<2x32xf32>
    %353 = arith.mulf %351, %352 : vector<2x32xf32>
    %354 = arith.addf %337, %353 : vector<2x32xf32>
    %355 = vector.extract_strided_slice %4 {offsets = [0, 18], sizes = [2, 1], strides = [1, 1]} : vector<2x32xf32> to vector<2x1xf32>
    %356 = vector.extract_strided_slice %4 {offsets = [0, 21], sizes = [2, 1], strides = [1, 1]} : vector<2x32xf32> to vector<2x1xf32>
    %cst_125 = arith.constant 0.000000e+00 : f32
    %357 = vector.broadcast %cst_125 : f32 to vector<2x1xf32>
    %358 = arith.cmpf oeq, %355, %357 : vector<2x1xf32>
    %cst_126 = arith.constant 1.000000e+00 : f32
    %359 = vector.broadcast %cst_126 : f32 to vector<2x1xf32>
    %360 = arith.addf %349, %359 : vector<2x1xf32>
    %cst_127 = arith.constant 1.000000e+00 : f32
    %361 = vector.broadcast %cst_127 : f32 to vector<2x1xf32>
    %362 = arith.cmpf oeq, %356, %361 : vector<2x1xf32>
    %cst_128 = arith.constant 1.000000e+00 : f32
    %cst_129 = arith.constant 0.000000e+00 : f32
    %363 = vector.broadcast %cst_128 : f32 to vector<2x1xf32>
    %364 = vector.broadcast %cst_129 : f32 to vector<2x1xf32>
    %365 = arith.select %362, %363, %364 : vector<2x1xi1>, vector<2x1xf32>
    %366 = arith.select %358, %360, %365 : vector<2x1xi1>, vector<2x1xf32>
    %367 = vector.extract_strided_slice %10 {offsets = [2, 0], sizes = [1, 32], strides = [1, 1]} : vector<4x32xf32> to vector<1x32xf32>
    %368 = vector.broadcast %366 : vector<2x1xf32> to vector<2x32xf32>
    %369 = vector.broadcast %367 : vector<1x32xf32> to vector<2x32xf32>
    %370 = arith.mulf %368, %369 : vector<2x32xf32>
    %371 = arith.addf %354, %370 : vector<2x32xf32>
    %372 = vector.extract_strided_slice %4 {offsets = [0, 19], sizes = [2, 1], strides = [1, 1]} : vector<2x32xf32> to vector<2x1xf32>
    %373 = vector.extract_strided_slice %4 {offsets = [0, 22], sizes = [2, 1], strides = [1, 1]} : vector<2x32xf32> to vector<2x1xf32>
    %cst_130 = arith.constant 0.000000e+00 : f32
    %374 = vector.broadcast %cst_130 : f32 to vector<2x1xf32>
    %375 = arith.cmpf oeq, %372, %374 : vector<2x1xf32>
    %cst_131 = arith.constant 1.000000e+00 : f32
    %376 = vector.broadcast %cst_131 : f32 to vector<2x1xf32>
    %377 = arith.addf %366, %376 : vector<2x1xf32>
    %cst_132 = arith.constant 1.000000e+00 : f32
    %378 = vector.broadcast %cst_132 : f32 to vector<2x1xf32>
    %379 = arith.cmpf oeq, %373, %378 : vector<2x1xf32>
    %cst_133 = arith.constant 1.000000e+00 : f32
    %cst_134 = arith.constant 0.000000e+00 : f32
    %380 = vector.broadcast %cst_133 : f32 to vector<2x1xf32>
    %381 = vector.broadcast %cst_134 : f32 to vector<2x1xf32>
    %382 = arith.select %379, %380, %381 : vector<2x1xi1>, vector<2x1xf32>
    %383 = arith.select %375, %377, %382 : vector<2x1xi1>, vector<2x1xf32>
    %384 = vector.extract_strided_slice %10 {offsets = [3, 0], sizes = [1, 32], strides = [1, 1]} : vector<4x32xf32> to vector<1x32xf32>
    %385 = vector.broadcast %383 : vector<2x1xf32> to vector<2x32xf32>
    %386 = vector.broadcast %384 : vector<1x32xf32> to vector<2x32xf32>
    %387 = arith.mulf %385, %386 : vector<2x32xf32>
    %388 = arith.addf %371, %387 : vector<2x32xf32>
    %cst_135 = arith.constant 0.000000e+00 : f32
    %389 = vector.broadcast %cst_135 : f32 to vector<2x32xf32>
    %390 = arith.maximumf %388, %389 : vector<2x32xf32>
    %cst_136 = arith.constant 0.000000e+00 : f32
    %391 = vector.broadcast %cst_136 : f32 to vector<2x32xf32>
    %392 = arith.subf %391, %390 : vector<2x32xf32>
    %393 = math.exp %392 : vector<2x32xf32>
    %cst_137 = arith.constant 0.000000e+00 : f32
    %394 = vector.broadcast %cst_137 : f32 to vector<2x1xf32>
    %395 = vector.extract_strided_slice %4 {offsets = [0, 20], sizes = [2, 1], strides = [1, 1]} : vector<2x32xf32> to vector<2x1xf32>
    %396 = vector.extract_strided_slice %4 {offsets = [0, 27], sizes = [2, 1], strides = [1, 1]} : vector<2x32xf32> to vector<2x1xf32>
    %cst_138 = arith.constant 0.000000e+00 : f32
    %397 = vector.broadcast %cst_138 : f32 to vector<2x1xf32>
    %398 = arith.cmpf oeq, %395, %397 : vector<2x1xf32>
    %cst_139 = arith.constant 1.000000e+00 : f32
    %399 = vector.broadcast %cst_139 : f32 to vector<2x1xf32>
    %400 = arith.addf %394, %399 : vector<2x1xf32>
    %cst_140 = arith.constant 1.000000e+00 : f32
    %401 = vector.broadcast %cst_140 : f32 to vector<2x1xf32>
    %402 = arith.cmpf oeq, %396, %401 : vector<2x1xf32>
    %cst_141 = arith.constant 1.000000e+00 : f32
    %cst_142 = arith.constant 0.000000e+00 : f32
    %403 = vector.broadcast %cst_141 : f32 to vector<2x1xf32>
    %404 = vector.broadcast %cst_142 : f32 to vector<2x1xf32>
    %405 = arith.select %402, %403, %404 : vector<2x1xi1>, vector<2x1xf32>
    %406 = arith.select %398, %400, %405 : vector<2x1xi1>, vector<2x1xf32>
    %407 = vector.extract_strided_slice %10 {offsets = [0, 0], sizes = [1, 32], strides = [1, 1]} : vector<4x32xf32> to vector<1x32xf32>
    %408 = vector.broadcast %406 : vector<2x1xf32> to vector<2x32xf32>
    %409 = vector.broadcast %407 : vector<1x32xf32> to vector<2x32xf32>
    %410 = arith.mulf %408, %409 : vector<2x32xf32>
    %411 = vector.broadcast %11 : vector<1x32xf32> to vector<2x32xf32>
    %412 = arith.addf %411, %410 : vector<2x32xf32>
    %413 = vector.extract_strided_slice %4 {offsets = [0, 21], sizes = [2, 1], strides = [1, 1]} : vector<2x32xf32> to vector<2x1xf32>
    %414 = vector.extract_strided_slice %4 {offsets = [0, 24], sizes = [2, 1], strides = [1, 1]} : vector<2x32xf32> to vector<2x1xf32>
    %cst_143 = arith.constant 0.000000e+00 : f32
    %415 = vector.broadcast %cst_143 : f32 to vector<2x1xf32>
    %416 = arith.cmpf oeq, %413, %415 : vector<2x1xf32>
    %cst_144 = arith.constant 1.000000e+00 : f32
    %417 = vector.broadcast %cst_144 : f32 to vector<2x1xf32>
    %418 = arith.addf %406, %417 : vector<2x1xf32>
    %cst_145 = arith.constant 1.000000e+00 : f32
    %419 = vector.broadcast %cst_145 : f32 to vector<2x1xf32>
    %420 = arith.cmpf oeq, %414, %419 : vector<2x1xf32>
    %cst_146 = arith.constant 1.000000e+00 : f32
    %cst_147 = arith.constant 0.000000e+00 : f32
    %421 = vector.broadcast %cst_146 : f32 to vector<2x1xf32>
    %422 = vector.broadcast %cst_147 : f32 to vector<2x1xf32>
    %423 = arith.select %420, %421, %422 : vector<2x1xi1>, vector<2x1xf32>
    %424 = arith.select %416, %418, %423 : vector<2x1xi1>, vector<2x1xf32>
    %425 = vector.extract_strided_slice %10 {offsets = [1, 0], sizes = [1, 32], strides = [1, 1]} : vector<4x32xf32> to vector<1x32xf32>
    %426 = vector.broadcast %424 : vector<2x1xf32> to vector<2x32xf32>
    %427 = vector.broadcast %425 : vector<1x32xf32> to vector<2x32xf32>
    %428 = arith.mulf %426, %427 : vector<2x32xf32>
    %429 = arith.addf %412, %428 : vector<2x32xf32>
    %430 = vector.extract_strided_slice %4 {offsets = [0, 22], sizes = [2, 1], strides = [1, 1]} : vector<2x32xf32> to vector<2x1xf32>
    %431 = vector.extract_strided_slice %4 {offsets = [0, 25], sizes = [2, 1], strides = [1, 1]} : vector<2x32xf32> to vector<2x1xf32>
    %cst_148 = arith.constant 0.000000e+00 : f32
    %432 = vector.broadcast %cst_148 : f32 to vector<2x1xf32>
    %433 = arith.cmpf oeq, %430, %432 : vector<2x1xf32>
    %cst_149 = arith.constant 1.000000e+00 : f32
    %434 = vector.broadcast %cst_149 : f32 to vector<2x1xf32>
    %435 = arith.addf %424, %434 : vector<2x1xf32>
    %cst_150 = arith.constant 1.000000e+00 : f32
    %436 = vector.broadcast %cst_150 : f32 to vector<2x1xf32>
    %437 = arith.cmpf oeq, %431, %436 : vector<2x1xf32>
    %cst_151 = arith.constant 1.000000e+00 : f32
    %cst_152 = arith.constant 0.000000e+00 : f32
    %438 = vector.broadcast %cst_151 : f32 to vector<2x1xf32>
    %439 = vector.broadcast %cst_152 : f32 to vector<2x1xf32>
    %440 = arith.select %437, %438, %439 : vector<2x1xi1>, vector<2x1xf32>
    %441 = arith.select %433, %435, %440 : vector<2x1xi1>, vector<2x1xf32>
    %442 = vector.extract_strided_slice %10 {offsets = [2, 0], sizes = [1, 32], strides = [1, 1]} : vector<4x32xf32> to vector<1x32xf32>
    %443 = vector.broadcast %441 : vector<2x1xf32> to vector<2x32xf32>
    %444 = vector.broadcast %442 : vector<1x32xf32> to vector<2x32xf32>
    %445 = arith.mulf %443, %444 : vector<2x32xf32>
    %446 = arith.addf %429, %445 : vector<2x32xf32>
    %447 = vector.extract_strided_slice %4 {offsets = [0, 23], sizes = [2, 1], strides = [1, 1]} : vector<2x32xf32> to vector<2x1xf32>
    %448 = vector.extract_strided_slice %4 {offsets = [0, 26], sizes = [2, 1], strides = [1, 1]} : vector<2x32xf32> to vector<2x1xf32>
    %cst_153 = arith.constant 0.000000e+00 : f32
    %449 = vector.broadcast %cst_153 : f32 to vector<2x1xf32>
    %450 = arith.cmpf oeq, %447, %449 : vector<2x1xf32>
    %cst_154 = arith.constant 1.000000e+00 : f32
    %451 = vector.broadcast %cst_154 : f32 to vector<2x1xf32>
    %452 = arith.addf %441, %451 : vector<2x1xf32>
    %cst_155 = arith.constant 1.000000e+00 : f32
    %453 = vector.broadcast %cst_155 : f32 to vector<2x1xf32>
    %454 = arith.cmpf oeq, %448, %453 : vector<2x1xf32>
    %cst_156 = arith.constant 1.000000e+00 : f32
    %cst_157 = arith.constant 0.000000e+00 : f32
    %455 = vector.broadcast %cst_156 : f32 to vector<2x1xf32>
    %456 = vector.broadcast %cst_157 : f32 to vector<2x1xf32>
    %457 = arith.select %454, %455, %456 : vector<2x1xi1>, vector<2x1xf32>
    %458 = arith.select %450, %452, %457 : vector<2x1xi1>, vector<2x1xf32>
    %459 = vector.extract_strided_slice %10 {offsets = [3, 0], sizes = [1, 32], strides = [1, 1]} : vector<4x32xf32> to vector<1x32xf32>
    %460 = vector.broadcast %458 : vector<2x1xf32> to vector<2x32xf32>
    %461 = vector.broadcast %459 : vector<1x32xf32> to vector<2x32xf32>
    %462 = arith.mulf %460, %461 : vector<2x32xf32>
    %463 = arith.addf %446, %462 : vector<2x32xf32>
    %cst_158 = arith.constant 0.000000e+00 : f32
    %464 = vector.broadcast %cst_158 : f32 to vector<2x32xf32>
    %465 = arith.maximumf %463, %464 : vector<2x32xf32>
    %cst_159 = arith.constant 0.000000e+00 : f32
    %466 = vector.broadcast %cst_159 : f32 to vector<2x32xf32>
    %467 = arith.subf %466, %465 : vector<2x32xf32>
    %468 = math.exp %467 : vector<2x32xf32>
    %cst_160 = arith.constant 0.000000e+00 : f32
    %469 = vector.broadcast %cst_160 : f32 to vector<2x1xf32>
    %470 = vector.extract_strided_slice %4 {offsets = [0, 24], sizes = [2, 1], strides = [1, 1]} : vector<2x32xf32> to vector<2x1xf32>
    %471 = vector.extract_strided_slice %4 {offsets = [0, 31], sizes = [2, 1], strides = [1, 1]} : vector<2x32xf32> to vector<2x1xf32>
    %cst_161 = arith.constant 0.000000e+00 : f32
    %472 = vector.broadcast %cst_161 : f32 to vector<2x1xf32>
    %473 = arith.cmpf oeq, %470, %472 : vector<2x1xf32>
    %cst_162 = arith.constant 1.000000e+00 : f32
    %474 = vector.broadcast %cst_162 : f32 to vector<2x1xf32>
    %475 = arith.addf %469, %474 : vector<2x1xf32>
    %cst_163 = arith.constant 1.000000e+00 : f32
    %476 = vector.broadcast %cst_163 : f32 to vector<2x1xf32>
    %477 = arith.cmpf oeq, %471, %476 : vector<2x1xf32>
    %cst_164 = arith.constant 1.000000e+00 : f32
    %cst_165 = arith.constant 0.000000e+00 : f32
    %478 = vector.broadcast %cst_164 : f32 to vector<2x1xf32>
    %479 = vector.broadcast %cst_165 : f32 to vector<2x1xf32>
    %480 = arith.select %477, %478, %479 : vector<2x1xi1>, vector<2x1xf32>
    %481 = arith.select %473, %475, %480 : vector<2x1xi1>, vector<2x1xf32>
    %482 = vector.extract_strided_slice %10 {offsets = [0, 0], sizes = [1, 32], strides = [1, 1]} : vector<4x32xf32> to vector<1x32xf32>
    %483 = vector.broadcast %481 : vector<2x1xf32> to vector<2x32xf32>
    %484 = vector.broadcast %482 : vector<1x32xf32> to vector<2x32xf32>
    %485 = arith.mulf %483, %484 : vector<2x32xf32>
    %486 = vector.broadcast %11 : vector<1x32xf32> to vector<2x32xf32>
    %487 = arith.addf %486, %485 : vector<2x32xf32>
    %488 = vector.extract_strided_slice %4 {offsets = [0, 25], sizes = [2, 1], strides = [1, 1]} : vector<2x32xf32> to vector<2x1xf32>
    %489 = vector.extract_strided_slice %4 {offsets = [0, 28], sizes = [2, 1], strides = [1, 1]} : vector<2x32xf32> to vector<2x1xf32>
    %cst_166 = arith.constant 0.000000e+00 : f32
    %490 = vector.broadcast %cst_166 : f32 to vector<2x1xf32>
    %491 = arith.cmpf oeq, %488, %490 : vector<2x1xf32>
    %cst_167 = arith.constant 1.000000e+00 : f32
    %492 = vector.broadcast %cst_167 : f32 to vector<2x1xf32>
    %493 = arith.addf %481, %492 : vector<2x1xf32>
    %cst_168 = arith.constant 1.000000e+00 : f32
    %494 = vector.broadcast %cst_168 : f32 to vector<2x1xf32>
    %495 = arith.cmpf oeq, %489, %494 : vector<2x1xf32>
    %cst_169 = arith.constant 1.000000e+00 : f32
    %cst_170 = arith.constant 0.000000e+00 : f32
    %496 = vector.broadcast %cst_169 : f32 to vector<2x1xf32>
    %497 = vector.broadcast %cst_170 : f32 to vector<2x1xf32>
    %498 = arith.select %495, %496, %497 : vector<2x1xi1>, vector<2x1xf32>
    %499 = arith.select %491, %493, %498 : vector<2x1xi1>, vector<2x1xf32>
    %500 = vector.extract_strided_slice %10 {offsets = [1, 0], sizes = [1, 32], strides = [1, 1]} : vector<4x32xf32> to vector<1x32xf32>
    %501 = vector.broadcast %499 : vector<2x1xf32> to vector<2x32xf32>
    %502 = vector.broadcast %500 : vector<1x32xf32> to vector<2x32xf32>
    %503 = arith.mulf %501, %502 : vector<2x32xf32>
    %504 = arith.addf %487, %503 : vector<2x32xf32>
    %505 = vector.extract_strided_slice %4 {offsets = [0, 26], sizes = [2, 1], strides = [1, 1]} : vector<2x32xf32> to vector<2x1xf32>
    %506 = vector.extract_strided_slice %4 {offsets = [0, 29], sizes = [2, 1], strides = [1, 1]} : vector<2x32xf32> to vector<2x1xf32>
    %cst_171 = arith.constant 0.000000e+00 : f32
    %507 = vector.broadcast %cst_171 : f32 to vector<2x1xf32>
    %508 = arith.cmpf oeq, %505, %507 : vector<2x1xf32>
    %cst_172 = arith.constant 1.000000e+00 : f32
    %509 = vector.broadcast %cst_172 : f32 to vector<2x1xf32>
    %510 = arith.addf %499, %509 : vector<2x1xf32>
    %cst_173 = arith.constant 1.000000e+00 : f32
    %511 = vector.broadcast %cst_173 : f32 to vector<2x1xf32>
    %512 = arith.cmpf oeq, %506, %511 : vector<2x1xf32>
    %cst_174 = arith.constant 1.000000e+00 : f32
    %cst_175 = arith.constant 0.000000e+00 : f32
    %513 = vector.broadcast %cst_174 : f32 to vector<2x1xf32>
    %514 = vector.broadcast %cst_175 : f32 to vector<2x1xf32>
    %515 = arith.select %512, %513, %514 : vector<2x1xi1>, vector<2x1xf32>
    %516 = arith.select %508, %510, %515 : vector<2x1xi1>, vector<2x1xf32>
    %517 = vector.extract_strided_slice %10 {offsets = [2, 0], sizes = [1, 32], strides = [1, 1]} : vector<4x32xf32> to vector<1x32xf32>
    %518 = vector.broadcast %516 : vector<2x1xf32> to vector<2x32xf32>
    %519 = vector.broadcast %517 : vector<1x32xf32> to vector<2x32xf32>
    %520 = arith.mulf %518, %519 : vector<2x32xf32>
    %521 = arith.addf %504, %520 : vector<2x32xf32>
    %522 = vector.extract_strided_slice %4 {offsets = [0, 27], sizes = [2, 1], strides = [1, 1]} : vector<2x32xf32> to vector<2x1xf32>
    %523 = vector.extract_strided_slice %4 {offsets = [0, 30], sizes = [2, 1], strides = [1, 1]} : vector<2x32xf32> to vector<2x1xf32>
    %cst_176 = arith.constant 0.000000e+00 : f32
    %524 = vector.broadcast %cst_176 : f32 to vector<2x1xf32>
    %525 = arith.cmpf oeq, %522, %524 : vector<2x1xf32>
    %cst_177 = arith.constant 1.000000e+00 : f32
    %526 = vector.broadcast %cst_177 : f32 to vector<2x1xf32>
    %527 = arith.addf %516, %526 : vector<2x1xf32>
    %cst_178 = arith.constant 1.000000e+00 : f32
    %528 = vector.broadcast %cst_178 : f32 to vector<2x1xf32>
    %529 = arith.cmpf oeq, %523, %528 : vector<2x1xf32>
    %cst_179 = arith.constant 1.000000e+00 : f32
    %cst_180 = arith.constant 0.000000e+00 : f32
    %530 = vector.broadcast %cst_179 : f32 to vector<2x1xf32>
    %531 = vector.broadcast %cst_180 : f32 to vector<2x1xf32>
    %532 = arith.select %529, %530, %531 : vector<2x1xi1>, vector<2x1xf32>
    %533 = arith.select %525, %527, %532 : vector<2x1xi1>, vector<2x1xf32>
    %534 = vector.extract_strided_slice %10 {offsets = [3, 0], sizes = [1, 32], strides = [1, 1]} : vector<4x32xf32> to vector<1x32xf32>
    %535 = vector.broadcast %533 : vector<2x1xf32> to vector<2x32xf32>
    %536 = vector.broadcast %534 : vector<1x32xf32> to vector<2x32xf32>
    %537 = arith.mulf %535, %536 : vector<2x32xf32>
    %538 = arith.addf %521, %537 : vector<2x32xf32>
    %cst_181 = arith.constant 0.000000e+00 : f32
    %539 = vector.broadcast %cst_181 : f32 to vector<2x32xf32>
    %540 = arith.maximumf %538, %539 : vector<2x32xf32>
    %cst_182 = arith.constant 0.000000e+00 : f32
    %541 = vector.broadcast %cst_182 : f32 to vector<2x32xf32>
    %542 = arith.subf %541, %540 : vector<2x32xf32>
    %543 = math.exp %542 : vector<2x32xf32>
    %544 = vector.extract_strided_slice %4 {offsets = [0, 0], sizes = [2, 4], strides = [1, 1]} : vector<2x32xf32> to vector<2x4xf32>
    %545 = vector.extract_strided_slice %544 {offsets = [0, 0], sizes = [2, 1], strides = [1, 1]} : vector<2x4xf32> to vector<2x1xf32>
    %546 = vector.extract_strided_slice %17 {offsets = [0, 0], sizes = [1, 128], strides = [1, 1]} : vector<4x128xf32> to vector<1x128xf32>
    %547 = vector.broadcast %545 : vector<2x1xf32> to vector<2x128xf32>
    %548 = vector.broadcast %546 : vector<1x128xf32> to vector<2x128xf32>
    %549 = arith.mulf %547, %548 : vector<2x128xf32>
    %550 = vector.broadcast %18 : vector<1x128xf32> to vector<2x128xf32>
    %551 = arith.addf %550, %549 : vector<2x128xf32>
    %552 = vector.extract_strided_slice %544 {offsets = [0, 1], sizes = [2, 1], strides = [1, 1]} : vector<2x4xf32> to vector<2x1xf32>
    %553 = vector.extract_strided_slice %17 {offsets = [1, 0], sizes = [1, 128], strides = [1, 1]} : vector<4x128xf32> to vector<1x128xf32>
    %554 = vector.broadcast %552 : vector<2x1xf32> to vector<2x128xf32>
    %555 = vector.broadcast %553 : vector<1x128xf32> to vector<2x128xf32>
    %556 = arith.mulf %554, %555 : vector<2x128xf32>
    %557 = arith.addf %551, %556 : vector<2x128xf32>
    %558 = vector.extract_strided_slice %544 {offsets = [0, 2], sizes = [2, 1], strides = [1, 1]} : vector<2x4xf32> to vector<2x1xf32>
    %559 = vector.extract_strided_slice %17 {offsets = [2, 0], sizes = [1, 128], strides = [1, 1]} : vector<4x128xf32> to vector<1x128xf32>
    %560 = vector.broadcast %558 : vector<2x1xf32> to vector<2x128xf32>
    %561 = vector.broadcast %559 : vector<1x128xf32> to vector<2x128xf32>
    %562 = arith.mulf %560, %561 : vector<2x128xf32>
    %563 = arith.addf %557, %562 : vector<2x128xf32>
    %564 = vector.extract_strided_slice %544 {offsets = [0, 3], sizes = [2, 1], strides = [1, 1]} : vector<2x4xf32> to vector<2x1xf32>
    %565 = vector.extract_strided_slice %17 {offsets = [3, 0], sizes = [1, 128], strides = [1, 1]} : vector<4x128xf32> to vector<1x128xf32>
    %566 = vector.broadcast %564 : vector<2x1xf32> to vector<2x128xf32>
    %567 = vector.broadcast %565 : vector<1x128xf32> to vector<2x128xf32>
    %568 = arith.mulf %566, %567 : vector<2x128xf32>
    %569 = arith.addf %563, %568 : vector<2x128xf32>
    %cst_183 = arith.constant dense<0.000000e+00> : vector<2xf32>
    %570 = vector.multi_reduction <add>, %544, %cst_183 [1] : vector<2x4xf32> to vector<2xf32>
    %571 = vector.shape_cast %570 : vector<2xf32> to vector<2x1xf32>
    %cst_184 = arith.constant dense<0.000000e+00> : vector<1xf32>
    %572 = vector.multi_reduction <add>, %571, %cst_184 [0] : vector<2x1xf32> to vector<1xf32>
    %573 = vector.shape_cast %572 : vector<1xf32> to vector<1x1xf32>
    %cst_185 = arith.constant 9.99999974E-6 : f32
    %574 = vector.broadcast %cst_185 : f32 to vector<1x1xf32>
    %575 = arith.addf %573, %574 : vector<1x1xf32>
    %576 = tpu.reciprocal %575 {approx = true} : vector<1x1xf32> -> vector<1x1xf32>
    %577 = vector.broadcast %576 : vector<1x1xf32> to vector<2x4xf32>
    %578 = arith.mulf %544, %577 : vector<2x4xf32>
    %579 = vector.extract_strided_slice %4 {offsets = [0, 4], sizes = [2, 4], strides = [1, 1]} : vector<2x32xf32> to vector<2x4xf32>
    %580 = vector.extract_strided_slice %579 {offsets = [0, 0], sizes = [2, 1], strides = [1, 1]} : vector<2x4xf32> to vector<2x1xf32>
    %581 = vector.extract_strided_slice %17 {offsets = [0, 0], sizes = [1, 128], strides = [1, 1]} : vector<4x128xf32> to vector<1x128xf32>
    %582 = vector.broadcast %580 : vector<2x1xf32> to vector<2x128xf32>
    %583 = vector.broadcast %581 : vector<1x128xf32> to vector<2x128xf32>
    %584 = arith.mulf %582, %583 : vector<2x128xf32>
    %585 = vector.broadcast %18 : vector<1x128xf32> to vector<2x128xf32>
    %586 = arith.addf %585, %584 : vector<2x128xf32>
    %587 = vector.extract_strided_slice %579 {offsets = [0, 1], sizes = [2, 1], strides = [1, 1]} : vector<2x4xf32> to vector<2x1xf32>
    %588 = vector.extract_strided_slice %17 {offsets = [1, 0], sizes = [1, 128], strides = [1, 1]} : vector<4x128xf32> to vector<1x128xf32>
    %589 = vector.broadcast %587 : vector<2x1xf32> to vector<2x128xf32>
    %590 = vector.broadcast %588 : vector<1x128xf32> to vector<2x128xf32>
    %591 = arith.mulf %589, %590 : vector<2x128xf32>
    %592 = arith.addf %586, %591 : vector<2x128xf32>
    %593 = vector.extract_strided_slice %579 {offsets = [0, 2], sizes = [2, 1], strides = [1, 1]} : vector<2x4xf32> to vector<2x1xf32>
    %594 = vector.extract_strided_slice %17 {offsets = [2, 0], sizes = [1, 128], strides = [1, 1]} : vector<4x128xf32> to vector<1x128xf32>
    %595 = vector.broadcast %593 : vector<2x1xf32> to vector<2x128xf32>
    %596 = vector.broadcast %594 : vector<1x128xf32> to vector<2x128xf32>
    %597 = arith.mulf %595, %596 : vector<2x128xf32>
    %598 = arith.addf %592, %597 : vector<2x128xf32>
    %599 = vector.extract_strided_slice %579 {offsets = [0, 3], sizes = [2, 1], strides = [1, 1]} : vector<2x4xf32> to vector<2x1xf32>
    %600 = vector.extract_strided_slice %17 {offsets = [3, 0], sizes = [1, 128], strides = [1, 1]} : vector<4x128xf32> to vector<1x128xf32>
    %601 = vector.broadcast %599 : vector<2x1xf32> to vector<2x128xf32>
    %602 = vector.broadcast %600 : vector<1x128xf32> to vector<2x128xf32>
    %603 = arith.mulf %601, %602 : vector<2x128xf32>
    %604 = arith.addf %598, %603 : vector<2x128xf32>
    %cst_186 = arith.constant dense<0.000000e+00> : vector<2xf32>
    %605 = vector.multi_reduction <add>, %579, %cst_186 [1] : vector<2x4xf32> to vector<2xf32>
    %606 = vector.shape_cast %605 : vector<2xf32> to vector<2x1xf32>
    %cst_187 = arith.constant dense<0.000000e+00> : vector<1xf32>
    %607 = vector.multi_reduction <add>, %606, %cst_187 [0] : vector<2x1xf32> to vector<1xf32>
    %608 = vector.shape_cast %607 : vector<1xf32> to vector<1x1xf32>
    %cst_188 = arith.constant 9.99999974E-6 : f32
    %609 = vector.broadcast %cst_188 : f32 to vector<1x1xf32>
    %610 = arith.addf %608, %609 : vector<1x1xf32>
    %611 = tpu.reciprocal %610 {approx = true} : vector<1x1xf32> -> vector<1x1xf32>
    %612 = vector.broadcast %611 : vector<1x1xf32> to vector<2x4xf32>
    %613 = arith.mulf %579, %612 : vector<2x4xf32>
    %614 = vector.extract_strided_slice %4 {offsets = [0, 8], sizes = [2, 4], strides = [1, 1]} : vector<2x32xf32> to vector<2x4xf32>
    %615 = vector.extract_strided_slice %614 {offsets = [0, 0], sizes = [2, 1], strides = [1, 1]} : vector<2x4xf32> to vector<2x1xf32>
    %616 = vector.extract_strided_slice %17 {offsets = [0, 0], sizes = [1, 128], strides = [1, 1]} : vector<4x128xf32> to vector<1x128xf32>
    %617 = vector.broadcast %615 : vector<2x1xf32> to vector<2x128xf32>
    %618 = vector.broadcast %616 : vector<1x128xf32> to vector<2x128xf32>
    %619 = arith.mulf %617, %618 : vector<2x128xf32>
    %620 = vector.broadcast %18 : vector<1x128xf32> to vector<2x128xf32>
    %621 = arith.addf %620, %619 : vector<2x128xf32>
    %622 = vector.extract_strided_slice %614 {offsets = [0, 1], sizes = [2, 1], strides = [1, 1]} : vector<2x4xf32> to vector<2x1xf32>
    %623 = vector.extract_strided_slice %17 {offsets = [1, 0], sizes = [1, 128], strides = [1, 1]} : vector<4x128xf32> to vector<1x128xf32>
    %624 = vector.broadcast %622 : vector<2x1xf32> to vector<2x128xf32>
    %625 = vector.broadcast %623 : vector<1x128xf32> to vector<2x128xf32>
    %626 = arith.mulf %624, %625 : vector<2x128xf32>
    %627 = arith.addf %621, %626 : vector<2x128xf32>
    %628 = vector.extract_strided_slice %614 {offsets = [0, 2], sizes = [2, 1], strides = [1, 1]} : vector<2x4xf32> to vector<2x1xf32>
    %629 = vector.extract_strided_slice %17 {offsets = [2, 0], sizes = [1, 128], strides = [1, 1]} : vector<4x128xf32> to vector<1x128xf32>
    %630 = vector.broadcast %628 : vector<2x1xf32> to vector<2x128xf32>
    %631 = vector.broadcast %629 : vector<1x128xf32> to vector<2x128xf32>
    %632 = arith.mulf %630, %631 : vector<2x128xf32>
    %633 = arith.addf %627, %632 : vector<2x128xf32>
    %634 = vector.extract_strided_slice %614 {offsets = [0, 3], sizes = [2, 1], strides = [1, 1]} : vector<2x4xf32> to vector<2x1xf32>
    %635 = vector.extract_strided_slice %17 {offsets = [3, 0], sizes = [1, 128], strides = [1, 1]} : vector<4x128xf32> to vector<1x128xf32>
    %636 = vector.broadcast %634 : vector<2x1xf32> to vector<2x128xf32>
    %637 = vector.broadcast %635 : vector<1x128xf32> to vector<2x128xf32>
    %638 = arith.mulf %636, %637 : vector<2x128xf32>
    %639 = arith.addf %633, %638 : vector<2x128xf32>
    %cst_189 = arith.constant dense<0.000000e+00> : vector<2xf32>
    %640 = vector.multi_reduction <add>, %614, %cst_189 [1] : vector<2x4xf32> to vector<2xf32>
    %641 = vector.shape_cast %640 : vector<2xf32> to vector<2x1xf32>
    %cst_190 = arith.constant dense<0.000000e+00> : vector<1xf32>
    %642 = vector.multi_reduction <add>, %641, %cst_190 [0] : vector<2x1xf32> to vector<1xf32>
    %643 = vector.shape_cast %642 : vector<1xf32> to vector<1x1xf32>
    %cst_191 = arith.constant 9.99999974E-6 : f32
    %644 = vector.broadcast %cst_191 : f32 to vector<1x1xf32>
    %645 = arith.addf %643, %644 : vector<1x1xf32>
    %646 = tpu.reciprocal %645 {approx = true} : vector<1x1xf32> -> vector<1x1xf32>
    %647 = vector.broadcast %646 : vector<1x1xf32> to vector<2x4xf32>
    %648 = arith.mulf %614, %647 : vector<2x4xf32>
    %649 = vector.extract_strided_slice %4 {offsets = [0, 12], sizes = [2, 4], strides = [1, 1]} : vector<2x32xf32> to vector<2x4xf32>
    %650 = vector.extract_strided_slice %649 {offsets = [0, 0], sizes = [2, 1], strides = [1, 1]} : vector<2x4xf32> to vector<2x1xf32>
    %651 = vector.extract_strided_slice %17 {offsets = [0, 0], sizes = [1, 128], strides = [1, 1]} : vector<4x128xf32> to vector<1x128xf32>
    %652 = vector.broadcast %650 : vector<2x1xf32> to vector<2x128xf32>
    %653 = vector.broadcast %651 : vector<1x128xf32> to vector<2x128xf32>
    %654 = arith.mulf %652, %653 : vector<2x128xf32>
    %655 = vector.broadcast %18 : vector<1x128xf32> to vector<2x128xf32>
    %656 = arith.addf %655, %654 : vector<2x128xf32>
    %657 = vector.extract_strided_slice %649 {offsets = [0, 1], sizes = [2, 1], strides = [1, 1]} : vector<2x4xf32> to vector<2x1xf32>
    %658 = vector.extract_strided_slice %17 {offsets = [1, 0], sizes = [1, 128], strides = [1, 1]} : vector<4x128xf32> to vector<1x128xf32>
    %659 = vector.broadcast %657 : vector<2x1xf32> to vector<2x128xf32>
    %660 = vector.broadcast %658 : vector<1x128xf32> to vector<2x128xf32>
    %661 = arith.mulf %659, %660 : vector<2x128xf32>
    %662 = arith.addf %656, %661 : vector<2x128xf32>
    %663 = vector.extract_strided_slice %649 {offsets = [0, 2], sizes = [2, 1], strides = [1, 1]} : vector<2x4xf32> to vector<2x1xf32>
    %664 = vector.extract_strided_slice %17 {offsets = [2, 0], sizes = [1, 128], strides = [1, 1]} : vector<4x128xf32> to vector<1x128xf32>
    %665 = vector.broadcast %663 : vector<2x1xf32> to vector<2x128xf32>
    %666 = vector.broadcast %664 : vector<1x128xf32> to vector<2x128xf32>
    %667 = arith.mulf %665, %666 : vector<2x128xf32>
    %668 = arith.addf %662, %667 : vector<2x128xf32>
    %669 = vector.extract_strided_slice %649 {offsets = [0, 3], sizes = [2, 1], strides = [1, 1]} : vector<2x4xf32> to vector<2x1xf32>
    %670 = vector.extract_strided_slice %17 {offsets = [3, 0], sizes = [1, 128], strides = [1, 1]} : vector<4x128xf32> to vector<1x128xf32>
    %671 = vector.broadcast %669 : vector<2x1xf32> to vector<2x128xf32>
    %672 = vector.broadcast %670 : vector<1x128xf32> to vector<2x128xf32>
    %673 = arith.mulf %671, %672 : vector<2x128xf32>
    %674 = arith.addf %668, %673 : vector<2x128xf32>
    %cst_192 = arith.constant dense<0.000000e+00> : vector<2xf32>
    %675 = vector.multi_reduction <add>, %649, %cst_192 [1] : vector<2x4xf32> to vector<2xf32>
    %676 = vector.shape_cast %675 : vector<2xf32> to vector<2x1xf32>
    %cst_193 = arith.constant dense<0.000000e+00> : vector<1xf32>
    %677 = vector.multi_reduction <add>, %676, %cst_193 [0] : vector<2x1xf32> to vector<1xf32>
    %678 = vector.shape_cast %677 : vector<1xf32> to vector<1x1xf32>
    %cst_194 = arith.constant 9.99999974E-6 : f32
    %679 = vector.broadcast %cst_194 : f32 to vector<1x1xf32>
    %680 = arith.addf %678, %679 : vector<1x1xf32>
    %681 = tpu.reciprocal %680 {approx = true} : vector<1x1xf32> -> vector<1x1xf32>
    %682 = vector.broadcast %681 : vector<1x1xf32> to vector<2x4xf32>
    %683 = arith.mulf %649, %682 : vector<2x4xf32>
    %684 = vector.extract_strided_slice %4 {offsets = [0, 16], sizes = [2, 4], strides = [1, 1]} : vector<2x32xf32> to vector<2x4xf32>
    %685 = vector.extract_strided_slice %684 {offsets = [0, 0], sizes = [2, 1], strides = [1, 1]} : vector<2x4xf32> to vector<2x1xf32>
    %686 = vector.extract_strided_slice %17 {offsets = [0, 0], sizes = [1, 128], strides = [1, 1]} : vector<4x128xf32> to vector<1x128xf32>
    %687 = vector.broadcast %685 : vector<2x1xf32> to vector<2x128xf32>
    %688 = vector.broadcast %686 : vector<1x128xf32> to vector<2x128xf32>
    %689 = arith.mulf %687, %688 : vector<2x128xf32>
    %690 = vector.broadcast %18 : vector<1x128xf32> to vector<2x128xf32>
    %691 = arith.addf %690, %689 : vector<2x128xf32>
    %692 = vector.extract_strided_slice %684 {offsets = [0, 1], sizes = [2, 1], strides = [1, 1]} : vector<2x4xf32> to vector<2x1xf32>
    %693 = vector.extract_strided_slice %17 {offsets = [1, 0], sizes = [1, 128], strides = [1, 1]} : vector<4x128xf32> to vector<1x128xf32>
    %694 = vector.broadcast %692 : vector<2x1xf32> to vector<2x128xf32>
    %695 = vector.broadcast %693 : vector<1x128xf32> to vector<2x128xf32>
    %696 = arith.mulf %694, %695 : vector<2x128xf32>
    %697 = arith.addf %691, %696 : vector<2x128xf32>
    %698 = vector.extract_strided_slice %684 {offsets = [0, 2], sizes = [2, 1], strides = [1, 1]} : vector<2x4xf32> to vector<2x1xf32>
    %699 = vector.extract_strided_slice %17 {offsets = [2, 0], sizes = [1, 128], strides = [1, 1]} : vector<4x128xf32> to vector<1x128xf32>
    %700 = vector.broadcast %698 : vector<2x1xf32> to vector<2x128xf32>
    %701 = vector.broadcast %699 : vector<1x128xf32> to vector<2x128xf32>
    %702 = arith.mulf %700, %701 : vector<2x128xf32>
    %703 = arith.addf %697, %702 : vector<2x128xf32>
    %704 = vector.extract_strided_slice %684 {offsets = [0, 3], sizes = [2, 1], strides = [1, 1]} : vector<2x4xf32> to vector<2x1xf32>
    %705 = vector.extract_strided_slice %17 {offsets = [3, 0], sizes = [1, 128], strides = [1, 1]} : vector<4x128xf32> to vector<1x128xf32>
    %706 = vector.broadcast %704 : vector<2x1xf32> to vector<2x128xf32>
    %707 = vector.broadcast %705 : vector<1x128xf32> to vector<2x128xf32>
    %708 = arith.mulf %706, %707 : vector<2x128xf32>
    %709 = arith.addf %703, %708 : vector<2x128xf32>
    %cst_195 = arith.constant dense<0.000000e+00> : vector<2xf32>
    %710 = vector.multi_reduction <add>, %684, %cst_195 [1] : vector<2x4xf32> to vector<2xf32>
    %711 = vector.shape_cast %710 : vector<2xf32> to vector<2x1xf32>
    %cst_196 = arith.constant dense<0.000000e+00> : vector<1xf32>
    %712 = vector.multi_reduction <add>, %711, %cst_196 [0] : vector<2x1xf32> to vector<1xf32>
    %713 = vector.shape_cast %712 : vector<1xf32> to vector<1x1xf32>
    %cst_197 = arith.constant 9.99999974E-6 : f32
    %714 = vector.broadcast %cst_197 : f32 to vector<1x1xf32>
    %715 = arith.addf %713, %714 : vector<1x1xf32>
    %716 = tpu.reciprocal %715 {approx = true} : vector<1x1xf32> -> vector<1x1xf32>
    %717 = vector.broadcast %716 : vector<1x1xf32> to vector<2x4xf32>
    %718 = arith.mulf %684, %717 : vector<2x4xf32>
    %719 = vector.extract_strided_slice %4 {offsets = [0, 20], sizes = [2, 4], strides = [1, 1]} : vector<2x32xf32> to vector<2x4xf32>
    %720 = vector.extract_strided_slice %719 {offsets = [0, 0], sizes = [2, 1], strides = [1, 1]} : vector<2x4xf32> to vector<2x1xf32>
    %721 = vector.extract_strided_slice %17 {offsets = [0, 0], sizes = [1, 128], strides = [1, 1]} : vector<4x128xf32> to vector<1x128xf32>
    %722 = vector.broadcast %720 : vector<2x1xf32> to vector<2x128xf32>
    %723 = vector.broadcast %721 : vector<1x128xf32> to vector<2x128xf32>
    %724 = arith.mulf %722, %723 : vector<2x128xf32>
    %725 = vector.broadcast %18 : vector<1x128xf32> to vector<2x128xf32>
    %726 = arith.addf %725, %724 : vector<2x128xf32>
    %727 = vector.extract_strided_slice %719 {offsets = [0, 1], sizes = [2, 1], strides = [1, 1]} : vector<2x4xf32> to vector<2x1xf32>
    %728 = vector.extract_strided_slice %17 {offsets = [1, 0], sizes = [1, 128], strides = [1, 1]} : vector<4x128xf32> to vector<1x128xf32>
    %729 = vector.broadcast %727 : vector<2x1xf32> to vector<2x128xf32>
    %730 = vector.broadcast %728 : vector<1x128xf32> to vector<2x128xf32>
    %731 = arith.mulf %729, %730 : vector<2x128xf32>
    %732 = arith.addf %726, %731 : vector<2x128xf32>
    %733 = vector.extract_strided_slice %719 {offsets = [0, 2], sizes = [2, 1], strides = [1, 1]} : vector<2x4xf32> to vector<2x1xf32>
    %734 = vector.extract_strided_slice %17 {offsets = [2, 0], sizes = [1, 128], strides = [1, 1]} : vector<4x128xf32> to vector<1x128xf32>
    %735 = vector.broadcast %733 : vector<2x1xf32> to vector<2x128xf32>
    %736 = vector.broadcast %734 : vector<1x128xf32> to vector<2x128xf32>
    %737 = arith.mulf %735, %736 : vector<2x128xf32>
    %738 = arith.addf %732, %737 : vector<2x128xf32>
    %739 = vector.extract_strided_slice %719 {offsets = [0, 3], sizes = [2, 1], strides = [1, 1]} : vector<2x4xf32> to vector<2x1xf32>
    %740 = vector.extract_strided_slice %17 {offsets = [3, 0], sizes = [1, 128], strides = [1, 1]} : vector<4x128xf32> to vector<1x128xf32>
    %741 = vector.broadcast %739 : vector<2x1xf32> to vector<2x128xf32>
    %742 = vector.broadcast %740 : vector<1x128xf32> to vector<2x128xf32>
    %743 = arith.mulf %741, %742 : vector<2x128xf32>
    %744 = arith.addf %738, %743 : vector<2x128xf32>
    %cst_198 = arith.constant dense<0.000000e+00> : vector<2xf32>
    %745 = vector.multi_reduction <add>, %719, %cst_198 [1] : vector<2x4xf32> to vector<2xf32>
    %746 = vector.shape_cast %745 : vector<2xf32> to vector<2x1xf32>
    %cst_199 = arith.constant dense<0.000000e+00> : vector<1xf32>
    %747 = vector.multi_reduction <add>, %746, %cst_199 [0] : vector<2x1xf32> to vector<1xf32>
    %748 = vector.shape_cast %747 : vector<1xf32> to vector<1x1xf32>
    %cst_200 = arith.constant 9.99999974E-6 : f32
    %749 = vector.broadcast %cst_200 : f32 to vector<1x1xf32>
    %750 = arith.addf %748, %749 : vector<1x1xf32>
    %751 = tpu.reciprocal %750 {approx = true} : vector<1x1xf32> -> vector<1x1xf32>
    %752 = vector.broadcast %751 : vector<1x1xf32> to vector<2x4xf32>
    %753 = arith.mulf %719, %752 : vector<2x4xf32>
    %754 = vector.extract_strided_slice %4 {offsets = [0, 24], sizes = [2, 4], strides = [1, 1]} : vector<2x32xf32> to vector<2x4xf32>
    %755 = vector.extract_strided_slice %754 {offsets = [0, 0], sizes = [2, 1], strides = [1, 1]} : vector<2x4xf32> to vector<2x1xf32>
    %756 = vector.extract_strided_slice %17 {offsets = [0, 0], sizes = [1, 128], strides = [1, 1]} : vector<4x128xf32> to vector<1x128xf32>
    %757 = vector.broadcast %755 : vector<2x1xf32> to vector<2x128xf32>
    %758 = vector.broadcast %756 : vector<1x128xf32> to vector<2x128xf32>
    %759 = arith.mulf %757, %758 : vector<2x128xf32>
    %760 = vector.broadcast %18 : vector<1x128xf32> to vector<2x128xf32>
    %761 = arith.addf %760, %759 : vector<2x128xf32>
    %762 = vector.extract_strided_slice %754 {offsets = [0, 1], sizes = [2, 1], strides = [1, 1]} : vector<2x4xf32> to vector<2x1xf32>
    %763 = vector.extract_strided_slice %17 {offsets = [1, 0], sizes = [1, 128], strides = [1, 1]} : vector<4x128xf32> to vector<1x128xf32>
    %764 = vector.broadcast %762 : vector<2x1xf32> to vector<2x128xf32>
    %765 = vector.broadcast %763 : vector<1x128xf32> to vector<2x128xf32>
    %766 = arith.mulf %764, %765 : vector<2x128xf32>
    %767 = arith.addf %761, %766 : vector<2x128xf32>
    %768 = vector.extract_strided_slice %754 {offsets = [0, 2], sizes = [2, 1], strides = [1, 1]} : vector<2x4xf32> to vector<2x1xf32>
    %769 = vector.extract_strided_slice %17 {offsets = [2, 0], sizes = [1, 128], strides = [1, 1]} : vector<4x128xf32> to vector<1x128xf32>
    %770 = vector.broadcast %768 : vector<2x1xf32> to vector<2x128xf32>
    %771 = vector.broadcast %769 : vector<1x128xf32> to vector<2x128xf32>
    %772 = arith.mulf %770, %771 : vector<2x128xf32>
    %773 = arith.addf %767, %772 : vector<2x128xf32>
    %774 = vector.extract_strided_slice %754 {offsets = [0, 3], sizes = [2, 1], strides = [1, 1]} : vector<2x4xf32> to vector<2x1xf32>
    %775 = vector.extract_strided_slice %17 {offsets = [3, 0], sizes = [1, 128], strides = [1, 1]} : vector<4x128xf32> to vector<1x128xf32>
    %776 = vector.broadcast %774 : vector<2x1xf32> to vector<2x128xf32>
    %777 = vector.broadcast %775 : vector<1x128xf32> to vector<2x128xf32>
    %778 = arith.mulf %776, %777 : vector<2x128xf32>
    %779 = arith.addf %773, %778 : vector<2x128xf32>
    %cst_201 = arith.constant dense<0.000000e+00> : vector<2xf32>
    %780 = vector.multi_reduction <add>, %754, %cst_201 [1] : vector<2x4xf32> to vector<2xf32>
    %781 = vector.shape_cast %780 : vector<2xf32> to vector<2x1xf32>
    %cst_202 = arith.constant dense<0.000000e+00> : vector<1xf32>
    %782 = vector.multi_reduction <add>, %781, %cst_202 [0] : vector<2x1xf32> to vector<1xf32>
    %783 = vector.shape_cast %782 : vector<1xf32> to vector<1x1xf32>
    %cst_203 = arith.constant 9.99999974E-6 : f32
    %784 = vector.broadcast %cst_203 : f32 to vector<1x1xf32>
    %785 = arith.addf %783, %784 : vector<1x1xf32>
    %786 = tpu.reciprocal %785 {approx = true} : vector<1x1xf32> -> vector<1x1xf32>
    %787 = vector.broadcast %786 : vector<1x1xf32> to vector<2x4xf32>
    %788 = arith.mulf %754, %787 : vector<2x4xf32>
    %789 = vector.extract_strided_slice %4 {offsets = [0, 28], sizes = [2, 4], strides = [1, 1]} : vector<2x32xf32> to vector<2x4xf32>
    %cst_204 = arith.constant dense<0.000000e+00> : vector<2xf32>
    %790 = vector.multi_reduction <add>, %789, %cst_204 [1] : vector<2x4xf32> to vector<2xf32>
    %791 = vector.shape_cast %790 : vector<2xf32> to vector<2x1xf32>
    %cst_205 = arith.constant dense<0.000000e+00> : vector<1xf32>
    %792 = vector.multi_reduction <add>, %791, %cst_205 [0] : vector<2x1xf32> to vector<1xf32>
    %793 = vector.shape_cast %792 : vector<1xf32> to vector<1x1xf32>
    %cst_206 = arith.constant 9.99999974E-6 : f32
    %794 = vector.broadcast %cst_206 : f32 to vector<1x1xf32>
    %795 = arith.addf %793, %794 : vector<1x1xf32>
    %796 = tpu.reciprocal %795 {approx = true} : vector<1x1xf32> -> vector<1x1xf32>
    %797 = vector.broadcast %796 : vector<1x1xf32> to vector<2x4xf32>
    %798 = arith.mulf %789, %797 : vector<2x4xf32>
    %cst_207 = arith.constant 0.000000e+00 : f32
    %799 = vector.broadcast %cst_207 : f32 to vector<2x32xf32>
    %cst_208 = arith.constant 0.000000e+00 : f32
    %800 = vector.broadcast %cst_208 : f32 to vector<2x32xf32>
    %cst_209 = arith.constant 0.000000e+00 : f32
    %801 = vector.broadcast %cst_209 : f32 to vector<2x4xf32>
    %802 = vector.extract_strided_slice %6 {offsets = [0, 0], sizes = [2, 4], strides = [1, 1]} : vector<2x32xf32> to vector<2x4xf32>
    %803 = vector.extract_strided_slice %7 {offsets = [0, 0], sizes = [2, 4], strides = [1, 1]} : vector<2x32xf32> to vector<2x4xf32>
    %804 = vector.extract_strided_slice %9 {offsets = [0, 0], sizes = [2, 4], strides = [1, 1]} : vector<2x32xf32> to vector<2x4xf32>
    %805 = arith.truncf %799 : vector<2x32xf32> to vector<2x32xbf16>
    %cst_210 = arith.constant dense<0.000000e+00> : vector<2x132xf32>
    %806 = tpu.matmul %805, %12, %cst_210 {dimension_numbers = #tpu.dot_dimension_numbers<[1], [0], [0], [1], [0, 0, 1, 1], [], []>} : vector<2x32xbf16>, vector<32x132xbf16>, vector<2x132xf32> -> vector<2x132xf32>
    %807 = vector.extract_strided_slice %806 {offsets = [0, 0], sizes = [2, 128], strides = [1, 1]} : vector<2x132xf32> to vector<2x128xf32>
    %808 = vector.extract_strided_slice %806 {offsets = [0, 128], sizes = [2, 4], strides = [1, 1]} : vector<2x132xf32> to vector<2x4xf32>
    %809 = vector.broadcast %13 : vector<1x4xf32> to vector<2x4xf32>
    %810 = arith.addf %808, %809 : vector<2x4xf32>
    %811 = arith.negf %810 : vector<2x4xf32>
    %812 = math.exp %811 : vector<2x4xf32>
    %cst_211 = arith.constant 1.000000e+00 : f32
    %813 = vector.broadcast %cst_211 : f32 to vector<2x4xf32>
    %814 = arith.addf %813, %812 : vector<2x4xf32>
    %815 = arith.divf %813, %814 : vector<2x4xf32>
    %816 = arith.mulf %804, %815 : vector<2x4xf32>
    %817 = arith.addf %803, %816 : vector<2x4xf32>
    %818 = vector.extract_strided_slice %817 {offsets = [0, 0], sizes = [2, 1], strides = [1, 1]} : vector<2x4xf32> to vector<2x1xf32>
    %819 = vector.extract_strided_slice %14 {offsets = [0, 0], sizes = [1, 4], strides = [1, 1]} : vector<4x4xf32> to vector<1x4xf32>
    %820 = vector.broadcast %818 : vector<2x1xf32> to vector<2x4xf32>
    %821 = vector.broadcast %819 : vector<1x4xf32> to vector<2x4xf32>
    %822 = arith.mulf %820, %821 : vector<2x4xf32>
    %823 = vector.broadcast %15 : vector<1x4xf32> to vector<2x4xf32>
    %824 = arith.addf %823, %822 : vector<2x4xf32>
    %825 = vector.extract_strided_slice %817 {offsets = [0, 1], sizes = [2, 1], strides = [1, 1]} : vector<2x4xf32> to vector<2x1xf32>
    %826 = vector.extract_strided_slice %14 {offsets = [1, 0], sizes = [1, 4], strides = [1, 1]} : vector<4x4xf32> to vector<1x4xf32>
    %827 = vector.broadcast %825 : vector<2x1xf32> to vector<2x4xf32>
    %828 = vector.broadcast %826 : vector<1x4xf32> to vector<2x4xf32>
    %829 = arith.mulf %827, %828 : vector<2x4xf32>
    %830 = arith.addf %824, %829 : vector<2x4xf32>
    %831 = vector.extract_strided_slice %817 {offsets = [0, 2], sizes = [2, 1], strides = [1, 1]} : vector<2x4xf32> to vector<2x1xf32>
    %832 = vector.extract_strided_slice %14 {offsets = [2, 0], sizes = [1, 4], strides = [1, 1]} : vector<4x4xf32> to vector<1x4xf32>
    %833 = vector.broadcast %831 : vector<2x1xf32> to vector<2x4xf32>
    %834 = vector.broadcast %832 : vector<1x4xf32> to vector<2x4xf32>
    %835 = arith.mulf %833, %834 : vector<2x4xf32>
    %836 = arith.addf %830, %835 : vector<2x4xf32>
    %837 = vector.extract_strided_slice %817 {offsets = [0, 3], sizes = [2, 1], strides = [1, 1]} : vector<2x4xf32> to vector<2x1xf32>
    %838 = vector.extract_strided_slice %14 {offsets = [3, 0], sizes = [1, 4], strides = [1, 1]} : vector<4x4xf32> to vector<1x4xf32>
    %839 = vector.broadcast %837 : vector<2x1xf32> to vector<2x4xf32>
    %840 = vector.broadcast %838 : vector<1x4xf32> to vector<2x4xf32>
    %841 = arith.mulf %839, %840 : vector<2x4xf32>
    %842 = arith.addf %836, %841 : vector<2x4xf32>
    %843 = arith.negf %842 : vector<2x4xf32>
    %844 = math.exp %843 : vector<2x4xf32>
    %cst_212 = arith.constant 1.000000e+00 : f32
    %845 = vector.broadcast %cst_212 : f32 to vector<2x4xf32>
    %846 = arith.addf %845, %844 : vector<2x4xf32>
    %847 = arith.divf %845, %846 : vector<2x4xf32>
    %848 = arith.subf %802, %815 : vector<2x4xf32>
    %849 = math.absf %848 : vector<2x4xf32>
    %850 = arith.subf %802, %847 : vector<2x4xf32>
    %851 = math.absf %850 : vector<2x4xf32>
    %852 = arith.addf %849, %851 : vector<2x4xf32>
    %853 = arith.mulf %852, %578 : vector<2x4xf32>
    %854 = arith.addf %801, %853 : vector<2x4xf32>
    %cst_213 = arith.constant 5.000000e-01 : f32
    %855 = vector.broadcast %cst_213 : f32 to vector<2x4xf32>
    %856 = arith.mulf %855, %847 : vector<2x4xf32>
    %cst_214 = arith.constant 5.000000e-01 : f32
    %857 = vector.broadcast %cst_214 : f32 to vector<2x4xf32>
    %858 = arith.mulf %857, %815 : vector<2x4xf32>
    %859 = arith.addf %856, %858 : vector<2x4xf32>
    %860 = math.absf %859 : vector<2x4xf32>
    %861 = arith.mulf %804, %860 : vector<2x4xf32>
    %862 = arith.addf %803, %861 : vector<2x4xf32>
    %c0_215 = arith.constant 0 : index
    %c0_216 = arith.constant 0 : index
    %863 = vector.load %arg10[%c0_215, %c0_216] : memref<2x32xf32, #tpu.memory_space<vmem>>, vector<2x4xf32>
    tpu.vector_store %arg10[%c0_215, %c0_216], %862 {strides = array<i32>} : memref<2x32xf32, #tpu.memory_space<vmem>>, vector<2x4xf32>,
    %864 = arith.addf %807, %569 : vector<2x128xf32>
    %865 = vector.extract_strided_slice %862 {offsets = [0, 0], sizes = [2, 1], strides = [1, 1]} : vector<2x4xf32> to vector<2x1xf32>
    %866 = vector.extract_strided_slice %16 {offsets = [0, 0], sizes = [1, 128], strides = [1, 1]} : vector<4x128xf32> to vector<1x128xf32>
    %867 = vector.broadcast %865 : vector<2x1xf32> to vector<2x128xf32>
    %868 = vector.broadcast %866 : vector<1x128xf32> to vector<2x128xf32>
    %869 = arith.mulf %867, %868 : vector<2x128xf32>
    %870 = arith.addf %864, %869 : vector<2x128xf32>
    %871 = vector.extract_strided_slice %862 {offsets = [0, 1], sizes = [2, 1], strides = [1, 1]} : vector<2x4xf32> to vector<2x1xf32>
    %872 = vector.extract_strided_slice %16 {offsets = [1, 0], sizes = [1, 128], strides = [1, 1]} : vector<4x128xf32> to vector<1x128xf32>
    %873 = vector.broadcast %871 : vector<2x1xf32> to vector<2x128xf32>
    %874 = vector.broadcast %872 : vector<1x128xf32> to vector<2x128xf32>
    %875 = arith.mulf %873, %874 : vector<2x128xf32>
    %876 = arith.addf %870, %875 : vector<2x128xf32>
    %877 = vector.extract_strided_slice %862 {offsets = [0, 2], sizes = [2, 1], strides = [1, 1]} : vector<2x4xf32> to vector<2x1xf32>
    %878 = vector.extract_strided_slice %16 {offsets = [2, 0], sizes = [1, 128], strides = [1, 1]} : vector<4x128xf32> to vector<1x128xf32>
    %879 = vector.broadcast %877 : vector<2x1xf32> to vector<2x128xf32>
    %880 = vector.broadcast %878 : vector<1x128xf32> to vector<2x128xf32>
    %881 = arith.mulf %879, %880 : vector<2x128xf32>
    %882 = arith.addf %876, %881 : vector<2x128xf32>
    %883 = vector.extract_strided_slice %862 {offsets = [0, 3], sizes = [2, 1], strides = [1, 1]} : vector<2x4xf32> to vector<2x1xf32>
    %884 = vector.extract_strided_slice %16 {offsets = [3, 0], sizes = [1, 128], strides = [1, 1]} : vector<4x128xf32> to vector<1x128xf32>
    %885 = vector.broadcast %883 : vector<2x1xf32> to vector<2x128xf32>
    %886 = vector.broadcast %884 : vector<1x128xf32> to vector<2x128xf32>
    %887 = arith.mulf %885, %886 : vector<2x128xf32>
    %888 = arith.addf %882, %887 : vector<2x128xf32>
    %889 = arith.negf %888 : vector<2x128xf32>
    %890 = math.exp %889 : vector<2x128xf32>
    %cst_217 = arith.constant 1.000000e+00 : f32
    %891 = vector.broadcast %cst_217 : f32 to vector<2x128xf32>
    %892 = arith.addf %891, %890 : vector<2x128xf32>
    %893 = arith.divf %891, %892 : vector<2x128xf32>
    %894 = vector.extract_strided_slice %893 {offsets = [0, 0], sizes = [2, 32], strides = [1, 1]} : vector<2x128xf32> to vector<2x32xf32>
    %895 = vector.extract_strided_slice %893 {offsets = [0, 32], sizes = [2, 32], strides = [1, 1]} : vector<2x128xf32> to vector<2x32xf32>
    %896 = vector.extract_strided_slice %893 {offsets = [0, 96], sizes = [2, 32], strides = [1, 1]} : vector<2x128xf32> to vector<2x32xf32>
    %897 = vector.extract_strided_slice %888 {offsets = [0, 64], sizes = [2, 32], strides = [1, 1]} : vector<2x128xf32> to vector<2x32xf32>
    %898 = math.tanh %897 : vector<2x32xf32>
    %899 = arith.mulf %895, %800 : vector<2x32xf32>
    %900 = arith.mulf %894, %898 : vector<2x32xf32>
    %901 = arith.addf %899, %900 : vector<2x32xf32>
    %902 = math.tanh %901 : vector<2x32xf32>
    %903 = arith.mulf %896, %902 : vector<2x32xf32>
    %904 = vector.extract_strided_slice %6 {offsets = [0, 4], sizes = [2, 4], strides = [1, 1]} : vector<2x32xf32> to vector<2x4xf32>
    %905 = vector.extract_strided_slice %7 {offsets = [0, 4], sizes = [2, 4], strides = [1, 1]} : vector<2x32xf32> to vector<2x4xf32>
    %906 = vector.extract_strided_slice %9 {offsets = [0, 4], sizes = [2, 4], strides = [1, 1]} : vector<2x32xf32> to vector<2x4xf32>
    %907 = arith.mulf %903, %93 : vector<2x32xf32>
    %908 = arith.truncf %907 : vector<2x32xf32> to vector<2x32xbf16>
    %cst_218 = arith.constant dense<0.000000e+00> : vector<2x132xf32>
    %909 = tpu.matmul %908, %12, %cst_218 {dimension_numbers = #tpu.dot_dimension_numbers<[1], [0], [0], [1], [0, 0, 1, 1], [], []>} : vector<2x32xbf16>, vector<32x132xbf16>, vector<2x132xf32> -> vector<2x132xf32>
    %910 = vector.extract_strided_slice %909 {offsets = [0, 0], sizes = [2, 128], strides = [1, 1]} : vector<2x132xf32> to vector<2x128xf32>
    %911 = vector.extract_strided_slice %909 {offsets = [0, 128], sizes = [2, 4], strides = [1, 1]} : vector<2x132xf32> to vector<2x4xf32>
    %912 = vector.broadcast %13 : vector<1x4xf32> to vector<2x4xf32>
    %913 = arith.addf %911, %912 : vector<2x4xf32>
    %914 = arith.negf %913 : vector<2x4xf32>
    %915 = math.exp %914 : vector<2x4xf32>
    %cst_219 = arith.constant 1.000000e+00 : f32
    %916 = vector.broadcast %cst_219 : f32 to vector<2x4xf32>
    %917 = arith.addf %916, %915 : vector<2x4xf32>
    %918 = arith.divf %916, %917 : vector<2x4xf32>
    %919 = arith.mulf %906, %918 : vector<2x4xf32>
    %920 = arith.addf %905, %919 : vector<2x4xf32>
    %921 = vector.extract_strided_slice %920 {offsets = [0, 0], sizes = [2, 1], strides = [1, 1]} : vector<2x4xf32> to vector<2x1xf32>
    %922 = vector.extract_strided_slice %14 {offsets = [0, 0], sizes = [1, 4], strides = [1, 1]} : vector<4x4xf32> to vector<1x4xf32>
    %923 = vector.broadcast %921 : vector<2x1xf32> to vector<2x4xf32>
    %924 = vector.broadcast %922 : vector<1x4xf32> to vector<2x4xf32>
    %925 = arith.mulf %923, %924 : vector<2x4xf32>
    %926 = vector.broadcast %15 : vector<1x4xf32> to vector<2x4xf32>
    %927 = arith.addf %926, %925 : vector<2x4xf32>
    %928 = vector.extract_strided_slice %920 {offsets = [0, 1], sizes = [2, 1], strides = [1, 1]} : vector<2x4xf32> to vector<2x1xf32>
    %929 = vector.extract_strided_slice %14 {offsets = [1, 0], sizes = [1, 4], strides = [1, 1]} : vector<4x4xf32> to vector<1x4xf32>
    %930 = vector.broadcast %928 : vector<2x1xf32> to vector<2x4xf32>
    %931 = vector.broadcast %929 : vector<1x4xf32> to vector<2x4xf32>
    %932 = arith.mulf %930, %931 : vector<2x4xf32>
    %933 = arith.addf %927, %932 : vector<2x4xf32>
    %934 = vector.extract_strided_slice %920 {offsets = [0, 2], sizes = [2, 1], strides = [1, 1]} : vector<2x4xf32> to vector<2x1xf32>
    %935 = vector.extract_strided_slice %14 {offsets = [2, 0], sizes = [1, 4], strides = [1, 1]} : vector<4x4xf32> to vector<1x4xf32>
    %936 = vector.broadcast %934 : vector<2x1xf32> to vector<2x4xf32>
    %937 = vector.broadcast %935 : vector<1x4xf32> to vector<2x4xf32>
    %938 = arith.mulf %936, %937 : vector<2x4xf32>
    %939 = arith.addf %933, %938 : vector<2x4xf32>
    %940 = vector.extract_strided_slice %920 {offsets = [0, 3], sizes = [2, 1], strides = [1, 1]} : vector<2x4xf32> to vector<2x1xf32>
    %941 = vector.extract_strided_slice %14 {offsets = [3, 0], sizes = [1, 4], strides = [1, 1]} : vector<4x4xf32> to vector<1x4xf32>
    %942 = vector.broadcast %940 : vector<2x1xf32> to vector<2x4xf32>
    %943 = vector.broadcast %941 : vector<1x4xf32> to vector<2x4xf32>
    %944 = arith.mulf %942, %943 : vector<2x4xf32>
    %945 = arith.addf %939, %944 : vector<2x4xf32>
    %946 = arith.negf %945 : vector<2x4xf32>
    %947 = math.exp %946 : vector<2x4xf32>
    %cst_220 = arith.constant 1.000000e+00 : f32
    %948 = vector.broadcast %cst_220 : f32 to vector<2x4xf32>
    %949 = arith.addf %948, %947 : vector<2x4xf32>
    %950 = arith.divf %948, %949 : vector<2x4xf32>
    %951 = arith.subf %904, %918 : vector<2x4xf32>
    %952 = math.absf %951 : vector<2x4xf32>
    %953 = arith.subf %904, %950 : vector<2x4xf32>
    %954 = math.absf %953 : vector<2x4xf32>
    %955 = arith.addf %952, %954 : vector<2x4xf32>
    %956 = arith.mulf %955, %613 : vector<2x4xf32>
    %957 = arith.addf %854, %956 : vector<2x4xf32>
    %cst_221 = arith.constant 5.000000e-01 : f32
    %958 = vector.broadcast %cst_221 : f32 to vector<2x4xf32>
    %959 = arith.mulf %958, %950 : vector<2x4xf32>
    %cst_222 = arith.constant 5.000000e-01 : f32
    %960 = vector.broadcast %cst_222 : f32 to vector<2x4xf32>
    %961 = arith.mulf %960, %918 : vector<2x4xf32>
    %962 = arith.addf %959, %961 : vector<2x4xf32>
    %963 = math.absf %962 : vector<2x4xf32>
    %964 = arith.mulf %906, %963 : vector<2x4xf32>
    %965 = arith.addf %905, %964 : vector<2x4xf32>
    %c0_223 = arith.constant 0 : index
    %c4 = arith.constant 4 : index
    %966 = vector.load %arg10[%c0_223, %c4] : memref<2x32xf32, #tpu.memory_space<vmem>>, vector<2x4xf32>
    tpu.vector_store %arg10[%c0_223, %c4], %965 {strides = array<i32>} : memref<2x32xf32, #tpu.memory_space<vmem>>, vector<2x4xf32>,
    %967 = arith.addf %910, %604 : vector<2x128xf32>
    %968 = vector.extract_strided_slice %965 {offsets = [0, 0], sizes = [2, 1], strides = [1, 1]} : vector<2x4xf32> to vector<2x1xf32>
    %969 = vector.extract_strided_slice %16 {offsets = [0, 0], sizes = [1, 128], strides = [1, 1]} : vector<4x128xf32> to vector<1x128xf32>
    %970 = vector.broadcast %968 : vector<2x1xf32> to vector<2x128xf32>
    %971 = vector.broadcast %969 : vector<1x128xf32> to vector<2x128xf32>
    %972 = arith.mulf %970, %971 : vector<2x128xf32>
    %973 = arith.addf %967, %972 : vector<2x128xf32>
    %974 = vector.extract_strided_slice %965 {offsets = [0, 1], sizes = [2, 1], strides = [1, 1]} : vector<2x4xf32> to vector<2x1xf32>
    %975 = vector.extract_strided_slice %16 {offsets = [1, 0], sizes = [1, 128], strides = [1, 1]} : vector<4x128xf32> to vector<1x128xf32>
    %976 = vector.broadcast %974 : vector<2x1xf32> to vector<2x128xf32>
    %977 = vector.broadcast %975 : vector<1x128xf32> to vector<2x128xf32>
    %978 = arith.mulf %976, %977 : vector<2x128xf32>
    %979 = arith.addf %973, %978 : vector<2x128xf32>
    %980 = vector.extract_strided_slice %965 {offsets = [0, 2], sizes = [2, 1], strides = [1, 1]} : vector<2x4xf32> to vector<2x1xf32>
    %981 = vector.extract_strided_slice %16 {offsets = [2, 0], sizes = [1, 128], strides = [1, 1]} : vector<4x128xf32> to vector<1x128xf32>
    %982 = vector.broadcast %980 : vector<2x1xf32> to vector<2x128xf32>
    %983 = vector.broadcast %981 : vector<1x128xf32> to vector<2x128xf32>
    %984 = arith.mulf %982, %983 : vector<2x128xf32>
    %985 = arith.addf %979, %984 : vector<2x128xf32>
    %986 = vector.extract_strided_slice %965 {offsets = [0, 3], sizes = [2, 1], strides = [1, 1]} : vector<2x4xf32> to vector<2x1xf32>
    %987 = vector.extract_strided_slice %16 {offsets = [3, 0], sizes = [1, 128], strides = [1, 1]} : vector<4x128xf32> to vector<1x128xf32>
    %988 = vector.broadcast %986 : vector<2x1xf32> to vector<2x128xf32>
    %989 = vector.broadcast %987 : vector<1x128xf32> to vector<2x128xf32>
    %990 = arith.mulf %988, %989 : vector<2x128xf32>
    %991 = arith.addf %985, %990 : vector<2x128xf32>
    %992 = arith.negf %991 : vector<2x128xf32>
    %993 = math.exp %992 : vector<2x128xf32>
    %cst_224 = arith.constant 1.000000e+00 : f32
    %994 = vector.broadcast %cst_224 : f32 to vector<2x128xf32>
    %995 = arith.addf %994, %993 : vector<2x128xf32>
    %996 = arith.divf %994, %995 : vector<2x128xf32>
    %997 = vector.extract_strided_slice %996 {offsets = [0, 0], sizes = [2, 32], strides = [1, 1]} : vector<2x128xf32> to vector<2x32xf32>
    %998 = vector.extract_strided_slice %996 {offsets = [0, 32], sizes = [2, 32], strides = [1, 1]} : vector<2x128xf32> to vector<2x32xf32>
    %999 = vector.extract_strided_slice %996 {offsets = [0, 96], sizes = [2, 32], strides = [1, 1]} : vector<2x128xf32> to vector<2x32xf32>
    %1000 = vector.extract_strided_slice %991 {offsets = [0, 64], sizes = [2, 32], strides = [1, 1]} : vector<2x128xf32> to vector<2x32xf32>
    %1001 = math.tanh %1000 : vector<2x32xf32>
    %1002 = arith.mulf %998, %901 : vector<2x32xf32>
    %1003 = arith.mulf %997, %1001 : vector<2x32xf32>
    %1004 = arith.addf %1002, %1003 : vector<2x32xf32>
    %1005 = math.tanh %1004 : vector<2x32xf32>
    %1006 = arith.mulf %999, %1005 : vector<2x32xf32>
    %1007 = vector.extract_strided_slice %6 {offsets = [0, 8], sizes = [2, 4], strides = [1, 1]} : vector<2x32xf32> to vector<2x4xf32>
    %1008 = vector.extract_strided_slice %7 {offsets = [0, 8], sizes = [2, 4], strides = [1, 1]} : vector<2x32xf32> to vector<2x4xf32>
    %1009 = vector.extract_strided_slice %9 {offsets = [0, 8], sizes = [2, 4], strides = [1, 1]} : vector<2x32xf32> to vector<2x4xf32>
    %1010 = arith.mulf %1006, %168 : vector<2x32xf32>
    %1011 = arith.truncf %1010 : vector<2x32xf32> to vector<2x32xbf16>
    %cst_225 = arith.constant dense<0.000000e+00> : vector<2x132xf32>
    %1012 = tpu.matmul %1011, %12, %cst_225 {dimension_numbers = #tpu.dot_dimension_numbers<[1], [0], [0], [1], [0, 0, 1, 1], [], []>} : vector<2x32xbf16>, vector<32x132xbf16>, vector<2x132xf32> -> vector<2x132xf32>
    %1013 = vector.extract_strided_slice %1012 {offsets = [0, 0], sizes = [2, 128], strides = [1, 1]} : vector<2x132xf32> to vector<2x128xf32>
    %1014 = vector.extract_strided_slice %1012 {offsets = [0, 128], sizes = [2, 4], strides = [1, 1]} : vector<2x132xf32> to vector<2x4xf32>
    %1015 = vector.broadcast %13 : vector<1x4xf32> to vector<2x4xf32>
    %1016 = arith.addf %1014, %1015 : vector<2x4xf32>
    %1017 = arith.negf %1016 : vector<2x4xf32>
    %1018 = math.exp %1017 : vector<2x4xf32>
    %cst_226 = arith.constant 1.000000e+00 : f32
    %1019 = vector.broadcast %cst_226 : f32 to vector<2x4xf32>
    %1020 = arith.addf %1019, %1018 : vector<2x4xf32>
    %1021 = arith.divf %1019, %1020 : vector<2x4xf32>
    %1022 = arith.mulf %1009, %1021 : vector<2x4xf32>
    %1023 = arith.addf %1008, %1022 : vector<2x4xf32>
    %1024 = vector.extract_strided_slice %1023 {offsets = [0, 0], sizes = [2, 1], strides = [1, 1]} : vector<2x4xf32> to vector<2x1xf32>
    %1025 = vector.extract_strided_slice %14 {offsets = [0, 0], sizes = [1, 4], strides = [1, 1]} : vector<4x4xf32> to vector<1x4xf32>
    %1026 = vector.broadcast %1024 : vector<2x1xf32> to vector<2x4xf32>
    %1027 = vector.broadcast %1025 : vector<1x4xf32> to vector<2x4xf32>
    %1028 = arith.mulf %1026, %1027 : vector<2x4xf32>
    %1029 = vector.broadcast %15 : vector<1x4xf32> to vector<2x4xf32>
    %1030 = arith.addf %1029, %1028 : vector<2x4xf32>
    %1031 = vector.extract_strided_slice %1023 {offsets = [0, 1], sizes = [2, 1], strides = [1, 1]} : vector<2x4xf32> to vector<2x1xf32>
    %1032 = vector.extract_strided_slice %14 {offsets = [1, 0], sizes = [1, 4], strides = [1, 1]} : vector<4x4xf32> to vector<1x4xf32>
    %1033 = vector.broadcast %1031 : vector<2x1xf32> to vector<2x4xf32>
    %1034 = vector.broadcast %1032 : vector<1x4xf32> to vector<2x4xf32>
    %1035 = arith.mulf %1033, %1034 : vector<2x4xf32>
    %1036 = arith.addf %1030, %1035 : vector<2x4xf32>
    %1037 = vector.extract_strided_slice %1023 {offsets = [0, 2], sizes = [2, 1], strides = [1, 1]} : vector<2x4xf32> to vector<2x1xf32>
    %1038 = vector.extract_strided_slice %14 {offsets = [2, 0], sizes = [1, 4], strides = [1, 1]} : vector<4x4xf32> to vector<1x4xf32>
    %1039 = vector.broadcast %1037 : vector<2x1xf32> to vector<2x4xf32>
    %1040 = vector.broadcast %1038 : vector<1x4xf32> to vector<2x4xf32>
    %1041 = arith.mulf %1039, %1040 : vector<2x4xf32>
    %1042 = arith.addf %1036, %1041 : vector<2x4xf32>
    %1043 = vector.extract_strided_slice %1023 {offsets = [0, 3], sizes = [2, 1], strides = [1, 1]} : vector<2x4xf32> to vector<2x1xf32>
    %1044 = vector.extract_strided_slice %14 {offsets = [3, 0], sizes = [1, 4], strides = [1, 1]} : vector<4x4xf32> to vector<1x4xf32>
    %1045 = vector.broadcast %1043 : vector<2x1xf32> to vector<2x4xf32>
    %1046 = vector.broadcast %1044 : vector<1x4xf32> to vector<2x4xf32>
    %1047 = arith.mulf %1045, %1046 : vector<2x4xf32>
    %1048 = arith.addf %1042, %1047 : vector<2x4xf32>
    %1049 = arith.negf %1048 : vector<2x4xf32>
    %1050 = math.exp %1049 : vector<2x4xf32>
    %cst_227 = arith.constant 1.000000e+00 : f32
    %1051 = vector.broadcast %cst_227 : f32 to vector<2x4xf32>
    %1052 = arith.addf %1051, %1050 : vector<2x4xf32>
    %1053 = arith.divf %1051, %1052 : vector<2x4xf32>
    %1054 = arith.subf %1007, %1021 : vector<2x4xf32>
    %1055 = math.absf %1054 : vector<2x4xf32>
    %1056 = arith.subf %1007, %1053 : vector<2x4xf32>
    %1057 = math.absf %1056 : vector<2x4xf32>
    %1058 = arith.addf %1055, %1057 : vector<2x4xf32>
    %1059 = arith.mulf %1058, %648 : vector<2x4xf32>
    %1060 = arith.addf %957, %1059 : vector<2x4xf32>
    %cst_228 = arith.constant 5.000000e-01 : f32
    %1061 = vector.broadcast %cst_228 : f32 to vector<2x4xf32>
    %1062 = arith.mulf %1061, %1053 : vector<2x4xf32>
    %cst_229 = arith.constant 5.000000e-01 : f32
    %1063 = vector.broadcast %cst_229 : f32 to vector<2x4xf32>
    %1064 = arith.mulf %1063, %1021 : vector<2x4xf32>
    %1065 = arith.addf %1062, %1064 : vector<2x4xf32>
    %1066 = math.absf %1065 : vector<2x4xf32>
    %1067 = arith.mulf %1009, %1066 : vector<2x4xf32>
    %1068 = arith.addf %1008, %1067 : vector<2x4xf32>
    %c0_230 = arith.constant 0 : index
    %c8 = arith.constant 8 : index
    %1069 = vector.load %arg10[%c0_230, %c8] : memref<2x32xf32, #tpu.memory_space<vmem>>, vector<2x4xf32>
    tpu.vector_store %arg10[%c0_230, %c8], %1068 {strides = array<i32>} : memref<2x32xf32, #tpu.memory_space<vmem>>, vector<2x4xf32>,
    %1070 = arith.addf %1013, %639 : vector<2x128xf32>
    %1071 = vector.extract_strided_slice %1068 {offsets = [0, 0], sizes = [2, 1], strides = [1, 1]} : vector<2x4xf32> to vector<2x1xf32>
    %1072 = vector.extract_strided_slice %16 {offsets = [0, 0], sizes = [1, 128], strides = [1, 1]} : vector<4x128xf32> to vector<1x128xf32>
    %1073 = vector.broadcast %1071 : vector<2x1xf32> to vector<2x128xf32>
    %1074 = vector.broadcast %1072 : vector<1x128xf32> to vector<2x128xf32>
    %1075 = arith.mulf %1073, %1074 : vector<2x128xf32>
    %1076 = arith.addf %1070, %1075 : vector<2x128xf32>
    %1077 = vector.extract_strided_slice %1068 {offsets = [0, 1], sizes = [2, 1], strides = [1, 1]} : vector<2x4xf32> to vector<2x1xf32>
    %1078 = vector.extract_strided_slice %16 {offsets = [1, 0], sizes = [1, 128], strides = [1, 1]} : vector<4x128xf32> to vector<1x128xf32>
    %1079 = vector.broadcast %1077 : vector<2x1xf32> to vector<2x128xf32>
    %1080 = vector.broadcast %1078 : vector<1x128xf32> to vector<2x128xf32>
    %1081 = arith.mulf %1079, %1080 : vector<2x128xf32>
    %1082 = arith.addf %1076, %1081 : vector<2x128xf32>
    %1083 = vector.extract_strided_slice %1068 {offsets = [0, 2], sizes = [2, 1], strides = [1, 1]} : vector<2x4xf32> to vector<2x1xf32>
    %1084 = vector.extract_strided_slice %16 {offsets = [2, 0], sizes = [1, 128], strides = [1, 1]} : vector<4x128xf32> to vector<1x128xf32>
    %1085 = vector.broadcast %1083 : vector<2x1xf32> to vector<2x128xf32>
    %1086 = vector.broadcast %1084 : vector<1x128xf32> to vector<2x128xf32>
    %1087 = arith.mulf %1085, %1086 : vector<2x128xf32>
    %1088 = arith.addf %1082, %1087 : vector<2x128xf32>
    %1089 = vector.extract_strided_slice %1068 {offsets = [0, 3], sizes = [2, 1], strides = [1, 1]} : vector<2x4xf32> to vector<2x1xf32>
    %1090 = vector.extract_strided_slice %16 {offsets = [3, 0], sizes = [1, 128], strides = [1, 1]} : vector<4x128xf32> to vector<1x128xf32>
    %1091 = vector.broadcast %1089 : vector<2x1xf32> to vector<2x128xf32>
    %1092 = vector.broadcast %1090 : vector<1x128xf32> to vector<2x128xf32>
    %1093 = arith.mulf %1091, %1092 : vector<2x128xf32>
    %1094 = arith.addf %1088, %1093 : vector<2x128xf32>
    %1095 = arith.negf %1094 : vector<2x128xf32>
    %1096 = math.exp %1095 : vector<2x128xf32>
    %cst_231 = arith.constant 1.000000e+00 : f32
    %1097 = vector.broadcast %cst_231 : f32 to vector<2x128xf32>
    %1098 = arith.addf %1097, %1096 : vector<2x128xf32>
    %1099 = arith.divf %1097, %1098 : vector<2x128xf32>
    %1100 = vector.extract_strided_slice %1099 {offsets = [0, 0], sizes = [2, 32], strides = [1, 1]} : vector<2x128xf32> to vector<2x32xf32>
    %1101 = vector.extract_strided_slice %1099 {offsets = [0, 32], sizes = [2, 32], strides = [1, 1]} : vector<2x128xf32> to vector<2x32xf32>
    %1102 = vector.extract_strided_slice %1099 {offsets = [0, 96], sizes = [2, 32], strides = [1, 1]} : vector<2x128xf32> to vector<2x32xf32>
    %1103 = vector.extract_strided_slice %1094 {offsets = [0, 64], sizes = [2, 32], strides = [1, 1]} : vector<2x128xf32> to vector<2x32xf32>
    %1104 = math.tanh %1103 : vector<2x32xf32>
    %1105 = arith.mulf %1101, %1004 : vector<2x32xf32>
    %1106 = arith.mulf %1100, %1104 : vector<2x32xf32>
    %1107 = arith.addf %1105, %1106 : vector<2x32xf32>
    %1108 = math.tanh %1107 : vector<2x32xf32>
    %1109 = arith.mulf %1102, %1108 : vector<2x32xf32>
    %1110 = vector.extract_strided_slice %6 {offsets = [0, 12], sizes = [2, 4], strides = [1, 1]} : vector<2x32xf32> to vector<2x4xf32>
    %1111 = vector.extract_strided_slice %7 {offsets = [0, 12], sizes = [2, 4], strides = [1, 1]} : vector<2x32xf32> to vector<2x4xf32>
    %1112 = vector.extract_strided_slice %9 {offsets = [0, 12], sizes = [2, 4], strides = [1, 1]} : vector<2x32xf32> to vector<2x4xf32>
    %1113 = arith.mulf %1109, %243 : vector<2x32xf32>
    %1114 = arith.truncf %1113 : vector<2x32xf32> to vector<2x32xbf16>
    %cst_232 = arith.constant dense<0.000000e+00> : vector<2x132xf32>
    %1115 = tpu.matmul %1114, %12, %cst_232 {dimension_numbers = #tpu.dot_dimension_numbers<[1], [0], [0], [1], [0, 0, 1, 1], [], []>} : vector<2x32xbf16>, vector<32x132xbf16>, vector<2x132xf32> -> vector<2x132xf32>
    %1116 = vector.extract_strided_slice %1115 {offsets = [0, 0], sizes = [2, 128], strides = [1, 1]} : vector<2x132xf32> to vector<2x128xf32>
    %1117 = vector.extract_strided_slice %1115 {offsets = [0, 128], sizes = [2, 4], strides = [1, 1]} : vector<2x132xf32> to vector<2x4xf32>
    %1118 = vector.broadcast %13 : vector<1x4xf32> to vector<2x4xf32>
    %1119 = arith.addf %1117, %1118 : vector<2x4xf32>
    %1120 = arith.negf %1119 : vector<2x4xf32>
    %1121 = math.exp %1120 : vector<2x4xf32>
    %cst_233 = arith.constant 1.000000e+00 : f32
    %1122 = vector.broadcast %cst_233 : f32 to vector<2x4xf32>
    %1123 = arith.addf %1122, %1121 : vector<2x4xf32>
    %1124 = arith.divf %1122, %1123 : vector<2x4xf32>
    %1125 = arith.mulf %1112, %1124 : vector<2x4xf32>
    %1126 = arith.addf %1111, %1125 : vector<2x4xf32>
    %1127 = vector.extract_strided_slice %1126 {offsets = [0, 0], sizes = [2, 1], strides = [1, 1]} : vector<2x4xf32> to vector<2x1xf32>
    %1128 = vector.extract_strided_slice %14 {offsets = [0, 0], sizes = [1, 4], strides = [1, 1]} : vector<4x4xf32> to vector<1x4xf32>
    %1129 = vector.broadcast %1127 : vector<2x1xf32> to vector<2x4xf32>
    %1130 = vector.broadcast %1128 : vector<1x4xf32> to vector<2x4xf32>
    %1131 = arith.mulf %1129, %1130 : vector<2x4xf32>
    %1132 = vector.broadcast %15 : vector<1x4xf32> to vector<2x4xf32>
    %1133 = arith.addf %1132, %1131 : vector<2x4xf32>
    %1134 = vector.extract_strided_slice %1126 {offsets = [0, 1], sizes = [2, 1], strides = [1, 1]} : vector<2x4xf32> to vector<2x1xf32>
    %1135 = vector.extract_strided_slice %14 {offsets = [1, 0], sizes = [1, 4], strides = [1, 1]} : vector<4x4xf32> to vector<1x4xf32>
    %1136 = vector.broadcast %1134 : vector<2x1xf32> to vector<2x4xf32>
    %1137 = vector.broadcast %1135 : vector<1x4xf32> to vector<2x4xf32>
    %1138 = arith.mulf %1136, %1137 : vector<2x4xf32>
    %1139 = arith.addf %1133, %1138 : vector<2x4xf32>
    %1140 = vector.extract_strided_slice %1126 {offsets = [0, 2], sizes = [2, 1], strides = [1, 1]} : vector<2x4xf32> to vector<2x1xf32>
    %1141 = vector.extract_strided_slice %14 {offsets = [2, 0], sizes = [1, 4], strides = [1, 1]} : vector<4x4xf32> to vector<1x4xf32>
    %1142 = vector.broadcast %1140 : vector<2x1xf32> to vector<2x4xf32>
    %1143 = vector.broadcast %1141 : vector<1x4xf32> to vector<2x4xf32>
    %1144 = arith.mulf %1142, %1143 : vector<2x4xf32>
    %1145 = arith.addf %1139, %1144 : vector<2x4xf32>
    %1146 = vector.extract_strided_slice %1126 {offsets = [0, 3], sizes = [2, 1], strides = [1, 1]} : vector<2x4xf32> to vector<2x1xf32>
    %1147 = vector.extract_strided_slice %14 {offsets = [3, 0], sizes = [1, 4], strides = [1, 1]} : vector<4x4xf32> to vector<1x4xf32>
    %1148 = vector.broadcast %1146 : vector<2x1xf32> to vector<2x4xf32>
    %1149 = vector.broadcast %1147 : vector<1x4xf32> to vector<2x4xf32>
    %1150 = arith.mulf %1148, %1149 : vector<2x4xf32>
    %1151 = arith.addf %1145, %1150 : vector<2x4xf32>
    %1152 = arith.negf %1151 : vector<2x4xf32>
    %1153 = math.exp %1152 : vector<2x4xf32>
    %cst_234 = arith.constant 1.000000e+00 : f32
    %1154 = vector.broadcast %cst_234 : f32 to vector<2x4xf32>
    %1155 = arith.addf %1154, %1153 : vector<2x4xf32>
    %1156 = arith.divf %1154, %1155 : vector<2x4xf32>
    %1157 = arith.subf %1110, %1124 : vector<2x4xf32>
    %1158 = math.absf %1157 : vector<2x4xf32>
    %1159 = arith.subf %1110, %1156 : vector<2x4xf32>
    %1160 = math.absf %1159 : vector<2x4xf32>
    %1161 = arith.addf %1158, %1160 : vector<2x4xf32>
    %1162 = arith.mulf %1161, %683 : vector<2x4xf32>
    %1163 = arith.addf %1060, %1162 : vector<2x4xf32>
    %cst_235 = arith.constant 5.000000e-01 : f32
    %1164 = vector.broadcast %cst_235 : f32 to vector<2x4xf32>
    %1165 = arith.mulf %1164, %1156 : vector<2x4xf32>
    %cst_236 = arith.constant 5.000000e-01 : f32
    %1166 = vector.broadcast %cst_236 : f32 to vector<2x4xf32>
    %1167 = arith.mulf %1166, %1124 : vector<2x4xf32>
    %1168 = arith.addf %1165, %1167 : vector<2x4xf32>
    %1169 = math.absf %1168 : vector<2x4xf32>
    %1170 = arith.mulf %1112, %1169 : vector<2x4xf32>
    %1171 = arith.addf %1111, %1170 : vector<2x4xf32>
    %c0_237 = arith.constant 0 : index
    %c12 = arith.constant 12 : index
    %1172 = vector.load %arg10[%c0_237, %c12] : memref<2x32xf32, #tpu.memory_space<vmem>>, vector<2x4xf32>
    tpu.vector_store %arg10[%c0_237, %c12], %1171 {strides = array<i32>} : memref<2x32xf32, #tpu.memory_space<vmem>>, vector<2x4xf32>,
    %1173 = arith.addf %1116, %674 : vector<2x128xf32>
    %1174 = vector.extract_strided_slice %1171 {offsets = [0, 0], sizes = [2, 1], strides = [1, 1]} : vector<2x4xf32> to vector<2x1xf32>
    %1175 = vector.extract_strided_slice %16 {offsets = [0, 0], sizes = [1, 128], strides = [1, 1]} : vector<4x128xf32> to vector<1x128xf32>
    %1176 = vector.broadcast %1174 : vector<2x1xf32> to vector<2x128xf32>
    %1177 = vector.broadcast %1175 : vector<1x128xf32> to vector<2x128xf32>
    %1178 = arith.mulf %1176, %1177 : vector<2x128xf32>
    %1179 = arith.addf %1173, %1178 : vector<2x128xf32>
    %1180 = vector.extract_strided_slice %1171 {offsets = [0, 1], sizes = [2, 1], strides = [1, 1]} : vector<2x4xf32> to vector<2x1xf32>
    %1181 = vector.extract_strided_slice %16 {offsets = [1, 0], sizes = [1, 128], strides = [1, 1]} : vector<4x128xf32> to vector<1x128xf32>
    %1182 = vector.broadcast %1180 : vector<2x1xf32> to vector<2x128xf32>
    %1183 = vector.broadcast %1181 : vector<1x128xf32> to vector<2x128xf32>
    %1184 = arith.mulf %1182, %1183 : vector<2x128xf32>
    %1185 = arith.addf %1179, %1184 : vector<2x128xf32>
    %1186 = vector.extract_strided_slice %1171 {offsets = [0, 2], sizes = [2, 1], strides = [1, 1]} : vector<2x4xf32> to vector<2x1xf32>
    %1187 = vector.extract_strided_slice %16 {offsets = [2, 0], sizes = [1, 128], strides = [1, 1]} : vector<4x128xf32> to vector<1x128xf32>
    %1188 = vector.broadcast %1186 : vector<2x1xf32> to vector<2x128xf32>
    %1189 = vector.broadcast %1187 : vector<1x128xf32> to vector<2x128xf32>
    %1190 = arith.mulf %1188, %1189 : vector<2x128xf32>
    %1191 = arith.addf %1185, %1190 : vector<2x128xf32>
    %1192 = vector.extract_strided_slice %1171 {offsets = [0, 3], sizes = [2, 1], strides = [1, 1]} : vector<2x4xf32> to vector<2x1xf32>
    %1193 = vector.extract_strided_slice %16 {offsets = [3, 0], sizes = [1, 128], strides = [1, 1]} : vector<4x128xf32> to vector<1x128xf32>
    %1194 = vector.broadcast %1192 : vector<2x1xf32> to vector<2x128xf32>
    %1195 = vector.broadcast %1193 : vector<1x128xf32> to vector<2x128xf32>
    %1196 = arith.mulf %1194, %1195 : vector<2x128xf32>
    %1197 = arith.addf %1191, %1196 : vector<2x128xf32>
    %1198 = arith.negf %1197 : vector<2x128xf32>
    %1199 = math.exp %1198 : vector<2x128xf32>
    %cst_238 = arith.constant 1.000000e+00 : f32
    %1200 = vector.broadcast %cst_238 : f32 to vector<2x128xf32>
    %1201 = arith.addf %1200, %1199 : vector<2x128xf32>
    %1202 = arith.divf %1200, %1201 : vector<2x128xf32>
    %1203 = vector.extract_strided_slice %1202 {offsets = [0, 0], sizes = [2, 32], strides = [1, 1]} : vector<2x128xf32> to vector<2x32xf32>
    %1204 = vector.extract_strided_slice %1202 {offsets = [0, 32], sizes = [2, 32], strides = [1, 1]} : vector<2x128xf32> to vector<2x32xf32>
    %1205 = vector.extract_strided_slice %1202 {offsets = [0, 96], sizes = [2, 32], strides = [1, 1]} : vector<2x128xf32> to vector<2x32xf32>
    %1206 = vector.extract_strided_slice %1197 {offsets = [0, 64], sizes = [2, 32], strides = [1, 1]} : vector<2x128xf32> to vector<2x32xf32>
    %1207 = math.tanh %1206 : vector<2x32xf32>
    %1208 = arith.mulf %1204, %1107 : vector<2x32xf32>
    %1209 = arith.mulf %1203, %1207 : vector<2x32xf32>
    %1210 = arith.addf %1208, %1209 : vector<2x32xf32>
    %1211 = math.tanh %1210 : vector<2x32xf32>
    %1212 = arith.mulf %1205, %1211 : vector<2x32xf32>
    %1213 = vector.extract_strided_slice %6 {offsets = [0, 16], sizes = [2, 4], strides = [1, 1]} : vector<2x32xf32> to vector<2x4xf32>
    %1214 = vector.extract_strided_slice %7 {offsets = [0, 16], sizes = [2, 4], strides = [1, 1]} : vector<2x32xf32> to vector<2x4xf32>
    %1215 = vector.extract_strided_slice %9 {offsets = [0, 16], sizes = [2, 4], strides = [1, 1]} : vector<2x32xf32> to vector<2x4xf32>
    %1216 = arith.mulf %1212, %318 : vector<2x32xf32>
    %1217 = arith.truncf %1216 : vector<2x32xf32> to vector<2x32xbf16>
    %cst_239 = arith.constant dense<0.000000e+00> : vector<2x132xf32>
    %1218 = tpu.matmul %1217, %12, %cst_239 {dimension_numbers = #tpu.dot_dimension_numbers<[1], [0], [0], [1], [0, 0, 1, 1], [], []>} : vector<2x32xbf16>, vector<32x132xbf16>, vector<2x132xf32> -> vector<2x132xf32>
    %1219 = vector.extract_strided_slice %1218 {offsets = [0, 0], sizes = [2, 128], strides = [1, 1]} : vector<2x132xf32> to vector<2x128xf32>
    %1220 = vector.extract_strided_slice %1218 {offsets = [0, 128], sizes = [2, 4], strides = [1, 1]} : vector<2x132xf32> to vector<2x4xf32>
    %1221 = vector.broadcast %13 : vector<1x4xf32> to vector<2x4xf32>
    %1222 = arith.addf %1220, %1221 : vector<2x4xf32>
    %1223 = arith.negf %1222 : vector<2x4xf32>
    %1224 = math.exp %1223 : vector<2x4xf32>
    %cst_240 = arith.constant 1.000000e+00 : f32
    %1225 = vector.broadcast %cst_240 : f32 to vector<2x4xf32>
    %1226 = arith.addf %1225, %1224 : vector<2x4xf32>
    %1227 = arith.divf %1225, %1226 : vector<2x4xf32>
    %1228 = arith.mulf %1215, %1227 : vector<2x4xf32>
    %1229 = arith.addf %1214, %1228 : vector<2x4xf32>
    %1230 = vector.extract_strided_slice %1229 {offsets = [0, 0], sizes = [2, 1], strides = [1, 1]} : vector<2x4xf32> to vector<2x1xf32>
    %1231 = vector.extract_strided_slice %14 {offsets = [0, 0], sizes = [1, 4], strides = [1, 1]} : vector<4x4xf32> to vector<1x4xf32>
    %1232 = vector.broadcast %1230 : vector<2x1xf32> to vector<2x4xf32>
    %1233 = vector.broadcast %1231 : vector<1x4xf32> to vector<2x4xf32>
    %1234 = arith.mulf %1232, %1233 : vector<2x4xf32>
    %1235 = vector.broadcast %15 : vector<1x4xf32> to vector<2x4xf32>
    %1236 = arith.addf %1235, %1234 : vector<2x4xf32>
    %1237 = vector.extract_strided_slice %1229 {offsets = [0, 1], sizes = [2, 1], strides = [1, 1]} : vector<2x4xf32> to vector<2x1xf32>
    %1238 = vector.extract_strided_slice %14 {offsets = [1, 0], sizes = [1, 4], strides = [1, 1]} : vector<4x4xf32> to vector<1x4xf32>
    %1239 = vector.broadcast %1237 : vector<2x1xf32> to vector<2x4xf32>
    %1240 = vector.broadcast %1238 : vector<1x4xf32> to vector<2x4xf32>
    %1241 = arith.mulf %1239, %1240 : vector<2x4xf32>
    %1242 = arith.addf %1236, %1241 : vector<2x4xf32>
    %1243 = vector.extract_strided_slice %1229 {offsets = [0, 2], sizes = [2, 1], strides = [1, 1]} : vector<2x4xf32> to vector<2x1xf32>
    %1244 = vector.extract_strided_slice %14 {offsets = [2, 0], sizes = [1, 4], strides = [1, 1]} : vector<4x4xf32> to vector<1x4xf32>
    %1245 = vector.broadcast %1243 : vector<2x1xf32> to vector<2x4xf32>
    %1246 = vector.broadcast %1244 : vector<1x4xf32> to vector<2x4xf32>
    %1247 = arith.mulf %1245, %1246 : vector<2x4xf32>
    %1248 = arith.addf %1242, %1247 : vector<2x4xf32>
    %1249 = vector.extract_strided_slice %1229 {offsets = [0, 3], sizes = [2, 1], strides = [1, 1]} : vector<2x4xf32> to vector<2x1xf32>
    %1250 = vector.extract_strided_slice %14 {offsets = [3, 0], sizes = [1, 4], strides = [1, 1]} : vector<4x4xf32> to vector<1x4xf32>
    %1251 = vector.broadcast %1249 : vector<2x1xf32> to vector<2x4xf32>
    %1252 = vector.broadcast %1250 : vector<1x4xf32> to vector<2x4xf32>
    %1253 = arith.mulf %1251, %1252 : vector<2x4xf32>
    %1254 = arith.addf %1248, %1253 : vector<2x4xf32>
    %1255 = arith.negf %1254 : vector<2x4xf32>
    %1256 = math.exp %1255 : vector<2x4xf32>
    %cst_241 = arith.constant 1.000000e+00 : f32
    %1257 = vector.broadcast %cst_241 : f32 to vector<2x4xf32>
    %1258 = arith.addf %1257, %1256 : vector<2x4xf32>
    %1259 = arith.divf %1257, %1258 : vector<2x4xf32>
    %1260 = arith.subf %1213, %1227 : vector<2x4xf32>
    %1261 = math.absf %1260 : vector<2x4xf32>
    %1262 = arith.subf %1213, %1259 : vector<2x4xf32>
    %1263 = math.absf %1262 : vector<2x4xf32>
    %1264 = arith.addf %1261, %1263 : vector<2x4xf32>
    %1265 = arith.mulf %1264, %718 : vector<2x4xf32>
    %1266 = arith.addf %1163, %1265 : vector<2x4xf32>
    %cst_242 = arith.constant 5.000000e-01 : f32
    %1267 = vector.broadcast %cst_242 : f32 to vector<2x4xf32>
    %1268 = arith.mulf %1267, %1259 : vector<2x4xf32>
    %cst_243 = arith.constant 5.000000e-01 : f32
    %1269 = vector.broadcast %cst_243 : f32 to vector<2x4xf32>
    %1270 = arith.mulf %1269, %1227 : vector<2x4xf32>
    %1271 = arith.addf %1268, %1270 : vector<2x4xf32>
    %1272 = math.absf %1271 : vector<2x4xf32>
    %1273 = arith.mulf %1215, %1272 : vector<2x4xf32>
    %1274 = arith.addf %1214, %1273 : vector<2x4xf32>
    %c0_244 = arith.constant 0 : index
    %c16 = arith.constant 16 : index
    %1275 = vector.load %arg10[%c0_244, %c16] : memref<2x32xf32, #tpu.memory_space<vmem>>, vector<2x4xf32>
    tpu.vector_store %arg10[%c0_244, %c16], %1274 {strides = array<i32>} : memref<2x32xf32, #tpu.memory_space<vmem>>, vector<2x4xf32>,
    %1276 = arith.addf %1219, %709 : vector<2x128xf32>
    %1277 = vector.extract_strided_slice %1274 {offsets = [0, 0], sizes = [2, 1], strides = [1, 1]} : vector<2x4xf32> to vector<2x1xf32>
    %1278 = vector.extract_strided_slice %16 {offsets = [0, 0], sizes = [1, 128], strides = [1, 1]} : vector<4x128xf32> to vector<1x128xf32>
    %1279 = vector.broadcast %1277 : vector<2x1xf32> to vector<2x128xf32>
    %1280 = vector.broadcast %1278 : vector<1x128xf32> to vector<2x128xf32>
    %1281 = arith.mulf %1279, %1280 : vector<2x128xf32>
    %1282 = arith.addf %1276, %1281 : vector<2x128xf32>
    %1283 = vector.extract_strided_slice %1274 {offsets = [0, 1], sizes = [2, 1], strides = [1, 1]} : vector<2x4xf32> to vector<2x1xf32>
    %1284 = vector.extract_strided_slice %16 {offsets = [1, 0], sizes = [1, 128], strides = [1, 1]} : vector<4x128xf32> to vector<1x128xf32>
    %1285 = vector.broadcast %1283 : vector<2x1xf32> to vector<2x128xf32>
    %1286 = vector.broadcast %1284 : vector<1x128xf32> to vector<2x128xf32>
    %1287 = arith.mulf %1285, %1286 : vector<2x128xf32>
    %1288 = arith.addf %1282, %1287 : vector<2x128xf32>
    %1289 = vector.extract_strided_slice %1274 {offsets = [0, 2], sizes = [2, 1], strides = [1, 1]} : vector<2x4xf32> to vector<2x1xf32>
    %1290 = vector.extract_strided_slice %16 {offsets = [2, 0], sizes = [1, 128], strides = [1, 1]} : vector<4x128xf32> to vector<1x128xf32>
    %1291 = vector.broadcast %1289 : vector<2x1xf32> to vector<2x128xf32>
    %1292 = vector.broadcast %1290 : vector<1x128xf32> to vector<2x128xf32>
    %1293 = arith.mulf %1291, %1292 : vector<2x128xf32>
    %1294 = arith.addf %1288, %1293 : vector<2x128xf32>
    %1295 = vector.extract_strided_slice %1274 {offsets = [0, 3], sizes = [2, 1], strides = [1, 1]} : vector<2x4xf32> to vector<2x1xf32>
    %1296 = vector.extract_strided_slice %16 {offsets = [3, 0], sizes = [1, 128], strides = [1, 1]} : vector<4x128xf32> to vector<1x128xf32>
    %1297 = vector.broadcast %1295 : vector<2x1xf32> to vector<2x128xf32>
    %1298 = vector.broadcast %1296 : vector<1x128xf32> to vector<2x128xf32>
    %1299 = arith.mulf %1297, %1298 : vector<2x128xf32>
    %1300 = arith.addf %1294, %1299 : vector<2x128xf32>
    %1301 = arith.negf %1300 : vector<2x128xf32>
    %1302 = math.exp %1301 : vector<2x128xf32>
    %cst_245 = arith.constant 1.000000e+00 : f32
    %1303 = vector.broadcast %cst_245 : f32 to vector<2x128xf32>
    %1304 = arith.addf %1303, %1302 : vector<2x128xf32>
    %1305 = arith.divf %1303, %1304 : vector<2x128xf32>
    %1306 = vector.extract_strided_slice %1305 {offsets = [0, 0], sizes = [2, 32], strides = [1, 1]} : vector<2x128xf32> to vector<2x32xf32>
    %1307 = vector.extract_strided_slice %1305 {offsets = [0, 32], sizes = [2, 32], strides = [1, 1]} : vector<2x128xf32> to vector<2x32xf32>
    %1308 = vector.extract_strided_slice %1305 {offsets = [0, 96], sizes = [2, 32], strides = [1, 1]} : vector<2x128xf32> to vector<2x32xf32>
    %1309 = vector.extract_strided_slice %1300 {offsets = [0, 64], sizes = [2, 32], strides = [1, 1]} : vector<2x128xf32> to vector<2x32xf32>
    %1310 = math.tanh %1309 : vector<2x32xf32>
    %1311 = arith.mulf %1307, %1210 : vector<2x32xf32>
    %1312 = arith.mulf %1306, %1310 : vector<2x32xf32>
    %1313 = arith.addf %1311, %1312 : vector<2x32xf32>
    %1314 = math.tanh %1313 : vector<2x32xf32>
    %1315 = arith.mulf %1308, %1314 : vector<2x32xf32>
    %1316 = vector.extract_strided_slice %6 {offsets = [0, 20], sizes = [2, 4], strides = [1, 1]} : vector<2x32xf32> to vector<2x4xf32>
    %1317 = vector.extract_strided_slice %7 {offsets = [0, 20], sizes = [2, 4], strides = [1, 1]} : vector<2x32xf32> to vector<2x4xf32>
    %1318 = vector.extract_strided_slice %9 {offsets = [0, 20], sizes = [2, 4], strides = [1, 1]} : vector<2x32xf32> to vector<2x4xf32>
    %1319 = arith.mulf %1315, %393 : vector<2x32xf32>
    %1320 = arith.truncf %1319 : vector<2x32xf32> to vector<2x32xbf16>
    %cst_246 = arith.constant dense<0.000000e+00> : vector<2x132xf32>
    %1321 = tpu.matmul %1320, %12, %cst_246 {dimension_numbers = #tpu.dot_dimension_numbers<[1], [0], [0], [1], [0, 0, 1, 1], [], []>} : vector<2x32xbf16>, vector<32x132xbf16>, vector<2x132xf32> -> vector<2x132xf32>
    %1322 = vector.extract_strided_slice %1321 {offsets = [0, 0], sizes = [2, 128], strides = [1, 1]} : vector<2x132xf32> to vector<2x128xf32>
    %1323 = vector.extract_strided_slice %1321 {offsets = [0, 128], sizes = [2, 4], strides = [1, 1]} : vector<2x132xf32> to vector<2x4xf32>
    %1324 = vector.broadcast %13 : vector<1x4xf32> to vector<2x4xf32>
    %1325 = arith.addf %1323, %1324 : vector<2x4xf32>
    %1326 = arith.negf %1325 : vector<2x4xf32>
    %1327 = math.exp %1326 : vector<2x4xf32>
    %cst_247 = arith.constant 1.000000e+00 : f32
    %1328 = vector.broadcast %cst_247 : f32 to vector<2x4xf32>
    %1329 = arith.addf %1328, %1327 : vector<2x4xf32>
    %1330 = arith.divf %1328, %1329 : vector<2x4xf32>
    %1331 = arith.mulf %1318, %1330 : vector<2x4xf32>
    %1332 = arith.addf %1317, %1331 : vector<2x4xf32>
    %1333 = vector.extract_strided_slice %1332 {offsets = [0, 0], sizes = [2, 1], strides = [1, 1]} : vector<2x4xf32> to vector<2x1xf32>
    %1334 = vector.extract_strided_slice %14 {offsets = [0, 0], sizes = [1, 4], strides = [1, 1]} : vector<4x4xf32> to vector<1x4xf32>
    %1335 = vector.broadcast %1333 : vector<2x1xf32> to vector<2x4xf32>
    %1336 = vector.broadcast %1334 : vector<1x4xf32> to vector<2x4xf32>
    %1337 = arith.mulf %1335, %1336 : vector<2x4xf32>
    %1338 = vector.broadcast %15 : vector<1x4xf32> to vector<2x4xf32>
    %1339 = arith.addf %1338, %1337 : vector<2x4xf32>
    %1340 = vector.extract_strided_slice %1332 {offsets = [0, 1], sizes = [2, 1], strides = [1, 1]} : vector<2x4xf32> to vector<2x1xf32>
    %1341 = vector.extract_strided_slice %14 {offsets = [1, 0], sizes = [1, 4], strides = [1, 1]} : vector<4x4xf32> to vector<1x4xf32>
    %1342 = vector.broadcast %1340 : vector<2x1xf32> to vector<2x4xf32>
    %1343 = vector.broadcast %1341 : vector<1x4xf32> to vector<2x4xf32>
    %1344 = arith.mulf %1342, %1343 : vector<2x4xf32>
    %1345 = arith.addf %1339, %1344 : vector<2x4xf32>
    %1346 = vector.extract_strided_slice %1332 {offsets = [0, 2], sizes = [2, 1], strides = [1, 1]} : vector<2x4xf32> to vector<2x1xf32>
    %1347 = vector.extract_strided_slice %14 {offsets = [2, 0], sizes = [1, 4], strides = [1, 1]} : vector<4x4xf32> to vector<1x4xf32>
    %1348 = vector.broadcast %1346 : vector<2x1xf32> to vector<2x4xf32>
    %1349 = vector.broadcast %1347 : vector<1x4xf32> to vector<2x4xf32>
    %1350 = arith.mulf %1348, %1349 : vector<2x4xf32>
    %1351 = arith.addf %1345, %1350 : vector<2x4xf32>
    %1352 = vector.extract_strided_slice %1332 {offsets = [0, 3], sizes = [2, 1], strides = [1, 1]} : vector<2x4xf32> to vector<2x1xf32>
    %1353 = vector.extract_strided_slice %14 {offsets = [3, 0], sizes = [1, 4], strides = [1, 1]} : vector<4x4xf32> to vector<1x4xf32>
    %1354 = vector.broadcast %1352 : vector<2x1xf32> to vector<2x4xf32>
    %1355 = vector.broadcast %1353 : vector<1x4xf32> to vector<2x4xf32>
    %1356 = arith.mulf %1354, %1355 : vector<2x4xf32>
    %1357 = arith.addf %1351, %1356 : vector<2x4xf32>
    %1358 = arith.negf %1357 : vector<2x4xf32>
    %1359 = math.exp %1358 : vector<2x4xf32>
    %cst_248 = arith.constant 1.000000e+00 : f32
    %1360 = vector.broadcast %cst_248 : f32 to vector<2x4xf32>
    %1361 = arith.addf %1360, %1359 : vector<2x4xf32>
    %1362 = arith.divf %1360, %1361 : vector<2x4xf32>
    %1363 = arith.subf %1316, %1330 : vector<2x4xf32>
    %1364 = math.absf %1363 : vector<2x4xf32>
    %1365 = arith.subf %1316, %1362 : vector<2x4xf32>
    %1366 = math.absf %1365 : vector<2x4xf32>
    %1367 = arith.addf %1364, %1366 : vector<2x4xf32>
    %1368 = arith.mulf %1367, %753 : vector<2x4xf32>
    %1369 = arith.addf %1266, %1368 : vector<2x4xf32>
    %cst_249 = arith.constant 5.000000e-01 : f32
    %1370 = vector.broadcast %cst_249 : f32 to vector<2x4xf32>
    %1371 = arith.mulf %1370, %1362 : vector<2x4xf32>
    %cst_250 = arith.constant 5.000000e-01 : f32
    %1372 = vector.broadcast %cst_250 : f32 to vector<2x4xf32>
    %1373 = arith.mulf %1372, %1330 : vector<2x4xf32>
    %1374 = arith.addf %1371, %1373 : vector<2x4xf32>
    %1375 = math.absf %1374 : vector<2x4xf32>
    %1376 = arith.mulf %1318, %1375 : vector<2x4xf32>
    %1377 = arith.addf %1317, %1376 : vector<2x4xf32>
    %c0_251 = arith.constant 0 : index
    %c20 = arith.constant 20 : index
    %1378 = vector.load %arg10[%c0_251, %c20] : memref<2x32xf32, #tpu.memory_space<vmem>>, vector<2x4xf32>
    tpu.vector_store %arg10[%c0_251, %c20], %1377 {strides = array<i32>} : memref<2x32xf32, #tpu.memory_space<vmem>>, vector<2x4xf32>,
    %1379 = arith.addf %1322, %744 : vector<2x128xf32>
    %1380 = vector.extract_strided_slice %1377 {offsets = [0, 0], sizes = [2, 1], strides = [1, 1]} : vector<2x4xf32> to vector<2x1xf32>
    %1381 = vector.extract_strided_slice %16 {offsets = [0, 0], sizes = [1, 128], strides = [1, 1]} : vector<4x128xf32> to vector<1x128xf32>
    %1382 = vector.broadcast %1380 : vector<2x1xf32> to vector<2x128xf32>
    %1383 = vector.broadcast %1381 : vector<1x128xf32> to vector<2x128xf32>
    %1384 = arith.mulf %1382, %1383 : vector<2x128xf32>
    %1385 = arith.addf %1379, %1384 : vector<2x128xf32>
    %1386 = vector.extract_strided_slice %1377 {offsets = [0, 1], sizes = [2, 1], strides = [1, 1]} : vector<2x4xf32> to vector<2x1xf32>
    %1387 = vector.extract_strided_slice %16 {offsets = [1, 0], sizes = [1, 128], strides = [1, 1]} : vector<4x128xf32> to vector<1x128xf32>
    %1388 = vector.broadcast %1386 : vector<2x1xf32> to vector<2x128xf32>
    %1389 = vector.broadcast %1387 : vector<1x128xf32> to vector<2x128xf32>
    %1390 = arith.mulf %1388, %1389 : vector<2x128xf32>
    %1391 = arith.addf %1385, %1390 : vector<2x128xf32>
    %1392 = vector.extract_strided_slice %1377 {offsets = [0, 2], sizes = [2, 1], strides = [1, 1]} : vector<2x4xf32> to vector<2x1xf32>
    %1393 = vector.extract_strided_slice %16 {offsets = [2, 0], sizes = [1, 128], strides = [1, 1]} : vector<4x128xf32> to vector<1x128xf32>
    %1394 = vector.broadcast %1392 : vector<2x1xf32> to vector<2x128xf32>
    %1395 = vector.broadcast %1393 : vector<1x128xf32> to vector<2x128xf32>
    %1396 = arith.mulf %1394, %1395 : vector<2x128xf32>
    %1397 = arith.addf %1391, %1396 : vector<2x128xf32>
    %1398 = vector.extract_strided_slice %1377 {offsets = [0, 3], sizes = [2, 1], strides = [1, 1]} : vector<2x4xf32> to vector<2x1xf32>
    %1399 = vector.extract_strided_slice %16 {offsets = [3, 0], sizes = [1, 128], strides = [1, 1]} : vector<4x128xf32> to vector<1x128xf32>
    %1400 = vector.broadcast %1398 : vector<2x1xf32> to vector<2x128xf32>
    %1401 = vector.broadcast %1399 : vector<1x128xf32> to vector<2x128xf32>
    %1402 = arith.mulf %1400, %1401 : vector<2x128xf32>
    %1403 = arith.addf %1397, %1402 : vector<2x128xf32>
    %1404 = arith.negf %1403 : vector<2x128xf32>
    %1405 = math.exp %1404 : vector<2x128xf32>
    %cst_252 = arith.constant 1.000000e+00 : f32
    %1406 = vector.broadcast %cst_252 : f32 to vector<2x128xf32>
    %1407 = arith.addf %1406, %1405 : vector<2x128xf32>
    %1408 = arith.divf %1406, %1407 : vector<2x128xf32>
    %1409 = vector.extract_strided_slice %1408 {offsets = [0, 0], sizes = [2, 32], strides = [1, 1]} : vector<2x128xf32> to vector<2x32xf32>
    %1410 = vector.extract_strided_slice %1408 {offsets = [0, 32], sizes = [2, 32], strides = [1, 1]} : vector<2x128xf32> to vector<2x32xf32>
    %1411 = vector.extract_strided_slice %1408 {offsets = [0, 96], sizes = [2, 32], strides = [1, 1]} : vector<2x128xf32> to vector<2x32xf32>
    %1412 = vector.extract_strided_slice %1403 {offsets = [0, 64], sizes = [2, 32], strides = [1, 1]} : vector<2x128xf32> to vector<2x32xf32>
    %1413 = math.tanh %1412 : vector<2x32xf32>
    %1414 = arith.mulf %1410, %1313 : vector<2x32xf32>
    %1415 = arith.mulf %1409, %1413 : vector<2x32xf32>
    %1416 = arith.addf %1414, %1415 : vector<2x32xf32>
    %1417 = math.tanh %1416 : vector<2x32xf32>
    %1418 = arith.mulf %1411, %1417 : vector<2x32xf32>
    %1419 = vector.extract_strided_slice %6 {offsets = [0, 24], sizes = [2, 4], strides = [1, 1]} : vector<2x32xf32> to vector<2x4xf32>
    %1420 = vector.extract_strided_slice %7 {offsets = [0, 24], sizes = [2, 4], strides = [1, 1]} : vector<2x32xf32> to vector<2x4xf32>
    %1421 = vector.extract_strided_slice %9 {offsets = [0, 24], sizes = [2, 4], strides = [1, 1]} : vector<2x32xf32> to vector<2x4xf32>
    %1422 = arith.mulf %1418, %468 : vector<2x32xf32>
    %1423 = arith.truncf %1422 : vector<2x32xf32> to vector<2x32xbf16>
    %cst_253 = arith.constant dense<0.000000e+00> : vector<2x132xf32>
    %1424 = tpu.matmul %1423, %12, %cst_253 {dimension_numbers = #tpu.dot_dimension_numbers<[1], [0], [0], [1], [0, 0, 1, 1], [], []>} : vector<2x32xbf16>, vector<32x132xbf16>, vector<2x132xf32> -> vector<2x132xf32>
    %1425 = vector.extract_strided_slice %1424 {offsets = [0, 0], sizes = [2, 128], strides = [1, 1]} : vector<2x132xf32> to vector<2x128xf32>
    %1426 = vector.extract_strided_slice %1424 {offsets = [0, 128], sizes = [2, 4], strides = [1, 1]} : vector<2x132xf32> to vector<2x4xf32>
    %1427 = vector.broadcast %13 : vector<1x4xf32> to vector<2x4xf32>
    %1428 = arith.addf %1426, %1427 : vector<2x4xf32>
    %1429 = arith.negf %1428 : vector<2x4xf32>
    %1430 = math.exp %1429 : vector<2x4xf32>
    %cst_254 = arith.constant 1.000000e+00 : f32
    %1431 = vector.broadcast %cst_254 : f32 to vector<2x4xf32>
    %1432 = arith.addf %1431, %1430 : vector<2x4xf32>
    %1433 = arith.divf %1431, %1432 : vector<2x4xf32>
    %1434 = arith.mulf %1421, %1433 : vector<2x4xf32>
    %1435 = arith.addf %1420, %1434 : vector<2x4xf32>
    %1436 = vector.extract_strided_slice %1435 {offsets = [0, 0], sizes = [2, 1], strides = [1, 1]} : vector<2x4xf32> to vector<2x1xf32>
    %1437 = vector.extract_strided_slice %14 {offsets = [0, 0], sizes = [1, 4], strides = [1, 1]} : vector<4x4xf32> to vector<1x4xf32>
    %1438 = vector.broadcast %1436 : vector<2x1xf32> to vector<2x4xf32>
    %1439 = vector.broadcast %1437 : vector<1x4xf32> to vector<2x4xf32>
    %1440 = arith.mulf %1438, %1439 : vector<2x4xf32>
    %1441 = vector.broadcast %15 : vector<1x4xf32> to vector<2x4xf32>
    %1442 = arith.addf %1441, %1440 : vector<2x4xf32>
    %1443 = vector.extract_strided_slice %1435 {offsets = [0, 1], sizes = [2, 1], strides = [1, 1]} : vector<2x4xf32> to vector<2x1xf32>
    %1444 = vector.extract_strided_slice %14 {offsets = [1, 0], sizes = [1, 4], strides = [1, 1]} : vector<4x4xf32> to vector<1x4xf32>
    %1445 = vector.broadcast %1443 : vector<2x1xf32> to vector<2x4xf32>
    %1446 = vector.broadcast %1444 : vector<1x4xf32> to vector<2x4xf32>
    %1447 = arith.mulf %1445, %1446 : vector<2x4xf32>
    %1448 = arith.addf %1442, %1447 : vector<2x4xf32>
    %1449 = vector.extract_strided_slice %1435 {offsets = [0, 2], sizes = [2, 1], strides = [1, 1]} : vector<2x4xf32> to vector<2x1xf32>
    %1450 = vector.extract_strided_slice %14 {offsets = [2, 0], sizes = [1, 4], strides = [1, 1]} : vector<4x4xf32> to vector<1x4xf32>
    %1451 = vector.broadcast %1449 : vector<2x1xf32> to vector<2x4xf32>
    %1452 = vector.broadcast %1450 : vector<1x4xf32> to vector<2x4xf32>
    %1453 = arith.mulf %1451, %1452 : vector<2x4xf32>
    %1454 = arith.addf %1448, %1453 : vector<2x4xf32>
    %1455 = vector.extract_strided_slice %1435 {offsets = [0, 3], sizes = [2, 1], strides = [1, 1]} : vector<2x4xf32> to vector<2x1xf32>
    %1456 = vector.extract_strided_slice %14 {offsets = [3, 0], sizes = [1, 4], strides = [1, 1]} : vector<4x4xf32> to vector<1x4xf32>
    %1457 = vector.broadcast %1455 : vector<2x1xf32> to vector<2x4xf32>
    %1458 = vector.broadcast %1456 : vector<1x4xf32> to vector<2x4xf32>
    %1459 = arith.mulf %1457, %1458 : vector<2x4xf32>
    %1460 = arith.addf %1454, %1459 : vector<2x4xf32>
    %1461 = arith.negf %1460 : vector<2x4xf32>
    %1462 = math.exp %1461 : vector<2x4xf32>
    %cst_255 = arith.constant 1.000000e+00 : f32
    %1463 = vector.broadcast %cst_255 : f32 to vector<2x4xf32>
    %1464 = arith.addf %1463, %1462 : vector<2x4xf32>
    %1465 = arith.divf %1463, %1464 : vector<2x4xf32>
    %1466 = arith.subf %1419, %1433 : vector<2x4xf32>
    %1467 = math.absf %1466 : vector<2x4xf32>
    %1468 = arith.subf %1419, %1465 : vector<2x4xf32>
    %1469 = math.absf %1468 : vector<2x4xf32>
    %1470 = arith.addf %1467, %1469 : vector<2x4xf32>
    %1471 = arith.mulf %1470, %788 : vector<2x4xf32>
    %1472 = arith.addf %1369, %1471 : vector<2x4xf32>
    %cst_256 = arith.constant 5.000000e-01 : f32
    %1473 = vector.broadcast %cst_256 : f32 to vector<2x4xf32>
    %1474 = arith.mulf %1473, %1465 : vector<2x4xf32>
    %cst_257 = arith.constant 5.000000e-01 : f32
    %1475 = vector.broadcast %cst_257 : f32 to vector<2x4xf32>
    %1476 = arith.mulf %1475, %1433 : vector<2x4xf32>
    %1477 = arith.addf %1474, %1476 : vector<2x4xf32>
    %1478 = math.absf %1477 : vector<2x4xf32>
    %1479 = arith.mulf %1421, %1478 : vector<2x4xf32>
    %1480 = arith.addf %1420, %1479 : vector<2x4xf32>
    %c0_258 = arith.constant 0 : index
    %c24 = arith.constant 24 : index
    %1481 = vector.load %arg10[%c0_258, %c24] : memref<2x32xf32, #tpu.memory_space<vmem>>, vector<2x4xf32>
    tpu.vector_store %arg10[%c0_258, %c24], %1480 {strides = array<i32>} : memref<2x32xf32, #tpu.memory_space<vmem>>, vector<2x4xf32>,
    %1482 = arith.addf %1425, %779 : vector<2x128xf32>
    %1483 = vector.extract_strided_slice %1480 {offsets = [0, 0], sizes = [2, 1], strides = [1, 1]} : vector<2x4xf32> to vector<2x1xf32>
    %1484 = vector.extract_strided_slice %16 {offsets = [0, 0], sizes = [1, 128], strides = [1, 1]} : vector<4x128xf32> to vector<1x128xf32>
    %1485 = vector.broadcast %1483 : vector<2x1xf32> to vector<2x128xf32>
    %1486 = vector.broadcast %1484 : vector<1x128xf32> to vector<2x128xf32>
    %1487 = arith.mulf %1485, %1486 : vector<2x128xf32>
    %1488 = arith.addf %1482, %1487 : vector<2x128xf32>
    %1489 = vector.extract_strided_slice %1480 {offsets = [0, 1], sizes = [2, 1], strides = [1, 1]} : vector<2x4xf32> to vector<2x1xf32>
    %1490 = vector.extract_strided_slice %16 {offsets = [1, 0], sizes = [1, 128], strides = [1, 1]} : vector<4x128xf32> to vector<1x128xf32>
    %1491 = vector.broadcast %1489 : vector<2x1xf32> to vector<2x128xf32>
    %1492 = vector.broadcast %1490 : vector<1x128xf32> to vector<2x128xf32>
    %1493 = arith.mulf %1491, %1492 : vector<2x128xf32>
    %1494 = arith.addf %1488, %1493 : vector<2x128xf32>
    %1495 = vector.extract_strided_slice %1480 {offsets = [0, 2], sizes = [2, 1], strides = [1, 1]} : vector<2x4xf32> to vector<2x1xf32>
    %1496 = vector.extract_strided_slice %16 {offsets = [2, 0], sizes = [1, 128], strides = [1, 1]} : vector<4x128xf32> to vector<1x128xf32>
    %1497 = vector.broadcast %1495 : vector<2x1xf32> to vector<2x128xf32>
    %1498 = vector.broadcast %1496 : vector<1x128xf32> to vector<2x128xf32>
    %1499 = arith.mulf %1497, %1498 : vector<2x128xf32>
    %1500 = arith.addf %1494, %1499 : vector<2x128xf32>
    %1501 = vector.extract_strided_slice %1480 {offsets = [0, 3], sizes = [2, 1], strides = [1, 1]} : vector<2x4xf32> to vector<2x1xf32>
    %1502 = vector.extract_strided_slice %16 {offsets = [3, 0], sizes = [1, 128], strides = [1, 1]} : vector<4x128xf32> to vector<1x128xf32>
    %1503 = vector.broadcast %1501 : vector<2x1xf32> to vector<2x128xf32>
    %1504 = vector.broadcast %1502 : vector<1x128xf32> to vector<2x128xf32>
    %1505 = arith.mulf %1503, %1504 : vector<2x128xf32>
    %1506 = arith.addf %1500, %1505 : vector<2x128xf32>
    %1507 = arith.negf %1506 : vector<2x128xf32>
    %1508 = math.exp %1507 : vector<2x128xf32>
    %cst_259 = arith.constant 1.000000e+00 : f32
    %1509 = vector.broadcast %cst_259 : f32 to vector<2x128xf32>
    %1510 = arith.addf %1509, %1508 : vector<2x128xf32>
    %1511 = arith.divf %1509, %1510 : vector<2x128xf32>
    %1512 = vector.extract_strided_slice %1511 {offsets = [0, 0], sizes = [2, 32], strides = [1, 1]} : vector<2x128xf32> to vector<2x32xf32>
    %1513 = vector.extract_strided_slice %1511 {offsets = [0, 32], sizes = [2, 32], strides = [1, 1]} : vector<2x128xf32> to vector<2x32xf32>
    %1514 = vector.extract_strided_slice %1511 {offsets = [0, 96], sizes = [2, 32], strides = [1, 1]} : vector<2x128xf32> to vector<2x32xf32>
    %1515 = vector.extract_strided_slice %1506 {offsets = [0, 64], sizes = [2, 32], strides = [1, 1]} : vector<2x128xf32> to vector<2x32xf32>
    %1516 = math.tanh %1515 : vector<2x32xf32>
    %1517 = arith.mulf %1513, %1416 : vector<2x32xf32>
    %1518 = arith.mulf %1512, %1516 : vector<2x32xf32>
    %1519 = arith.addf %1517, %1518 : vector<2x32xf32>
    %1520 = math.tanh %1519 : vector<2x32xf32>
    %1521 = arith.mulf %1514, %1520 : vector<2x32xf32>
    %1522 = vector.extract_strided_slice %6 {offsets = [0, 28], sizes = [2, 4], strides = [1, 1]} : vector<2x32xf32> to vector<2x4xf32>
    %1523 = vector.extract_strided_slice %7 {offsets = [0, 28], sizes = [2, 4], strides = [1, 1]} : vector<2x32xf32> to vector<2x4xf32>
    %1524 = vector.extract_strided_slice %9 {offsets = [0, 28], sizes = [2, 4], strides = [1, 1]} : vector<2x32xf32> to vector<2x4xf32>
    %1525 = arith.mulf %1521, %543 : vector<2x32xf32>
    %1526 = arith.truncf %1525 : vector<2x32xf32> to vector<2x32xbf16>
    %cst_260 = arith.constant dense<0.000000e+00> : vector<2x132xf32>
    %1527 = tpu.matmul %1526, %12, %cst_260 {dimension_numbers = #tpu.dot_dimension_numbers<[1], [0], [0], [1], [0, 0, 1, 1], [], []>} : vector<2x32xbf16>, vector<32x132xbf16>, vector<2x132xf32> -> vector<2x132xf32>
    %1528 = vector.extract_strided_slice %1527 {offsets = [0, 128], sizes = [2, 4], strides = [1, 1]} : vector<2x132xf32> to vector<2x4xf32>
    %1529 = vector.broadcast %13 : vector<1x4xf32> to vector<2x4xf32>
    %1530 = arith.addf %1528, %1529 : vector<2x4xf32>
    %1531 = arith.negf %1530 : vector<2x4xf32>
    %1532 = math.exp %1531 : vector<2x4xf32>
    %cst_261 = arith.constant 1.000000e+00 : f32
    %1533 = vector.broadcast %cst_261 : f32 to vector<2x4xf32>
    %1534 = arith.addf %1533, %1532 : vector<2x4xf32>
    %1535 = arith.divf %1533, %1534 : vector<2x4xf32>
    %1536 = arith.mulf %1524, %1535 : vector<2x4xf32>
    %1537 = arith.addf %1523, %1536 : vector<2x4xf32>
    %1538 = vector.extract_strided_slice %1537 {offsets = [0, 0], sizes = [2, 1], strides = [1, 1]} : vector<2x4xf32> to vector<2x1xf32>
    %1539 = vector.extract_strided_slice %14 {offsets = [0, 0], sizes = [1, 4], strides = [1, 1]} : vector<4x4xf32> to vector<1x4xf32>
    %1540 = vector.broadcast %1538 : vector<2x1xf32> to vector<2x4xf32>
    %1541 = vector.broadcast %1539 : vector<1x4xf32> to vector<2x4xf32>
    %1542 = arith.mulf %1540, %1541 : vector<2x4xf32>
    %1543 = vector.broadcast %15 : vector<1x4xf32> to vector<2x4xf32>
    %1544 = arith.addf %1543, %1542 : vector<2x4xf32>
    %1545 = vector.extract_strided_slice %1537 {offsets = [0, 1], sizes = [2, 1], strides = [1, 1]} : vector<2x4xf32> to vector<2x1xf32>
    %1546 = vector.extract_strided_slice %14 {offsets = [1, 0], sizes = [1, 4], strides = [1, 1]} : vector<4x4xf32> to vector<1x4xf32>
    %1547 = vector.broadcast %1545 : vector<2x1xf32> to vector<2x4xf32>
    %1548 = vector.broadcast %1546 : vector<1x4xf32> to vector<2x4xf32>
    %1549 = arith.mulf %1547, %1548 : vector<2x4xf32>
    %1550 = arith.addf %1544, %1549 : vector<2x4xf32>
    %1551 = vector.extract_strided_slice %1537 {offsets = [0, 2], sizes = [2, 1], strides = [1, 1]} : vector<2x4xf32> to vector<2x1xf32>
    %1552 = vector.extract_strided_slice %14 {offsets = [2, 0], sizes = [1, 4], strides = [1, 1]} : vector<4x4xf32> to vector<1x4xf32>
    %1553 = vector.broadcast %1551 : vector<2x1xf32> to vector<2x4xf32>
    %1554 = vector.broadcast %1552 : vector<1x4xf32> to vector<2x4xf32>
    %1555 = arith.mulf %1553, %1554 : vector<2x4xf32>
    %1556 = arith.addf %1550, %1555 : vector<2x4xf32>
    %1557 = vector.extract_strided_slice %1537 {offsets = [0, 3], sizes = [2, 1], strides = [1, 1]} : vector<2x4xf32> to vector<2x1xf32>
    %1558 = vector.extract_strided_slice %14 {offsets = [3, 0], sizes = [1, 4], strides = [1, 1]} : vector<4x4xf32> to vector<1x4xf32>
    %1559 = vector.broadcast %1557 : vector<2x1xf32> to vector<2x4xf32>
    %1560 = vector.broadcast %1558 : vector<1x4xf32> to vector<2x4xf32>
    %1561 = arith.mulf %1559, %1560 : vector<2x4xf32>
    %1562 = arith.addf %1556, %1561 : vector<2x4xf32>
    %1563 = arith.negf %1562 : vector<2x4xf32>
    %1564 = math.exp %1563 : vector<2x4xf32>
    %cst_262 = arith.constant 1.000000e+00 : f32
    %1565 = vector.broadcast %cst_262 : f32 to vector<2x4xf32>
    %1566 = arith.addf %1565, %1564 : vector<2x4xf32>
    %1567 = arith.divf %1565, %1566 : vector<2x4xf32>
    %1568 = arith.subf %1522, %1535 : vector<2x4xf32>
    %1569 = math.absf %1568 : vector<2x4xf32>
    %1570 = arith.subf %1522, %1567 : vector<2x4xf32>
    %1571 = math.absf %1570 : vector<2x4xf32>
    %1572 = arith.addf %1569, %1571 : vector<2x4xf32>
    %1573 = arith.mulf %1572, %798 : vector<2x4xf32>
    %1574 = arith.addf %1472, %1573 : vector<2x4xf32>
    %cst_263 = arith.constant 5.000000e-01 : f32
    %1575 = vector.broadcast %cst_263 : f32 to vector<2x4xf32>
    %1576 = arith.mulf %1575, %1567 : vector<2x4xf32>
    %cst_264 = arith.constant 5.000000e-01 : f32
    %1577 = vector.broadcast %cst_264 : f32 to vector<2x4xf32>
    %1578 = arith.mulf %1577, %1535 : vector<2x4xf32>
    %1579 = arith.addf %1576, %1578 : vector<2x4xf32>
    %1580 = math.absf %1579 : vector<2x4xf32>
    %1581 = arith.mulf %1524, %1580 : vector<2x4xf32>
    %1582 = arith.addf %1523, %1581 : vector<2x4xf32>
    %c0_265 = arith.constant 0 : index
    %c28 = arith.constant 28 : index
    %1583 = vector.load %arg10[%c0_265, %c28] : memref<2x32xf32, #tpu.memory_space<vmem>>, vector<2x4xf32>
    tpu.vector_store %arg10[%c0_265, %c28], %1582 {strides = array<i32>} : memref<2x32xf32, #tpu.memory_space<vmem>>, vector<2x4xf32>,
    %cst_266 = arith.constant dense<0.000000e+00> : vector<2xf32>
    %1584 = vector.multi_reduction <add>, %1574, %cst_266 [1] : vector<2x4xf32> to vector<2xf32>
    %1585 = vector.shape_cast %1584 : vector<2xf32> to vector<2x1xf32>
    %cst_267 = arith.constant dense<0.000000e+00> : vector<1xf32>
    %1586 = vector.multi_reduction <add>, %1585, %cst_267 [0] : vector<2x1xf32> to vector<1xf32>
    %1587 = vector.shape_cast %1586 : vector<1xf32> to vector<1x1xf32>
    %cst_268 = arith.constant 1.000000e+00 : f32
    %1588 = vector.broadcast %cst_268 : f32 to vector<1x1xf32>
    %1589 = arith.mulf %1587, %1588 : vector<1x1xf32>
    %c0_269 = arith.constant 0 : index
    %c0_270 = arith.constant 0 : index
    %1590 = vector.load %arg11[%c0_269, %c0_270] : memref<1x1xf32, #tpu.memory_space<vmem>>, vector<1x1xf32>
    tpu.vector_store %arg11[%c0_269, %c0_270], %1589 {strides = array<i32>} : memref<1x1xf32, #tpu.memory_space<vmem>>, vector<1x1xf32>,
    return
  }
}

</mosaic_0001>

<bundles_post_ra>
// kernel: _lambda_.1
= control target key start
LH: loop header
LB: loop body
LE: loop exit
PB: predicated region body
PF: predicated region fallthrough
CT: control target
= control target key end

     0   :  { %17 = vsyncpa [#allocation3], 0  ;;  %s3493_s0 = inlined_call_operand.vmem [shape: f32[2,32], index: 0, kind: input, shape index: {}]   ;;  %s3494_s1 = inlined_call_operand.vmem [shape: f32[4,32], index: 1, kind: input, shape index: {}]   ;;  %s3495_s2 = inlined_call_operand.vmem [shape: f32[1,32], index: 2, kind: input, shape index: {}]   ;;  %s3496_s3 = inlined_call_operand.vmem [shape: bf16[32,132], index: 3, kind: input, shape index: {}]   ;;  %s3497_s4 = inlined_call_operand.vmem [shape: f32[1,4], index: 4, kind: input, shape index: {}]   ;;  %s3498_s5 = inlined_call_operand.vmem [shape: f32[4,4], index: 5, kind: input, shape index: {}]   ;;  %s3499_s6 = inlined_call_operand.vmem [shape: f32[1,4], index: 6, kind: input, shape index: {}]   ;;  %s3500_s7 = inlined_call_operand.vmem [shape: f32[4,128], index: 7, kind: input, shape index: {}]   ;;  %s3501_s8 = inlined_call_operand.hbm [shape: f32[4,128], index: 8, kind: input, shape index: {}]   ;;  %s3502_s9 = inlined_call_operand.hbm [shape: f32[1,128], index: 9, kind: input, shape index: {}]   ;;  %s3503_s10 = inlined_call_operand.vmem [shape: f32[2,32], index: 10, kind: output, shape index: {0}]   ;;  %s3504_s11 = inlined_call_operand.hbm [shape: f32[1,1], index: 11, kind: output, shape index: {1}]  }
   0x1   :  { %18 = vsyncpa [#allocation6], 0 }
   0x2   :  { %19 = vsyncpa [#allocation4], 0  ;;  %s41_s19 = sshll.u32 %s3501_s8, 4  ;;  %s2622_s20 = smov [#allocation2]   ;;  %s42_s19 = int_to_ptr.hbm [resolvable:$true] %s41_s19 }
   0x3   :  { %s43_s21 = sshll.u32 %s2622_s20, 4  ;;  %s52_s24 = sshll.u32 %s3502_s9, 4  ;;  %s44_s21 = int_to_ptr.vmem [resolvable:$true] %s43_s21  ;;  %s53_s24 = int_to_ptr.hbm [resolvable:$true] %s52_s24 }
   0x4   :  { %46 = dma.hbm_to_vmem [thread:$0]  %s42_s19, 64, %s44_s21, [#allocation3]  }
   0x5   :  { %s2623_s25 = smov [#allocation5]  }
   0x6   :  { %s54_s26 = sshll.u32 %s2623_s25, 4  ;;  %s55_s26 = int_to_ptr.vmem [resolvable:$true] %s54_s26 }
   0x7   :  { %57 = dma.hbm_to_vmem [thread:$0]  %s53_s24, 16, %s55_s26, [#allocation6]  }
   0x8   :  { %2616 = dma.done.wait [#allocation3], 64  }
   0x9   :  { %2617 = vsyncadd [#allocation3], 4294967232 }
   0xa   :  { %2618 = dma.done.wait [#allocation6], 16  }
   0xb   :  { %2619 = vsyncadd [#allocation6], 4294967280  ;;  %v2624_v0 = vmov 0   ;;  %v2229_v1 = vld [vmem:[%s3496_s3 + $0x14] sm:$0xf]  ;;  %v2625_v8 = vmov 1.0  }
   0xc   :  { %2288 = vset.pattern.permute.xlu0 %v2624_v0  ;;  %2292 = vset.pattern.permute.xlu2 %v2624_v0  ;;  %v2187_v2 = vld [vmem:[%s3496_s3 + $0x18] sm:$0xf0]  ;;  %v2227_v3 = vld [vmem:[%s3496_s3 + $0x4] sm:$0xf]  ;;  %v2179_v5 = vld [vmem:[%s3496_s3 + $0x8] sm:$0xf0] }
   0xd   :  { %v2756_v4 = vor.u32 %v2229_v1, %v2187_v2  ;;  %v67_v6 = vld [vmem:[%s3493_s0] sm:$0x3]  ;;  %v2765_v7 = vor.u32 %v2227_v3, %v2179_v5  ;;  %v2626_v10 = vmov 0.0   ;;  %s2627_s16 = smov 121   ;;  %v2628_v12 = vmov 2   ;;  %s2632_s26 = smov 125  }
   0xe   :  { %vm68_vm0 = vcmp.ne.f32.partialorder %v67_v6, %v67_v6  ;;  %2290 = vset.pattern.permute.xlu1 %v2628_v12  ;;  %v2788_v13 = vld [vmem:[%s3497_s4] ss:$0 sm:$0xff]  ;;  %v2185_v20 = vld [vmem:[%s3496_s3 + $0x10] sm:$0xf]  ;;  %v2230_v21 = vld [vmem:[%s3496_s3 + $0x14] sm:$0xf0] }
   0xf   :  { %667 = vmatpush.bf16.msra.mxu1 %v2756_v4  ;;  %v2768_v9 = vsel %vm68_vm0, 0.0, %v2625_v8  ;;  %862 = vmatpush.bf16.msra.mxu3 %v2756_v4  ;;  %v2797_v22 = vor.u32 %v2230_v21, %v2185_v20  ;;  %v2177_v23 = vld [vmem:[%s3496_s3] sm:$0xf]  ;;  %v2228_v24 = vld [vmem:[%s3496_s3 + $0x4] sm:$0xf0]  ;;  %v2818_v32 = vsel %vm68_vm0, 0.0, %v67_v6 }
  0x10   :  { %vm86_vm1 = vcmp.eq.f32.partialorder %v2768_v9, 1.0  ;;  %v2806_v25 = vor.u32 %v2228_v24, %v2177_v23  ;;  %v2821_v33 = vsub.f32 1.0, %v2768_v9  ;;  %vm85_vm5 = vcmp.eq.f32.partialorder %v2768_v9, 0.0  ;;  %s2629_s3 = smov 1   ;;  %v80_v46 = vld [vmem:[%s3498_s5] sm:$0xf] }
  0x11   :  { %v2772_v11 = vsel %vm86_vm1, 1.0, %v2626_v10  ;;  %654 = vmatpush.bf16.msra.mxu0 %v2797_v22  ;;  %849 = vmatpush.bf16.msra.mxu2 %v2797_v22  ;;  %v2826_v37 = vmul.f32 %v2818_v32, %v2768_v9  ;;  %v2630_v44 = vmov 3   ;;  %v2631_v45 = vmov 1   ;;  %v2862_v51 = vld [vmem:[%s3499_s6] ss:$0 sm:$0xff]  ;;  %s2634_s13 = smov 32  }
  0x12   :  { %89 = vrot.lane.b32.xlu2 %v2772_v11, %s2627_s16  ;;  %v2857_v50 = vperm.slane %v80_v46, 0  ;;  %v2865_v53 = vperm.slane %v80_v46, 1  ;;  %v2867_v55 = vperm.slane %v80_v46, 2  ;;  %v2870_v58 = vperm.slane %v80_v46, 3  ;;  %s2636_s17 = smov 4   ;;  %s2641_s20 = smov 8  }
  0x13   :  { %668 = vmatpush.bf16.msra.mxu1 %v2765_v7  ;;  %863 = vmatpush.bf16.msra.mxu3 %v2765_v7  ;;  %vm353_vm11 = vcmask 25600   ;;  %vm644_vm0 = vcmask 261120   ;;  %s2646_s25 = smov 12   ;;  %s2651_s5 = smov 16  }
  0x14   :  { %s2656_s12 = smov 20   ;;  %s2667_s24 = smov 116  }
  0x15   :  { %655 = vmatpush.bf16.msra.mxu0 %v2806_v25  ;;  %850 = vmatpush.bf16.msra.mxu2 %v2806_v25  ;;  %s2673_s8 = smov 28   ;;  %s2162_s28 = sshll.u32 %s3504_s11, 4  ;;  %s2163_s28 = int_to_ptr.hbm [resolvable:$true] %s2162_s28 }
  0x16   :  { %669 = vmatmul.bf16.vlgmr.msra.gmra.mxu1 %v2624_v0 }
  0x17   :  { %1060 = vmatpush.bf16.msrb.mxu1 %v2756_v4  ;;  %1258 = vmatpush.bf16.msrb.mxu3 %v2756_v4 }
  0x18   :  { %656 = vmatmul.bf16.vlgmr.msra.gmra.mxu0 %v2624_v0 }
  0x19   :  { %1047 = vmatpush.bf16.msrb.mxu0 %v2797_v22  ;;  %1245 = vmatpush.bf16.msrb.mxu2 %v2797_v22 }
  0x1b   :  { %1061 = vmatpush.bf16.msrb.mxu1 %v2765_v7  ;;  %1259 = vmatpush.bf16.msrb.mxu3 %v2765_v7 }
  0x1d   :  { %1048 = vmatpush.bf16.msrb.mxu0 %v2806_v25  ;;  %1246 = vmatpush.bf16.msrb.mxu2 %v2806_v25 }
  0x1f   :  { %1456 = vmatpush.bf16.msra.mxu1 %v2756_v4 }
  0x21   :  { %1443 = vmatpush.bf16.msra.mxu0 %v2797_v22 }
  0x23   :  { %1457 = vmatpush.bf16.msra.mxu1 %v2765_v7 }
  0x25   :  { %1444 = vmatpush.bf16.msra.mxu0 %v2806_v25 }
  0x6c   :  { %v90_v36 = vpop.permute.xlu2 %89 }
  0x6d   :  { %v2830_v39 = vsel %vm85_vm5, 1.0, %v90_v36 }
  0x6e   :  { %v104_v41 = vadd.f32 1.0, %v2830_v39 }
  0x70   :  { %106 = vrot.lane.b32.xlu2 %v104_v41, %s2629_s3 }
  0x78   :  { %323 = vperm.xlu2 %2292, %v2768_v9  }
  0x80   :  { %2294 = vset.pattern.permute.xlu2 %v2630_v44 }
  0x81   :  { %347 = vperm.xlu2 %2294, %v2768_v9  }
  0x89   :  { %2297 = vset.pattern.permute.xlu2 %v2628_v12 }
  0x93   :  { %v670_v14 = vpop.f32.mrf.mxu1 }
  0x94   :  { %v677_v15 = vadd.f32 %v2788_v13, %v670_v14 }
  0x95   :  { %v2855_v47 = vpop.f32.mrf.mxu0 }
  0x96   :  { %v2191_v16 = vmul.f32 -1.442695, %v677_v15 }
  0x98   :  { %2386 = vpow2.f32 %v2191_v16 }
  0x9b   :  { %v672_v17 = vpop.f32.mrf.mxu1 }
  0x9d   :  { %v659_v54 = vpop.f32.mrf.mxu0 }
  0x9e   :  { %v2387_v18 = vpop.eup %2386 }
  0x9f   :  { %v681_v19 = vadd.f32 1.0, %v2387_v18 }
  0xa1   :  { %2388 = vrcp.f32 %v681_v19  ;;  %v693_v29 = vand.u32 2147483648, %v681_v19  ;;  %v691_v31 = vand.u32 2147483647, %v681_v19  ;;  %vm687_vm3 = vweird.f32 %v681_v19 }
  0xa3   :  { %v694_v35 = vor.u32 1.1754944e-38, %v693_v29  ;;  %vm692_vm6 = vcmp.eq.f32.partialorder %v691_v31, 8.507059e+37 }
  0xa7   :  { %v2389_v26 = vpop.eup %2388 }
  0xa8   :  { %v683_v27 = vmul.f32 %v2389_v26, %v681_v19  ;;  %vm688_vm2 = vweird.f32 %v2389_v26 }
  0xa9   :  { %vm689_vm4 = vmor %vm687_vm3, %vm688_vm2 }
  0xaa   :  { %v684_v28 = vsub.f32 1.0, %v683_v27 }
  0xac   :  { %v685_v30 = vmul.f32 %v2389_v26, %v684_v28 }
  0xae   :  { %v686_v34 = vadd.f32 %v2389_v26, %v685_v30 }
  0xb0   :  { %v690_v38 = vsel %vm689_vm4, %v2389_v26, %v686_v34 }
  0xb1   :  { %v2833_v40 = vsel %vm692_vm6, %v694_v35, %v690_v38 }
  0xb2   :  { %v697_v42 = vmul.f32 %v2833_v40, %v2821_v33  ;;  %v750_v20 = vsub.f32 %v2818_v32, %v2833_v40  ;;  %v758_v23 = vmul.f32 0.5, %v2833_v40 }
  0xb4   :  { %v698_v43 = vadd.f32 %v697_v42, %v2826_v37  ;;  %v751_v28 = vand.u32 2147483647, %v750_v20 }
  0xb6   :  { %718 = vperm.xlu1 %2290, %v698_v43   ;;  %701 = vperm.xlu0 %2288, %v698_v43  }
  0xbe   :  { %2291 = vset.pattern.permute.xlu1 %v2630_v44  ;;  %2289 = vset.pattern.permute.xlu0 %v2631_v45 }
  0xbf   :  { %725 = vperm.xlu1 %2291, %v698_v43   ;;  %711 = vperm.xlu0 %2289, %v698_v43  }
  0xc7   :  { %109 = vrot.lane.b32.xlu1 %v2772_v11, %s2632_s26  ;;  %333 = vperm.xlu0 %2289, %v2768_v9   ;;  %s2671_s26 = smov 100  }
  0xc8   :  { %2293 = vset.pattern.permute.xlu1 %v2628_v12 }
  0xca   :  { %v107_v36 = vpop.permute.xlu2 %106 }
  0xcf   :  { %340 = vperm.xlu1 %2293, %v2768_v9   ;;  %2295 = vset.pattern.permute.xlu0 %v2624_v0 }
  0xd2   :  { %v324_v42 = vpop.permute.xlu2 %323 }
  0xd7   :  { %2296 = vset.pattern.permute.xlu1 %v2631_v45 }
  0xdb   :  { %v348_v43 = vpop.permute.xlu2 %347 }
 0x128   :  { %v702_v48 = vpop.permute.xlu0 %701  ;;  %v719_v49 = vpop.permute.xlu1 %718 }
 0x129   :  { %v705_v52 = vmul.f32 %v2857_v50, %v702_v48  ;;  %v722_v61 = vmul.f32 %v2867_v55, %v719_v49  ;;  %v83_v48 = vld [vmem:[#allocation2] sm:$0xf] }
 0x12a   :  { %v2902_v49 = vperm.slane %v83_v48, 0 }
 0x12b   :  { %v709_v57 = vadd.f32 %v2862_v51, %v705_v52  ;;  %v2904_v52 = vld [vmem:[#allocation5] ss:$0 sm:$0xff] }
 0x12c   :  { %v327_v54 = vmul.f32 %v2902_v49, %v324_v42 }
 0x131   :  { %v712_v56 = vpop.permute.xlu0 %711  ;;  %v726_v60 = vpop.permute.xlu1 %725 }
 0x132   :  { %v715_v59 = vmul.f32 %v2865_v53, %v712_v56  ;;  %v729_v63 = vmul.f32 %v2870_v58, %v726_v60  ;;  %v2907_v56 = vperm.slane %v83_v48, 1  ;;  %v331_v60 = vadd.f32 %v2904_v52, %v327_v54 }
 0x134   :  { %v716_v62 = vadd.f32 %v715_v59, %v709_v57 }
 0x136   :  { %v723_v1 = vadd.f32 %v722_v61, %v716_v62 }
 0x138   :  { %v730_v2 = vadd.f32 %v729_v63, %v723_v1  ;;  %v2921_v63 = vperm.slane %v83_v48, 3 }
 0x139   :  { %v2883_v38 = vpop.permute.xlu1 %109 }
 0x13a   :  { %v2192_v3 = vmul.f32 -1.442695, %v730_v2  ;;  %v2892_v40 = vsel %vm85_vm5, %v107_v36, %v2883_v38 }
 0x13b   :  { %v121_v41 = vadd.f32 1.0, %v2892_v40 }
 0x13c   :  { %2390 = vpow2.f32 %v2192_v3  ;;  %v351_v3 = vmul.f32 %v2921_v63, %v348_v43 }
 0x141   :  { %v341_v59 = vpop.permute.xlu1 %340 }
 0x142   :  { %v2391_v5 = vpop.eup %2390 }
 0x143   :  { %v734_v6 = vadd.f32 1.0, %v2391_v5  ;;  %v82_v5 = vld [vmem:[%s3500_s7] sm:$0xf]  ;;  %s2633_s7 = smov 64  }
 0x145   :  { %2392 = vrcp.f32 %v734_v6  ;;  %v746_v14 = vand.u32 2147483648, %v734_v6  ;;  %v744_v16 = vand.u32 2147483647, %v734_v6  ;;  %vm740_vm8 = vweird.f32 %v734_v6 }
 0x147   :  { %v747_v18 = vor.u32 1.1754944e-38, %v746_v14  ;;  %vm745_vm10 = vcmp.eq.f32.partialorder %v744_v16, 8.507059e+37 }
 0x14b   :  { %v2393_v8 = vpop.eup %2392 }
 0x14c   :  { %v736_v10 = vmul.f32 %v2393_v8, %v734_v6  ;;  %vm741_vm7 = vweird.f32 %v2393_v8 }
 0x14d   :  { %vm742_vm9 = vmor %vm740_vm8, %vm741_vm7 }
 0x14e   :  { %v737_v11 = vsub.f32 1.0, %v736_v10  ;;  %v2930_v10 = vperm.slane %v82_v5, 1 }
 0x150   :  { %v738_v15 = vmul.f32 %v2393_v8, %v737_v11 }
 0x152   :  { %v739_v17 = vadd.f32 %v2393_v8, %v738_v15 }
 0x154   :  { %v743_v19 = vsel %vm742_vm9, %v2393_v8, %v739_v17  ;;  %v2928_v8 = vperm.slane %v82_v5, 0  ;;  %v2934_v17 = vperm.slane %v82_v5, 2  ;;  %vm964_vm9 = vcmask 58400  }
 0x155   :  { %v748_v21 = vsel %vm745_vm10, %v747_v18, %v743_v19 }
 0x156   :  { %v757_v24 = vmul.f32 0.5, %v748_v21  ;;  %v752_v26 = vsub.f32 %v2818_v32, %v748_v21  ;;  %v2937_v21 = vperm.slane %v82_v5, 3  ;;  %v2960_v5 = vld [vmem:[%s3495_s2] ss:$0 sm:$0xff] }
 0x158   :  { %v759_v27 = vadd.f32 %v758_v23, %v757_v24  ;;  %v753_v29 = vand.u32 2147483647, %v752_v26 }
 0x15a   :  { %v760_v30 = vand.u32 2147483647, %v759_v27  ;;  %v2879_v31 = vadd.f32 %v753_v29, %v751_v28 }
 0x15c   :  { %v761_v34 = vmul.f32 %v760_v30, %v2821_v33 }
 0x15e   :  { %v762_v35 = vadd.f32 %v761_v34, %v2826_v37 }
 0x160   :  { %781 = vperm.xlu2 %2297, %v762_v35   ;;  %774 = vperm.xlu1 %2296, %v762_v35   ;;  %763 = vst.msk [vmem:[%s3503_s10] sm:$0x3] %vm353_vm11, %v762_v35 }
 0x161   :  { %767 = vperm.xlu0 %2295, %v762_v35  }
 0x168   :  { %123 = vrot.lane.b32.xlu2 %v121_v41, %s2629_s3  ;;  %2298 = vset.pattern.permute.xlu1 %v2630_v44 }
 0x169   :  { %788 = vperm.xlu1 %2298, %v762_v35   ;;  %2299 = vset.pattern.permute.xlu2 %v2624_v0 }
 0x16a   :  { %2300 = vset.pattern.permute.xlu0 %v2631_v45  ;;  %v334_v45 = vpop.permute.xlu0 %333 }
 0x16b   :  { %v337_v61 = vmul.f32 %v2907_v56, %v334_v45 }
 0x16d   :  { %v338_v1 = vadd.f32 %v337_v61, %v331_v60  ;;  %v73_v61 = vld [vmem:[%s3494_s1] sm:$0xf]  ;;  %s2635_s1 = smov 96  }
 0x170   :  { %95 = vperm.xlu2 %2299, %v2830_v39  }
 0x171   :  { %2301 = vset.pattern.permute.xlu1 %v2628_v12 }
 0x178   :  { %2302 = vset.pattern.permute.xlu2 %v2630_v44  ;;  %v2914_v44 = vperm.slane %v83_v48, 2 }
 0x17a   :  { %v344_v62 = vmul.f32 %v2914_v44, %v341_v59 }
 0x17c   :  { %v345_v2 = vadd.f32 %v344_v62, %v338_v1  ;;  %v2953_v62 = vperm.slane %v73_v61, 0 }
 0x17e   :  { %v352_v6 = vadd.f32 %v351_v3, %v345_v2  ;;  %v2955_v2 = vperm.slane %v73_v61, 1 }
 0x180   :  { %v764_v15 = vadd.f32 %v2855_v47, %v352_v6 }
 0x1ba   :  { %v782_v46 = vpop.permute.xlu2 %781 }
 0x1bb   :  { %v785_v23 = vmul.f32 %v2934_v17, %v782_v46 }
 0x1c2   :  { %v124_v0 = vpop.permute.xlu2 %123 }
 0x1c3   :  { %v2912_v12 = vsel %vm85_vm5, %v124_v0, %v2883_v38 }
 0x1c4   :  { %v135_v57 = vadd.f32 1.0, %v2912_v12 }
 0x1c6   :  { %137 = vrot.lane.b32.xlu0 %v135_v57, %s2629_s3  ;;  %s2668_s3 = smov 112  }
 0x1ca   :  { %v96_v1 = vpop.permute.xlu2 %95 }
 0x1cb   :  { %v99_v6 = vmul.f32 %v2953_v62, %v96_v1 }
 0x1ce   :  { %115 = vperm.xlu0 %2300, %v2892_v40  }
 0x1d2   :  { %v775_v11 = vpop.permute.xlu1 %774 }
 0x1d3   :  { %v768_v14 = vpop.permute.xlu0 %767  ;;  %v778_v18 = vmul.f32 %v2930_v10, %v775_v11  ;;  %v2963_v11 = vperm.slane %v73_v61, 2 }
 0x1d4   :  { %v771_v16 = vmul.f32 %v2928_v8, %v768_v14 }
 0x1d6   :  { %v772_v19 = vadd.f32 %v771_v16, %v764_v15  ;;  %v103_v16 = vadd.f32 %v2960_v5, %v99_v6 }
 0x1d8   :  { %v779_v20 = vadd.f32 %v778_v18, %v772_v19  ;;  %v2968_v19 = vperm.slane %v73_v61, 3 }
 0x1da   :  { %v786_v26 = vadd.f32 %v785_v23, %v779_v20 }
 0x1db   :  { %v789_v24 = vpop.permute.xlu1 %788 }
 0x1dc   :  { %v792_v27 = vmul.f32 %v2937_v21, %v789_v24 }
 0x1de   :  { %v793_v28 = vadd.f32 %v792_v27, %v786_v26 }
 0x1e0   :  { %2394 = vtanh.f32 %v793_v28  ;;  %v2193_v47 = vmul.f32 -1.442695, %v793_v28 }
 0x1e2   :  { %2396 = vpow2.f32 %v2193_v47 }
 0x1e6   :  { %v2395_v29 = vpop.eup %2394 }
 0x1e7   :  { %816 = vrot.lane.b32.xlu1 %v2395_v29, %s2633_s7 }
 0x1e8   :  { %v2397_v30 = vpop.eup %2396 }
 0x1e9   :  { %v797_v35 = vadd.f32 1.0, %v2397_v30 }
 0x1eb   :  { %2398 = vrcp.f32 %v797_v35  ;;  %v809_v54 = vand.u32 2147483648, %v797_v35  ;;  %vm803_vm13 = vweird.f32 %v797_v35  ;;  %v807_v0 = vand.u32 2147483647, %v797_v35 }
 0x1ed   :  { %v810_v57 = vor.u32 1.1754944e-38, %v809_v54  ;;  %vm808_vm15 = vcmp.eq.f32.partialorder %v807_v0, 8.507059e+37 }
 0x1ef   :  { %129 = vperm.xlu1 %2301, %v2912_v12  }
 0x1f1   :  { %v2399_v41 = vpop.eup %2398 }
 0x1f2   :  { %v799_v42 = vmul.f32 %v2399_v41, %v797_v35  ;;  %vm804_vm12 = vweird.f32 %v2399_v41 }
 0x1f3   :  { %vm805_vm14 = vmor %vm803_vm13, %vm804_vm12 }
 0x1f4   :  { %v800_v43 = vsub.f32 1.0, %v799_v42 }
 0x1f6   :  { %v801_v46 = vmul.f32 %v2399_v41, %v800_v43 }
 0x1f8   :  { %v802_v48 = vadd.f32 %v2399_v41, %v801_v46 }
 0x1fa   :  { %v806_v45 = vsel %vm805_vm14, %v2399_v41, %v802_v48 }
 0x1fb   :  { %v811_v60 = vsel %vm808_vm15, %v810_v57, %v806_v45 }
 0x238   :  { %v138_v34 = vpop.permute.xlu0 %137 }
 0x239   :  { %v2946_v36 = vsel %vm85_vm5, %v138_v34, %v2883_v38  ;;  %v814_v34 = vmul.f32 0.0, %v811_v60 }
 0x23a   :  { %143 = vperm.xlu2 %2302, %v2946_v36  }
 0x240   :  { %v116_v3 = vpop.permute.xlu0 %115 }
 0x241   :  { %v119_v15 = vmul.f32 %v2955_v2, %v116_v3 }
 0x243   :  { %v120_v20 = vadd.f32 %v119_v15, %v103_v16 }
 0x259   :  { %v817_v59 = vpop.permute.xlu1 %816 }
 0x25a   :  { %v819_v38 = vmul.f32 %v817_v59, %v811_v60 }
 0x25c   :  { %821 = vrot.lane.b32.xlu1 %v819_v38, %s2634_s13 }
 0x261   :  { %v130_v14 = vpop.permute.xlu1 %129 }
 0x262   :  { %v133_v18 = vmul.f32 %v2963_v11, %v130_v14 }
 0x264   :  { %v134_v24 = vadd.f32 %v133_v18, %v120_v20 }
 0x294   :  { %v144_v23 = vpop.permute.xlu2 %143 }
 0x295   :  { %v147_v26 = vmul.f32 %v2968_v19, %v144_v23 }
 0x297   :  { %v148_v27 = vadd.f32 %v147_v26, %v134_v24 }
 0x299   :  { %v149_v28 = vmax.f32 %v148_v27, 0.0 }
 0x29b   :  { %v150_v29 = vsub.f32 0.0, %v149_v28 }
 0x29d   :  { %v151_v47 = vmul.f32 1.442695, %v150_v29  ;;  %v2637_v29 = vmov 4  }
 0x29e   :  { %2303 = vset.pattern.permute.xlu0 %v2637_v29 }
 0x29f   :  { %2400 = vpow2.f32 %v151_v47  ;;  %v2638_v47 = vmov 5  }
 0x2a0   :  { %2304 = vset.pattern.permute.xlu1 %v2638_v47 }
 0x2a5   :  { %v2401_v30 = vpop.eup %2400 }
 0x2a6   :  { %832 = vrot.lane.b32.xlu0 %v2401_v30, %s2635_s1  ;;  %v2639_v30 = vmov 6  }
 0x2a7   :  { %2305 = vset.pattern.permute.xlu2 %v2639_v30 }
 0x2ce   :  { %v822_v35 = vpop.permute.xlu1 %821 }
 0x2cf   :  { %v2972_v41 = vadd.f32 %v822_v35, %v814_v34 }
 0x2d1   :  { %2402 = vtanh.f32 %v2972_v41 }
 0x2d7   :  { %v2403_v42 = vpop.eup %2402 }
 0x2d8   :  { %827 = vrot.lane.b32.xlu2 %v2403_v42, %s2633_s7 }
 0x318   :  { %v833_v48 = vpop.permute.xlu0 %832 }
 0x332   :  { %v828_v43 = vpop.permute.xlu2 %827 }
 0x333   :  { %v830_v46 = vmul.f32 %v828_v43, %v811_v60  ;;  %v2640_v43 = vmov 7  }
 0x335   :  { %v835_v54 = vmul.f32 %v833_v48, %v830_v46 }
 0x337   :  { %v836_v0 = vpack.c.bf16 %v835_v54, %v835_v54 }
 0x339   :  { %838 = vrot.lane.b32.xlu1 %v836_v0, %s2634_s13 }
 0x3ab   :  { %v839_v45 = vpop.permute.xlu1 %838 }
 0x3ac   :  { %2194 = vmatmul.msk.bf16.vlgmr.msra.gmra.mxu2 %vm644_vm0, %v839_v45  ;;  %2195 = vmatmul.msk.bf16.vlgmr.msra.gmra.mxu3 %vm644_vm0, %v839_v45 }
 0x3ad   :  { %1654 = vmatpush.bf16.msra.mxu3 %v2756_v4  ;;  %1641 = vmatpush.bf16.msra.mxu2 %v2797_v22 }
 0x3b1   :  { %1655 = vmatpush.bf16.msra.mxu3 %v2765_v7  ;;  %1642 = vmatpush.bf16.msra.mxu2 %v2806_v25 }
 0x42f   :  { %v2983_v57 = vpop.f32.mrf.mxu2  ;;  %v865_v59 = vpop.f32.mrf.mxu3 }
 0x430   :  { %v869_v60 = vadd.f32 %v2788_v13, %v865_v59 }
 0x432   :  { %v2196_v38 = vmul.f32 -1.442695, %v869_v60 }
 0x434   :  { %2404 = vpow2.f32 %v2196_v38 }
 0x437   :  { %v854_v61 = vpop.f32.mrf.mxu2  ;;  %v867_v1 = vpop.f32.mrf.mxu3 }
 0x43a   :  { %v2405_v3 = vpop.eup %2404 }
 0x43b   :  { %v873_v6 = vadd.f32 1.0, %v2405_v3 }
 0x43d   :  { %2406 = vrcp.f32 %v873_v6  ;;  %v885_v18 = vand.u32 2147483648, %v873_v6  ;;  %v883_v23 = vand.u32 2147483647, %v873_v6  ;;  %vm879_vm2 = vweird.f32 %v873_v6 }
 0x43f   :  { %v886_v26 = vor.u32 1.1754944e-38, %v885_v18  ;;  %vm884_vm4 = vcmp.eq.f32.partialorder %v883_v23, 8.507059e+37 }
 0x443   :  { %v2407_v14 = vpop.eup %2406 }
 0x444   :  { %v875_v15 = vmul.f32 %v2407_v14, %v873_v6  ;;  %vm880_vm1 = vweird.f32 %v2407_v14 }
 0x445   :  { %vm881_vm3 = vmor %vm879_vm2, %vm880_vm1 }
 0x446   :  { %v876_v16 = vsub.f32 1.0, %v875_v15 }
 0x448   :  { %v877_v20 = vmul.f32 %v2407_v14, %v876_v16 }
 0x44a   :  { %v878_v24 = vadd.f32 %v2407_v14, %v877_v20 }
 0x44c   :  { %v882_v27 = vsel %vm881_vm3, %v2407_v14, %v878_v24 }
 0x44d   :  { %v887_v28 = vsel %vm884_vm4, %v886_v26, %v882_v27 }
 0x44e   :  { %890 = vrot.lane.b32.xlu2 %v887_v28, %s2636_s17 }
 0x4a8   :  { %v2990_v34 = vpop.permute.xlu2 %890 }
 0x4a9   :  { %v893_v35 = vmul.f32 %v2990_v34, %v2821_v33 }
 0x4ab   :  { %v894_v42 = vadd.f32 %v893_v35, %v2826_v37 }
 0x4ad   :  { %909 = vperm.xlu2 %2305, %v894_v42   ;;  %903 = vperm.xlu1 %2304, %v894_v42  }
 0x4ae   :  { %897 = vperm.xlu0 %2303, %v894_v42  }
 0x4b5   :  { %2306 = vset.pattern.permute.xlu1 %v2640_v43 }
 0x4b6   :  { %369 = vperm.xlu0 %2303, %v2768_v9   ;;  %915 = vperm.xlu1 %2306, %v894_v42  }
 0x4be   :  { %2307 = vset.pattern.permute.xlu1 %v2638_v47  ;;  %2308 = vset.pattern.permute.xlu0 %v2640_v43 }
 0x4bf   :  { %375 = vperm.xlu1 %2307, %v2768_v9   ;;  %387 = vperm.xlu0 %2308, %v2768_v9  }
 0x4c7   :  { %2309 = vset.pattern.permute.xlu1 %v2637_v29  ;;  %2315 = vset.pattern.permute.xlu0 %v2639_v30 }
 0x507   :  { %v910_v59 = vpop.permute.xlu2 %909 }
 0x508   :  { %v912_v38 = vmul.f32 %v910_v59, %v2867_v55 }
 0x51f   :  { %v904_v46 = vpop.permute.xlu1 %903 }
 0x520   :  { %v898_v48 = vpop.permute.xlu0 %897  ;;  %v906_v0 = vmul.f32 %v904_v46, %v2865_v53 }
 0x521   :  { %v900_v54 = vmul.f32 %v898_v48, %v2857_v50 }
 0x523   :  { %v901_v45 = vadd.f32 %v2862_v51, %v900_v54  ;;  %v955_v54 = vmul.f32 0.5, %v887_v28 }
 0x525   :  { %v907_v60 = vadd.f32 %v906_v0, %v901_v45 }
 0x527   :  { %v913_v1 = vadd.f32 %v912_v38, %v907_v60 }
 0x528   :  { %v916_v61 = vpop.permute.xlu1 %915  ;;  %v370_v28 = vpop.permute.xlu0 %369 }
 0x529   :  { %v918_v3 = vmul.f32 %v916_v61, %v2870_v58 }
 0x52b   :  { %v919_v6 = vadd.f32 %v918_v3, %v913_v1  ;;  %v372_v3 = vmul.f32 %v370_v28, %v2902_v49 }
 0x52d   :  { %v2197_v14 = vmul.f32 -1.442695, %v919_v6 }
 0x52f   :  { %2408 = vpow2.f32 %v2197_v14  ;;  %v373_v14 = vadd.f32 %v2904_v52, %v372_v3 }
 0x531   :  { %v376_v1 = vpop.permute.xlu1 %375 }
 0x535   :  { %v2409_v15 = vpop.eup %2408 }
 0x536   :  { %v923_v16 = vadd.f32 1.0, %v2409_v15  ;;  %v388_v15 = vpop.permute.xlu0 %387 }
 0x538   :  { %2410 = vrcp.f32 %v923_v16  ;;  %v935_v24 = vand.u32 2147483648, %v923_v16  ;;  %v933_v27 = vand.u32 2147483647, %v923_v16  ;;  %vm929_vm6 = vweird.f32 %v923_v16 }
 0x53a   :  { %v936_v42 = vor.u32 1.1754944e-38, %v935_v24  ;;  %vm934_vm8 = vcmp.eq.f32.partialorder %v933_v27, 8.507059e+37 }
 0x53e   :  { %v2411_v18 = vpop.eup %2410 }
 0x53f   :  { %v925_v20 = vmul.f32 %v2411_v18, %v923_v16  ;;  %vm930_vm5 = vweird.f32 %v2411_v18 }
 0x540   :  { %vm931_vm7 = vmor %vm929_vm6, %vm930_vm5 }
 0x541   :  { %v926_v23 = vsub.f32 1.0, %v925_v20 }
 0x543   :  { %v927_v26 = vmul.f32 %v2411_v18, %v926_v23 }
 0x545   :  { %v928_v35 = vadd.f32 %v2411_v18, %v927_v26 }
 0x547   :  { %v932_v46 = vsel %vm931_vm7, %v2411_v18, %v928_v35  ;;  %v390_v18 = vmul.f32 %v388_v15, %v2921_v63 }
 0x548   :  { %v3006_v48 = vsel %vm934_vm8, %v936_v42, %v932_v46  ;;  %vm1162_vm8 = vcmask 91200  }
 0x549   :  { %v954_v0 = vmul.f32 0.5, %v3006_v48 }
 0x54b   :  { %v956_v45 = vadd.f32 %v955_v54, %v954_v0 }
 0x54d   :  { %v957_v59 = vand.u32 2147483647, %v956_v45 }
 0x54f   :  { %959 = vrot.lane.b32.xlu2 %v957_v59, %s2636_s17 }
 0x557   :  { %381 = vperm.xlu2 %2305, %v2768_v9  }
 0x55f   :  { %2310 = vset.pattern.permute.xlu2 %v2638_v47 }
 0x5a9   :  { %v960_v60 = vpop.permute.xlu2 %959 }
 0x5aa   :  { %v962_v38 = vmul.f32 %v960_v60, %v2821_v33 }
 0x5ac   :  { %v963_v61 = vadd.f32 %v962_v38, %v2826_v37 }
 0x5ae   :  { %965 = vst.msk [vmem:[%s3503_s10] sm:$0x3] %vm964_vm9, %v963_v61  ;;  %975 = vperm.xlu2 %2310, %v963_v61   ;;  %969 = vperm.xlu1 %2309, %v963_v61  }
 0x5b1   :  { %v382_v6 = vpop.permute.xlu2 %381 }
 0x5b6   :  { %2312 = vset.pattern.permute.xlu2 %v2640_v43  ;;  %2311 = vset.pattern.permute.xlu1 %v2639_v30  ;;  %v378_v30 = vmul.f32 %v376_v1, %v2907_v56 }
 0x5b7   :  { %987 = vperm.xlu2 %2312, %v963_v61   ;;  %981 = vperm.xlu1 %2311, %v963_v61  }
 0x5bf   :  { %2314 = vset.pattern.permute.xlu2 %v2638_v47  ;;  %2313 = vset.pattern.permute.xlu1 %v2637_v29  ;;  %v384_v47 = vmul.f32 %v382_v6, %v2914_v44  ;;  %v379_v29 = vadd.f32 %v378_v30, %v373_v14 }
 0x5c0   :  { %160 = vperm.xlu2 %2314, %v2892_v40   ;;  %154 = vperm.xlu1 %2313, %v2830_v39  }
 0x5c1   :  { %v385_v16 = vadd.f32 %v384_v47, %v379_v29 }
 0x5c8   :  { %2316 = vset.pattern.permute.xlu1 %v2640_v43  ;;  %v391_v43 = vadd.f32 %v390_v18, %v385_v16 }
 0x5c9   :  { %172 = vperm.xlu1 %2316, %v2946_v36  }
 0x5ca   :  { %v966_v26 = vadd.f32 %v2983_v57, %v391_v43 }
 0x608   :  { %v976_v20 = vpop.permute.xlu2 %975 }
 0x609   :  { %v978_v35 = vmul.f32 %v976_v20, %v2930_v10 }
 0x611   :  { %v988_v42 = vpop.permute.xlu2 %987 }
 0x612   :  { %v990_v45 = vmul.f32 %v988_v42, %v2937_v21 }
 0x620   :  { %v970_v23 = vpop.permute.xlu1 %969 }
 0x621   :  { %v972_v24 = vmul.f32 %v970_v23, %v2928_v8 }
 0x623   :  { %v973_v27 = vadd.f32 %v972_v24, %v966_v26  ;;  %v161_v26 = vpop.permute.xlu2 %160 }
 0x625   :  { %v979_v54 = vadd.f32 %v978_v35, %v973_v27  ;;  %v163_v35 = vmul.f32 %v161_v26, %v2955_v2 }
 0x629   :  { %v982_v46 = vpop.permute.xlu1 %981 }
 0x62a   :  { %v984_v0 = vmul.f32 %v982_v46, %v2934_v17 }
 0x62c   :  { %v985_v59 = vadd.f32 %v984_v0, %v979_v54 }
 0x62e   :  { %v991_v60 = vadd.f32 %v990_v45, %v985_v59 }
 0x630   :  { %2412 = vtanh.f32 %v991_v60  ;;  %v2198_v61 = vmul.f32 -1.442695, %v991_v60 }
 0x632   :  { %2414 = vpow2.f32 %v2198_v61  ;;  %v155_v16 = vpop.permute.xlu1 %154 }
 0x633   :  { %v157_v23 = vmul.f32 %v155_v16, %v2953_v62 }
 0x635   :  { %v158_v27 = vadd.f32 %v2960_v5, %v157_v23 }
 0x636   :  { %v2413_v38 = vpop.eup %2412 }
 0x637   :  { %1014 = vrot.lane.b32.xlu0 %v2413_v38, %s2633_s7  ;;  %v164_v54 = vadd.f32 %v163_v35, %v158_v27 }
 0x638   :  { %v2415_v57 = vpop.eup %2414 }
 0x639   :  { %v995_v28 = vadd.f32 1.0, %v2415_v57 }
 0x63b   :  { %2416 = vrcp.f32 %v995_v28  ;;  %v1007_v47 = vand.u32 2147483648, %v995_v28  ;;  %vm1001_vm12 = vweird.f32 %v995_v28  ;;  %v1005_v15 = vand.u32 2147483647, %v995_v28  ;;  %v173_v42 = vpop.permute.xlu1 %172 }
 0x63c   :  { %v175_v45 = vmul.f32 %v173_v42, %v2968_v19 }
 0x63d   :  { %v1008_v18 = vor.u32 1.1754944e-38, %v1007_v47  ;;  %vm1006_vm14 = vcmp.eq.f32.partialorder %v1005_v15, 8.507059e+37 }
 0x63f   :  { %166 = vperm.xlu0 %2315, %v2912_v12  }
 0x641   :  { %v2417_v1 = vpop.eup %2416 }
 0x642   :  { %v997_v3 = vmul.f32 %v2417_v1, %v995_v28  ;;  %vm1002_vm10 = vweird.f32 %v2417_v1 }
 0x643   :  { %vm1003_vm13 = vmor %vm1001_vm12, %vm1002_vm10 }
 0x644   :  { %v998_v6 = vsub.f32 1.0, %v997_v3 }
 0x646   :  { %v999_v30 = vmul.f32 %v2417_v1, %v998_v6 }
 0x648   :  { %v1000_v14 = vadd.f32 %v2417_v1, %v999_v30 }
 0x64a   :  { %v1004_v29 = vsel %vm1003_vm13, %v2417_v1, %v1000_v14 }
 0x64b   :  { %v1009_v43 = vsel %vm1006_vm14, %v1008_v18, %v1004_v29 }
 0x64c   :  { %v1012_v1 = vmul.f32 %v1009_v43, %v2972_v41 }
 0x6a9   :  { %v1015_v20 = vpop.permute.xlu0 %1014 }
 0x6aa   :  { %v1017_v24 = vmul.f32 %v1015_v20, %v1009_v43 }
 0x6ac   :  { %1019 = vrot.lane.b32.xlu2 %v1017_v24, %s2634_s13 }
 0x6b1   :  { %v167_v46 = vpop.permute.xlu0 %166 }
 0x6b2   :  { %v169_v0 = vmul.f32 %v167_v46, %v2963_v11 }
 0x6b4   :  { %v170_v59 = vadd.f32 %v169_v0, %v164_v54 }
 0x6b6   :  { %v176_v60 = vadd.f32 %v175_v45, %v170_v59 }
 0x6b8   :  { %v177_v38 = vmax.f32 %v176_v60, 0.0 }
 0x6ba   :  { %v178_v61 = vsub.f32 0.0, %v177_v38  ;;  %v2642_v38 = vmov 8  }
 0x6bb   :  { %2317 = vset.pattern.permute.xlu2 %v2642_v38 }
 0x6bc   :  { %v179_v57 = vmul.f32 1.442695, %v178_v61  ;;  %v2643_v61 = vmov 10  }
 0x6bd   :  { %2319 = vset.pattern.permute.xlu1 %v2643_v61 }
 0x6be   :  { %2418 = vpow2.f32 %v179_v57  ;;  %v2644_v57 = vmov 9  }
 0x6bf   :  { %2318 = vset.pattern.permute.xlu0 %v2644_v57 }
 0x6c4   :  { %v2419_v28 = vpop.eup %2418 }
 0x6c5   :  { %1030 = vrot.lane.b32.xlu2 %v2419_v28, %s2635_s1 }
 0x706   :  { %v1020_v3 = vpop.permute.xlu2 %1019 }
 0x707   :  { %v3043_v6 = vadd.f32 %v1020_v3, %v1012_v1 }
 0x709   :  { %2420 = vtanh.f32 %v3043_v6 }
 0x70f   :  { %v2421_v30 = vpop.eup %2420 }
 0x710   :  { %1025 = vrot.lane.b32.xlu1 %v2421_v30, %s2633_s7  ;;  %v2645_v30 = vmov 11  }
 0x71f   :  { %v1031_v15 = vpop.permute.xlu2 %1030 }
 0x782   :  { %v1026_v14 = vpop.permute.xlu1 %1025 }
 0x783   :  { %v1028_v47 = vmul.f32 %v1026_v14, %v1009_v43 }
 0x785   :  { %v1033_v29 = vmul.f32 %v1031_v15, %v1028_v47 }
 0x787   :  { %v1034_v16 = vpack.c.bf16 %v1033_v29, %v1033_v29 }
 0x789   :  { %1036 = vrot.lane.b32.xlu0 %v1034_v16, %s2634_s13 }
 0x7fb   :  { %v1037_v18 = vpop.permute.xlu0 %1036 }
 0x7fc   :  { %2199 = vmatmul.msk.bf16.vlgmr.msrb.gmra.mxu0 %vm644_vm0, %v1037_v18  ;;  %2200 = vmatmul.msk.bf16.vlgmr.msrb.gmra.mxu1 %vm644_vm0, %v1037_v18 }
 0x7fd   :  { %1852 = vmatpush.bf16.msrb.mxu1 %v2756_v4  ;;  %1839 = vmatpush.bf16.msrb.mxu0 %v2797_v22 }
 0x801   :  { %1853 = vmatpush.bf16.msrb.mxu1 %v2765_v7  ;;  %1840 = vmatpush.bf16.msrb.mxu0 %v2806_v25 }
 0x879   :  { %v3054_v41 = vpop.f32.mrf.mxu0  ;;  %v1063_v20 = vpop.f32.mrf.mxu1 }
 0x87a   :  { %v1067_v43 = vadd.f32 %v2788_v13, %v1063_v20 }
 0x87c   :  { %v2201_v23 = vmul.f32 -1.442695, %v1067_v43 }
 0x87e   :  { %2422 = vpow2.f32 %v2201_v23 }
 0x881   :  { %v1052_v24 = vpop.f32.mrf.mxu0  ;;  %v1065_v26 = vpop.f32.mrf.mxu1 }
 0x884   :  { %v2423_v27 = vpop.eup %2422 }
 0x885   :  { %v1071_v35 = vadd.f32 1.0, %v2423_v27 }
 0x887   :  { %2424 = vrcp.f32 %v1071_v35  ;;  %v1083_v22 = vand.u32 2147483648, %v1071_v35  ;;  %v1081_v45 = vand.u32 2147483647, %v1071_v35  ;;  %vm1077_vm1 = vweird.f32 %v1071_v35 }
 0x889   :  { %v1084_v59 = vor.u32 1.1754944e-38, %v1083_v22  ;;  %vm1082_vm3 = vcmp.eq.f32.partialorder %v1081_v45, 8.507059e+37 }
 0x88d   :  { %v2425_v42 = vpop.eup %2424 }
 0x88e   :  { %v1073_v46 = vmul.f32 %v2425_v42, %v1071_v35  ;;  %vm1078_vm15 = vweird.f32 %v2425_v42 }
 0x88f   :  { %vm1079_vm2 = vmor %vm1077_vm1, %vm1078_vm15 }
 0x890   :  { %v1074_v54 = vsub.f32 1.0, %v1073_v46 }
 0x892   :  { %v1075_v0 = vmul.f32 %v2425_v42, %v1074_v54 }
 0x894   :  { %v1076_v25 = vadd.f32 %v2425_v42, %v1075_v0 }
 0x896   :  { %v1080_v60 = vsel %vm1079_vm2, %v2425_v42, %v1076_v25 }
 0x897   :  { %v1085_v13 = vsel %vm1082_vm3, %v1084_v59, %v1080_v60 }
 0x898   :  { %1088 = vrot.lane.b32.xlu1 %v1085_v13, %s2641_s20 }
 0x90a   :  { %v3059_v28 = vpop.permute.xlu1 %1088 }
 0x90b   :  { %v1091_v1 = vmul.f32 %v3059_v28, %v2821_v33 }
 0x90d   :  { %v1092_v3 = vadd.f32 %v1091_v1, %v2826_v37  ;;  %v1153_v1 = vmul.f32 0.5, %v1085_v13 }
 0x90f   :  { %1107 = vperm.xlu1 %2319, %v1092_v3   ;;  %1101 = vperm.xlu0 %2318, %v1092_v3  }
 0x910   :  { %1095 = vperm.xlu2 %2317, %v1092_v3  }
 0x917   :  { %415 = vperm.xlu0 %2318, %v2768_v9  }
 0x918   :  { %2320 = vset.pattern.permute.xlu2 %v2645_v30 }
 0x919   :  { %1113 = vperm.xlu2 %2320, %v1092_v3  }
 0x91f   :  { %2323 = vset.pattern.permute.xlu0 %v2642_v38 }
 0x921   :  { %2321 = vset.pattern.permute.xlu2 %v2642_v38 }
 0x922   :  { %409 = vperm.xlu2 %2321, %v2768_v9  }
 0x92a   :  { %2322 = vset.pattern.permute.xlu2 %v2645_v30 }
 0x92b   :  { %427 = vperm.xlu2 %2322, %v2768_v9  }
 0x933   :  { %2325 = vset.pattern.permute.xlu2 %v2643_v61 }
 0x96a   :  { %v1096_v14 = vpop.permute.xlu2 %1095 }
 0x96b   :  { %v1098_v47 = vmul.f32 %v1096_v14, %v2857_v50 }
 0x96d   :  { %v1099_v16 = vadd.f32 %v2862_v51, %v1098_v47 }
 0x973   :  { %v1114_v20 = vpop.permute.xlu2 %1113 }
 0x974   :  { %v1116_v24 = vmul.f32 %v1114_v20, %v2870_v58 }
 0x97c   :  { %v410_v13 = vpop.permute.xlu2 %409 }
 0x981   :  { %v1108_v15 = vpop.permute.xlu1 %1107  ;;  %v1102_v29 = vpop.permute.xlu0 %1101 }
 0x982   :  { %v1104_v18 = vmul.f32 %v1102_v29, %v2865_v53  ;;  %v1110_v43 = vmul.f32 %v1108_v15, %v2867_v55 }
 0x984   :  { %v1105_v23 = vadd.f32 %v1104_v18, %v1099_v16  ;;  %v412_v18 = vmul.f32 %v410_v13, %v2902_v49 }
 0x986   :  { %v1111_v26 = vadd.f32 %v1110_v43, %v1105_v23  ;;  %v413_v23 = vadd.f32 %v2904_v52, %v412_v18 }
 0x988   :  { %v1117_v27 = vadd.f32 %v1116_v24, %v1111_v26 }
 0x989   :  { %v416_v20 = vpop.permute.xlu0 %415 }
 0x98a   :  { %v2202_v35 = vmul.f32 -1.442695, %v1117_v27  ;;  %v418_v24 = vmul.f32 %v416_v20, %v2907_v56  ;;  %v428_v27 = vpop.permute.xlu2 %427 }
 0x98c   :  { %2426 = vpow2.f32 %v2202_v35  ;;  %v419_v35 = vadd.f32 %v418_v24, %v413_v23 }
 0x992   :  { %v2427_v42 = vpop.eup %2426 }
 0x993   :  { %v1121_v46 = vadd.f32 1.0, %v2427_v42 }
 0x995   :  { %2428 = vrcp.f32 %v1121_v46  ;;  %v1133_v45 = vand.u32 2147483648, %v1121_v46  ;;  %v1131_v25 = vand.u32 2147483647, %v1121_v46  ;;  %vm1127_vm5 = vweird.f32 %v1121_v46 }
 0x997   :  { %v1134_v60 = vor.u32 1.1754944e-38, %v1133_v45  ;;  %vm1132_vm7 = vcmp.eq.f32.partialorder %v1131_v25, 8.507059e+37 }
 0x99b   :  { %v2429_v54 = vpop.eup %2428 }
 0x99c   :  { %v1123_v22 = vmul.f32 %v2429_v54, %v1121_v46  ;;  %vm1128_vm4 = vweird.f32 %v2429_v54 }
 0x99d   :  { %vm1129_vm6 = vmor %vm1127_vm5, %vm1128_vm4 }
 0x99e   :  { %v1124_v0 = vsub.f32 1.0, %v1123_v22 }
 0x9a0   :  { %v1125_v51 = vmul.f32 %v2429_v54, %v1124_v0 }
 0x9a2   :  { %v1126_v59 = vadd.f32 %v2429_v54, %v1125_v51 }
 0x9a4   :  { %v1130_v38 = vsel %vm1129_vm6, %v2429_v54, %v1126_v59 }
 0x9a5   :  { %v3072_v61 = vsel %vm1132_vm7, %v1134_v60, %v1130_v38  ;;  %vm1360_vm7 = vcmask 124000  }
 0x9a6   :  { %v1152_v3 = vmul.f32 0.5, %v3072_v61 }
 0x9a8   :  { %v1154_v14 = vadd.f32 %v1153_v1, %v1152_v3 }
 0x9aa   :  { %v1155_v47 = vand.u32 2147483647, %v1154_v14 }
 0x9ac   :  { %1157 = vrot.lane.b32.xlu1 %v1155_v47, %s2641_s20 }
 0x9b4   :  { %421 = vperm.xlu1 %2319, %v2768_v9  }
 0x9bc   :  { %2324 = vset.pattern.permute.xlu1 %v2644_v57 }
 0xa1e   :  { %v1158_v15 = vpop.permute.xlu1 %1157 }
 0xa1f   :  { %v1160_v29 = vmul.f32 %v1158_v15, %v2821_v33 }
 0xa21   :  { %v1161_v16 = vadd.f32 %v1160_v29, %v2826_v37 }
 0xa23   :  { %1163 = vst.msk [vmem:[%s3503_s10] sm:$0x3] %vm1162_vm8, %v1161_v16  ;;  %1179 = vperm.xlu2 %2325, %v1161_v16   ;;  %1173 = vperm.xlu1 %2324, %v1161_v16  }
 0xa24   :  { %1167 = vperm.xlu0 %2323, %v1161_v16  }
 0xa26   :  { %v422_v43 = vpop.permute.xlu1 %421 }
 0xa27   :  { %v424_v26 = vmul.f32 %v422_v43, %v2914_v44 }
 0xa2b   :  { %2326 = vset.pattern.permute.xlu1 %v2645_v30 }
 0xa2c   :  { %182 = vperm.xlu0 %2323, %v2830_v39   ;;  %1185 = vperm.xlu1 %2326, %v1161_v16  }
 0xa34   :  { %2328 = vset.pattern.permute.xlu0 %v2645_v30  ;;  %2327 = vset.pattern.permute.xlu1 %v2644_v57  ;;  %v425_v30 = vadd.f32 %v424_v26, %v419_v35  ;;  %v430_v57 = vmul.f32 %v428_v27, %v2921_v63 }
 0xa35   :  { %200 = vperm.xlu0 %2328, %v2946_v36   ;;  %188 = vperm.xlu1 %2327, %v2892_v40  }
 0xa36   :  { %v431_v42 = vadd.f32 %v430_v57, %v425_v30 }
 0xa38   :  { %v1164_v22 = vadd.f32 %v3054_v41, %v431_v42 }
 0xa7d   :  { %v1180_v52 = vpop.permute.xlu2 %1179 }
 0xa7e   :  { %v1182_v59 = vmul.f32 %v1180_v52, %v2934_v17 }
 0xa95   :  { %v1174_v46 = vpop.permute.xlu1 %1173 }
 0xa96   :  { %v1168_v54 = vpop.permute.xlu0 %1167  ;;  %v1176_v51 = vmul.f32 %v1174_v46, %v2930_v10 }
 0xa97   :  { %v1170_v0 = vmul.f32 %v1168_v54, %v2928_v8 }
 0xa99   :  { %v1171_v45 = vadd.f32 %v1170_v0, %v1164_v22 }
 0xa9b   :  { %v1177_v25 = vadd.f32 %v1176_v51, %v1171_v45 }
 0xa9d   :  { %v1183_v38 = vadd.f32 %v1182_v59, %v1177_v25 }
 0xa9e   :  { %v1186_v60 = vpop.permute.xlu1 %1185  ;;  %v183_v26 = vpop.permute.xlu0 %182 }
 0xa9f   :  { %v1188_v1 = vmul.f32 %v1186_v60, %v2937_v21  ;;  %v185_v46 = vmul.f32 %v183_v26, %v2953_v62 }
 0xaa1   :  { %v1189_v3 = vadd.f32 %v1188_v1, %v1183_v38  ;;  %v186_v22 = vadd.f32 %v2960_v5, %v185_v46 }
 0xaa3   :  { %2430 = vtanh.f32 %v1189_v3  ;;  %v2203_v41 = vmul.f32 -1.442695, %v1189_v3 }
 0xaa5   :  { %2432 = vpow2.f32 %v2203_v41 }
 0xaa7   :  { %v189_v42 = vpop.permute.xlu1 %188  ;;  %v201_v0 = vpop.permute.xlu0 %200 }
 0xaa8   :  { %v191_v54 = vmul.f32 %v189_v42, %v2955_v2  ;;  %v203_v25 = vmul.f32 %v201_v0, %v2968_v19 }
 0xaa9   :  { %v2431_v14 = vpop.eup %2430 }
 0xaaa   :  { %1212 = vrot.lane.b32.xlu2 %v2431_v14, %s2633_s7  ;;  %v192_v51 = vadd.f32 %v191_v54, %v186_v22 }
 0xaab   :  { %v2433_v47 = vpop.eup %2432 }
 0xaac   :  { %v1193_v15 = vadd.f32 1.0, %v2433_v47 }
 0xaae   :  { %2434 = vrcp.f32 %v1193_v15  ;;  %v1205_v43 = vand.u32 2147483648, %v1193_v15  ;;  %vm1199_vm10 = vweird.f32 %v1193_v15  ;;  %v1203_v23 = vand.u32 2147483647, %v1193_v15 }
 0xab0   :  { %v1206_v27 = vor.u32 1.1754944e-38, %v1205_v43  ;;  %vm1204_vm13 = vcmp.eq.f32.partialorder %v1203_v23, 8.507059e+37 }
 0xab2   :  { %194 = vperm.xlu2 %2325, %v2912_v12  }
 0xab4   :  { %v2435_v29 = vpop.eup %2434 }
 0xab5   :  { %v1195_v16 = vmul.f32 %v2435_v29, %v1193_v15  ;;  %vm1200_vm9 = vweird.f32 %v2435_v29 }
 0xab6   :  { %vm1201_vm12 = vmor %vm1199_vm10, %vm1200_vm9 }
 0xab7   :  { %v1196_v13 = vsub.f32 1.0, %v1195_v16 }
 0xab9   :  { %v1197_v18 = vmul.f32 %v2435_v29, %v1196_v13 }
 0xabb   :  { %v1198_v20 = vadd.f32 %v2435_v29, %v1197_v18 }
 0xabd   :  { %v1202_v24 = vsel %vm1201_vm12, %v2435_v29, %v1198_v20 }
 0xabe   :  { %v1207_v30 = vsel %vm1204_vm13, %v1206_v27, %v1202_v24  ;;  %v3121_v24 = vld [vmem:[%s3497_s4] ss:$0 sm:$0xff] }
 0xabf   :  { %v1210_v41 = vmul.f32 %v1207_v30, %v3043_v6 }
 0xb04   :  { %v1213_v35 = vpop.permute.xlu2 %1212 }
 0xb05   :  { %v1215_v57 = vmul.f32 %v1213_v35, %v1207_v30 }
 0xb07   :  { %1217 = vrot.lane.b32.xlu1 %v1215_v57, %s2634_s13 }
 0xb0c   :  { %v195_v45 = vpop.permute.xlu2 %194 }
 0xb0d   :  { %v197_v52 = vmul.f32 %v195_v45, %v2963_v11 }
 0xb0f   :  { %v198_v59 = vadd.f32 %v197_v52, %v192_v51 }
 0xb11   :  { %v204_v60 = vadd.f32 %v203_v25, %v198_v59  ;;  %v2647_v59 = vmov 12  }
 0xb12   :  { %2329 = vset.pattern.permute.xlu1 %v2647_v59 }
 0xb13   :  { %v205_v38 = vmax.f32 %v204_v60, 0.0  ;;  %v2648_v60 = vmov 14  }
 0xb14   :  { %2331 = vset.pattern.permute.xlu0 %v2648_v60 }
 0xb15   :  { %v206_v1 = vsub.f32 0.0, %v205_v38  ;;  %v2649_v38 = vmov 13  }
 0xb16   :  { %2330 = vset.pattern.permute.xlu2 %v2649_v38 }
 0xb17   :  { %v207_v3 = vmul.f32 1.442695, %v206_v1 }
 0xb19   :  { %2436 = vpow2.f32 %v207_v3 }
 0xb1f   :  { %v2437_v14 = vpop.eup %2436 }
 0xb20   :  { %1228 = vrot.lane.b32.xlu1 %v2437_v14, %s2635_s1 }
 0xb79   :  { %v1218_v47 = vpop.permute.xlu1 %1217 }
 0xb7a   :  { %v3107_v5 = vadd.f32 %v1218_v47, %v1210_v41  ;;  %v2650_v41 = vmov 15  }
 0xb7c   :  { %2438 = vtanh.f32 %v3107_v5 }
 0xb82   :  { %v2439_v15 = vpop.eup %2438 }
 0xb83   :  { %1223 = vrot.lane.b32.xlu2 %v2439_v15, %s2633_s7 }
 0xb92   :  { %v1229_v13 = vpop.permute.xlu1 %1228 }
 0xbdd   :  { %v1224_v29 = vpop.permute.xlu2 %1223 }
 0xbde   :  { %v1226_v16 = vmul.f32 %v1224_v29, %v1207_v30 }
 0xbe0   :  { %v1231_v18 = vmul.f32 %v1229_v13, %v1226_v16  ;;  %v3139_v16 = vld [vmem:[%s3499_s6] ss:$0 sm:$0xff] }
 0xbe2   :  { %v1232_v20 = vpack.c.bf16 %v1231_v18, %v1231_v18 }
 0xbe4   :  { %1234 = vrot.lane.b32.xlu2 %v1232_v20, %s2634_s13 }
 0xc3e   :  { %v1235_v43 = vpop.permute.xlu2 %1234 }
 0xc3f   :  { %2204 = vmatmul.msk.bf16.vlgmr.msrb.gmra.mxu2 %vm644_vm0, %v1235_v43  ;;  %2205 = vmatmul.msk.bf16.vlgmr.msrb.gmra.mxu3 %vm644_vm0, %v1235_v43 }
 0xc40   :  { %2037 = vmatpush.bf16.msrb.mxu2 %v2756_v4 }
 0xc44   :  { %2038 = vmatpush.bf16.msrb.mxu2 %v2765_v7 }
 0xcc2   :  { %v3116_v6 = vpop.f32.mrf.mxu2  ;;  %v1261_v23 = vpop.f32.mrf.mxu3 }
 0xcc3   :  { %v1265_v26 = vadd.f32 %v3121_v24, %v1261_v23 }
 0xcc5   :  { %v2206_v27 = vmul.f32 -1.442695, %v1265_v26 }
 0xcc7   :  { %2440 = vpow2.f32 %v2206_v27 }
 0xcca   :  { %v1250_v35 = vpop.f32.mrf.mxu2  ;;  %v1263_v30 = vpop.f32.mrf.mxu3 }
 0xccd   :  { %v2441_v57 = vpop.eup %2440 }
 0xcce   :  { %v1269_v42 = vadd.f32 1.0, %v2441_v57 }
 0xcd0   :  { %2442 = vrcp.f32 %v1269_v42  ;;  %v1281_v54 = vand.u32 2147483648, %v1269_v42  ;;  %v1279_v0 = vand.u32 2147483647, %v1269_v42  ;;  %vm1275_vm15 = vweird.f32 %v1269_v42 }
 0xcd2   :  { %v1282_v51 = vor.u32 1.1754944e-38, %v1281_v54  ;;  %vm1280_vm2 = vcmp.eq.f32.partialorder %v1279_v0, 8.507059e+37 }
 0xcd6   :  { %v2443_v4 = vpop.eup %2442 }
 0xcd7   :  { %v1271_v46 = vmul.f32 %v2443_v4, %v1269_v42  ;;  %vm1276_vm14 = vweird.f32 %v2443_v4 }
 0xcd8   :  { %vm1277_vm1 = vmor %vm1275_vm15, %vm1276_vm14 }
 0xcd9   :  { %v1272_v7 = vsub.f32 1.0, %v1271_v46 }
 0xcdb   :  { %v1273_v22 = vmul.f32 %v2443_v4, %v1272_v7 }
 0xcdd   :  { %v1274_v45 = vadd.f32 %v2443_v4, %v1273_v22 }
 0xcdf   :  { %v1278_v52 = vsel %vm1277_vm1, %v2443_v4, %v1274_v45 }
 0xce0   :  { %v1283_v25 = vsel %vm1280_vm2, %v1282_v51, %v1278_v52 }
 0xce1   :  { %1286 = vrot.lane.b32.xlu0 %v1283_v25, %s2646_s25 }
 0xd53   :  { %v3126_v1 = vpop.permute.xlu0 %1286 }
 0xd54   :  { %v1289_v3 = vmul.f32 %v3126_v1, %v2821_v33 }
 0xd56   :  { %v1290_v14 = vadd.f32 %v1289_v3, %v2826_v37  ;;  %v1351_v3 = vmul.f32 0.5, %v1283_v25 }
 0xd58   :  { %1305 = vperm.xlu0 %2331, %v1290_v14   ;;  %1299 = vperm.xlu2 %2330, %v1290_v14  }
 0xd59   :  { %1293 = vperm.xlu1 %2329, %v1290_v14  }
 0xd60   :  { %461 = vperm.xlu0 %2331, %v2768_v9  }
 0xd61   :  { %2332 = vset.pattern.permute.xlu1 %v2650_v41 }
 0xd62   :  { %1311 = vperm.xlu1 %2332, %v1290_v14  }
 0xd68   :  { %2336 = vset.pattern.permute.xlu0 %v2649_v38 }
 0xd6a   :  { %2333 = vset.pattern.permute.xlu1 %v2647_v59 }
 0xd6b   :  { %449 = vperm.xlu1 %2333, %v2768_v9  }
 0xd73   :  { %2334 = vset.pattern.permute.xlu1 %v2650_v41 }
 0xd74   :  { %467 = vperm.xlu1 %2334, %v2768_v9  }
 0xd7c   :  { %2337 = vset.pattern.permute.xlu1 %v2648_v60 }
 0xdb2   :  { %v1300_v15 = vpop.permute.xlu2 %1299 }
 0xdb3   :  { %v1302_v18 = vmul.f32 %v1300_v15, %v2865_v53 }
 0xdca   :  { %v1306_v20 = vpop.permute.xlu0 %1305 }
 0xdcb   :  { %v1294_v47 = vpop.permute.xlu1 %1293  ;;  %v1308_v23 = vmul.f32 %v1306_v20, %v2867_v55 }
 0xdcc   :  { %v1296_v29 = vmul.f32 %v1294_v47, %v2857_v50 }
 0xdce   :  { %v1297_v13 = vadd.f32 %v3139_v16, %v1296_v29 }
 0xdd0   :  { %v1303_v43 = vadd.f32 %v1302_v18, %v1297_v13 }
 0xdd2   :  { %v1309_v27 = vadd.f32 %v1308_v23, %v1303_v43  ;;  %v3161_v23 = vld [vmem:[#allocation5] ss:$0 sm:$0xff] }
 0xdd4   :  { %v1312_v26 = vpop.permute.xlu1 %1311 }
 0xdd5   :  { %v1314_v35 = vmul.f32 %v1312_v26, %v2870_v58 }
 0xdd7   :  { %v1315_v30 = vadd.f32 %v1314_v35, %v1309_v27  ;;  %v462_v35 = vpop.permute.xlu0 %461 }
 0xdd9   :  { %v2207_v57 = vmul.f32 -1.442695, %v1315_v30 }
 0xddb   :  { %2444 = vpow2.f32 %v2207_v57 }
 0xddd   :  { %v450_v25 = vpop.permute.xlu1 %449 }
 0xdde   :  { %v452_v20 = vmul.f32 %v450_v25, %v2902_v49 }
 0xde0   :  { %v453_v26 = vadd.f32 %v3161_v23, %v452_v20 }
 0xde1   :  { %v2445_v42 = vpop.eup %2444 }
 0xde2   :  { %v1319_v4 = vadd.f32 1.0, %v2445_v42 }
 0xde4   :  { %2446 = vrcp.f32 %v1319_v4  ;;  %v1331_v22 = vand.u32 2147483648, %v1319_v4  ;;  %v1329_v45 = vand.u32 2147483647, %v1319_v4  ;;  %vm1325_vm4 = vweird.f32 %v1319_v4 }
 0xde6   :  { %v1332_v52 = vor.u32 1.1754944e-38, %v1331_v22  ;;  %vm1330_vm6 = vcmp.eq.f32.partialorder %v1329_v45, 8.507059e+37  ;;  %v468_v57 = vpop.permute.xlu1 %467 }
 0xdea   :  { %v2447_v46 = vpop.eup %2446 }
 0xdeb   :  { %v1321_v7 = vmul.f32 %v2447_v46, %v1319_v4  ;;  %vm1326_vm3 = vweird.f32 %v2447_v46 }
 0xdec   :  { %vm1327_vm5 = vmor %vm1325_vm4, %vm1326_vm3 }
 0xded   :  { %v1322_v54 = vsub.f32 1.0, %v1321_v7 }
 0xdef   :  { %v1323_v0 = vmul.f32 %v2447_v46, %v1322_v54 }
 0xdf1   :  { %v1324_v51 = vadd.f32 %v2447_v46, %v1323_v0 }
 0xdf3   :  { %v1328_v60 = vsel %vm1327_vm5, %v2447_v46, %v1324_v51 }
 0xdf4   :  { %v3145_v38 = vsel %vm1330_vm6, %v1332_v52, %v1328_v60  ;;  %vm1558_vm6 = vcmask 156800  }
 0xdf5   :  { %v1350_v14 = vmul.f32 0.5, %v3145_v38 }
 0xdf7   :  { %v1352_v47 = vadd.f32 %v1351_v3, %v1350_v14 }
 0xdf9   :  { %v1353_v15 = vand.u32 2147483647, %v1352_v47 }
 0xdfb   :  { %1355 = vrot.lane.b32.xlu2 %v1353_v15, %s2646_s25 }
 0xe03   :  { %455 = vperm.xlu2 %2330, %v2768_v9  }
 0xe0b   :  { %2335 = vset.pattern.permute.xlu2 %v2647_v59 }
 0xe55   :  { %v1356_v29 = vpop.permute.xlu2 %1355 }
 0xe56   :  { %v1358_v13 = vmul.f32 %v1356_v29, %v2821_v33 }
 0xe58   :  { %v1359_v18 = vadd.f32 %v1358_v13, %v2826_v37 }
 0xe5a   :  { %1361 = vst.msk [vmem:[%s3503_s10] sm:$0x3] %vm1360_vm7, %v1359_v18  ;;  %1377 = vperm.xlu1 %2337, %v1359_v18   ;;  %1371 = vperm.xlu0 %2336, %v1359_v18  }
 0xe5b   :  { %1365 = vperm.xlu2 %2335, %v1359_v18  }
 0xe5d   :  { %v456_v43 = vpop.permute.xlu2 %455 }
 0xe5e   :  { %v458_v27 = vmul.f32 %v456_v43, %v2907_v56 }
 0xe60   :  { %v459_v30 = vadd.f32 %v458_v27, %v453_v26 }
 0xe62   :  { %216 = vperm.xlu0 %2336, %v2892_v40  }
 0xe63   :  { %2338 = vset.pattern.permute.xlu2 %v2650_v41 }
 0xe64   :  { %1383 = vperm.xlu2 %2338, %v1359_v18  }
 0xe6c   :  { %2339 = vset.pattern.permute.xlu2 %v2647_v59  ;;  %v464_v59 = vmul.f32 %v462_v35, %v2914_v44 }
 0xe6d   :  { %210 = vperm.xlu2 %2339, %v2830_v39  }
 0xe6e   :  { %v465_v42 = vadd.f32 %v464_v59, %v459_v30 }
 0xe75   :  { %2340 = vset.pattern.permute.xlu2 %v2650_v41  ;;  %v470_v41 = vmul.f32 %v468_v57, %v2921_v63 }
 0xe76   :  { %228 = vperm.xlu2 %2340, %v2946_v36  }
 0xe77   :  { %v471_v46 = vadd.f32 %v470_v41, %v465_v42 }
 0xe79   :  { %v1362_v54 = vadd.f32 %v3116_v6, %v471_v46 }
 0xeb5   :  { %v1366_v4 = vpop.permute.xlu2 %1365 }
 0xeb6   :  { %v1368_v7 = vmul.f32 %v1366_v4, %v2928_v8 }
 0xeb8   :  { %v1369_v45 = vadd.f32 %v1368_v7, %v1362_v54 }
 0xebe   :  { %v1384_v52 = vpop.permute.xlu2 %1383 }
 0xebf   :  { %v1386_v14 = vmul.f32 %v1384_v52, %v2937_v21 }
 0xec7   :  { %v211_v59 = vpop.permute.xlu2 %210 }
 0xec8   :  { %v213_v54 = vmul.f32 %v211_v59, %v2953_v62 }
 0xecc   :  { %v1378_v22 = vpop.permute.xlu1 %1377  ;;  %v1372_v0 = vpop.permute.xlu0 %1371 }
 0xecd   :  { %v1374_v51 = vmul.f32 %v1372_v0, %v2930_v10  ;;  %v1380_v60 = vmul.f32 %v1378_v22, %v2934_v17  ;;  %v3180_v0 = vld [vmem:[%s3495_s2] ss:$0 sm:$0xff] }
 0xecf   :  { %v1375_v3 = vadd.f32 %v1374_v51, %v1369_v45  ;;  %v214_v45 = vadd.f32 %v3180_v0, %v213_v54 }
 0xed0   :  { %v229_v51 = vpop.permute.xlu2 %228 }
 0xed1   :  { %v1381_v47 = vadd.f32 %v1380_v60, %v1375_v3 }
 0xed3   :  { %v1387_v15 = vadd.f32 %v1386_v14, %v1381_v47  ;;  %v231_v14 = vmul.f32 %v229_v51, %v2968_v19 }
 0xed4   :  { %v217_v7 = vpop.permute.xlu0 %216 }
 0xed5   :  { %2448 = vtanh.f32 %v1387_v15  ;;  %v2208_v6 = vmul.f32 -1.442695, %v1387_v15  ;;  %v219_v22 = vmul.f32 %v217_v7, %v2955_v2 }
 0xed7   :  { %2450 = vpow2.f32 %v2208_v6  ;;  %v220_v60 = vadd.f32 %v219_v22, %v214_v45 }
 0xedb   :  { %v2449_v29 = vpop.eup %2448 }
 0xedc   :  { %1410 = vrot.lane.b32.xlu1 %v2449_v29, %s2633_s7 }
 0xedd   :  { %v2451_v13 = vpop.eup %2450 }
 0xede   :  { %v1391_v18 = vadd.f32 1.0, %v2451_v13 }
 0xee0   :  { %2452 = vrcp.f32 %v1391_v18  ;;  %v1403_v35 = vand.u32 2147483648, %v1391_v18  ;;  %vm1397_vm9 = vweird.f32 %v1391_v18  ;;  %v1401_v30 = vand.u32 2147483647, %v1391_v18 }
 0xee2   :  { %v1404_v42 = vor.u32 1.1754944e-38, %v1403_v35  ;;  %vm1402_vm12 = vcmp.eq.f32.partialorder %v1401_v30, 8.507059e+37 }
 0xee4   :  { %222 = vperm.xlu1 %2337, %v2912_v12  }
 0xee6   :  { %v2453_v25 = vpop.eup %2452 }
 0xee7   :  { %v1393_v20 = vmul.f32 %v2453_v25, %v1391_v18  ;;  %vm1398_vm8 = vweird.f32 %v2453_v25 }
 0xee8   :  { %vm1399_vm10 = vmor %vm1397_vm9, %vm1398_vm8 }
 0xee9   :  { %v1394_v43 = vsub.f32 1.0, %v1393_v20 }
 0xeeb   :  { %v1395_v26 = vmul.f32 %v2453_v25, %v1394_v43 }
 0xeed   :  { %v1396_v27 = vadd.f32 %v2453_v25, %v1395_v26 }
 0xeef   :  { %v1400_v57 = vsel %vm1399_vm10, %v2453_v25, %v1396_v27 }
 0xef0   :  { %v1405_v4 = vsel %vm1402_vm12, %v1404_v42, %v1400_v57 }
 0xef1   :  { %v1408_v25 = vmul.f32 %v1405_v4, %v3107_v5 }
 0xf4e   :  { %v1411_v41 = vpop.permute.xlu1 %1410 }
 0xf4f   :  { %v1413_v46 = vmul.f32 %v1411_v41, %v1405_v4 }
 0xf51   :  { %1415 = vrot.lane.b32.xlu0 %v1413_v46, %s2634_s13 }
 0xf56   :  { %v223_v52 = vpop.permute.xlu1 %222 }
 0xf57   :  { %v225_v3 = vmul.f32 %v223_v52, %v2963_v11 }
 0xf59   :  { %v226_v47 = vadd.f32 %v225_v3, %v220_v60 }
 0xf5b   :  { %v232_v15 = vadd.f32 %v231_v14, %v226_v47 }
 0xf5d   :  { %v233_v29 = vmax.f32 %v232_v15, 0.0 }
 0xf5f   :  { %v234_v6 = vsub.f32 0.0, %v233_v29 }
 0xf61   :  { %v235_v13 = vmul.f32 1.442695, %v234_v6 }
 0xf63   :  { %2454 = vpow2.f32 %v235_v13 }
 0xf69   :  { %v2455_v18 = vpop.eup %2454 }
 0xf6a   :  { %1426 = vrot.lane.b32.xlu2 %v2455_v18, %s2635_s1  ;;  %v2652_v18 = vmov 17  }
 0xf6b   :  { %2342 = vset.pattern.permute.xlu0 %v2652_v18 }
 0xfc3   :  { %v1416_v20 = vpop.permute.xlu0 %1415 }
 0xfc4   :  { %v3187_v43 = vadd.f32 %v1416_v20, %v1408_v25  ;;  %v1427_v30 = vpop.permute.xlu2 %1426  ;;  %v2653_v25 = vmov 16   ;;  %v2654_v20 = vmov 18  }
 0xfc5   :  { %2341 = vset.pattern.permute.xlu2 %v2653_v25  ;;  %2343 = vset.pattern.permute.xlu1 %v2654_v20 }
 0xfc6   :  { %2456 = vtanh.f32 %v3187_v43 }
 0xfcc   :  { %v2457_v26 = vpop.eup %2456 }
 0xfcd   :  { %1421 = vrot.lane.b32.xlu1 %v2457_v26, %s2633_s7 }
0x103f   :  { %v1422_v27 = vpop.permute.xlu1 %1421 }
0x1040   :  { %v1424_v35 = vmul.f32 %v1422_v27, %v1405_v4 }
0x1042   :  { %v1429_v57 = vmul.f32 %v1427_v30, %v1424_v35  ;;  %v2655_v30 = vmov 19  }
0x1044   :  { %v1430_v59 = vpack.c.bf16 %v1429_v57, %v1429_v57 }
0x1046   :  { %1432 = vrot.lane.b32.xlu0 %v1430_v59, %s2634_s13 }
0x10b8   :  { %v1433_v42 = vpop.permute.xlu0 %1432 }
0x10b9   :  { %2209 = vmatmul.msk.bf16.vlgmr.msra.gmra.mxu0 %vm644_vm0, %v1433_v42  ;;  %2210 = vmatmul.msk.bf16.vlgmr.msra.gmra.mxu1 %vm644_vm0, %v1433_v42 }
0x1136   :  { %v3194_v5 = vpop.f32.mrf.mxu0  ;;  %v1459_v41 = vpop.f32.mrf.mxu1 }
0x1137   :  { %v1463_v46 = vadd.f32 %v3121_v24, %v1459_v41 }
0x1139   :  { %v2211_v7 = vmul.f32 -1.442695, %v1463_v46 }
0x113b   :  { %2458 = vpow2.f32 %v2211_v7 }
0x113e   :  { %v1448_v54 = vpop.f32.mrf.mxu0  ;;  %v1461_v22 = vpop.f32.mrf.mxu1 }
0x1141   :  { %v2459_v4 = vpop.eup %2458 }
0x1142   :  { %v1467_v45 = vadd.f32 1.0, %v2459_v4 }
0x1144   :  { %2460 = vrcp.f32 %v1467_v45  ;;  %v1479_v3 = vand.u32 2147483648, %v1467_v45  ;;  %v1477_v47 = vand.u32 2147483647, %v1467_v45  ;;  %vm1473_vm14 = vweird.f32 %v1467_v45 }
0x1146   :  { %v1480_v29 = vor.u32 1.1754944e-38, %v1479_v3  ;;  %vm1478_vm1 = vcmp.eq.f32.partialorder %v1477_v47, 8.507059e+37 }
0x114a   :  { %v2461_v51 = vpop.eup %2460 }
0x114b   :  { %v1469_v52 = vmul.f32 %v2461_v51, %v1467_v45  ;;  %vm1474_vm13 = vweird.f32 %v2461_v51 }
0x114c   :  { %vm1475_vm15 = vmor %vm1473_vm14, %vm1474_vm13 }
0x114d   :  { %v1470_v60 = vsub.f32 1.0, %v1469_v52 }
0x114f   :  { %v1471_v14 = vmul.f32 %v2461_v51, %v1470_v60 }
0x1151   :  { %v1472_v15 = vadd.f32 %v2461_v51, %v1471_v14 }
0x1153   :  { %v1476_v6 = vsel %vm1475_vm15, %v2461_v51, %v1472_v15 }
0x1154   :  { %v1481_v13 = vsel %vm1478_vm1, %v1480_v29, %v1476_v6 }
0x1155   :  { %1484 = vrot.lane.b32.xlu1 %v1481_v13, %s2651_s5 }
0x11c7   :  { %v3199_v26 = vpop.permute.xlu1 %1484 }
0x11c8   :  { %v1487_v27 = vmul.f32 %v3199_v26, %v2821_v33 }
0x11ca   :  { %v1488_v35 = vadd.f32 %v1487_v27, %v2826_v37 }
0x11cc   :  { %1503 = vperm.xlu1 %2343, %v1488_v35   ;;  %1497 = vperm.xlu0 %2342, %v1488_v35  }
0x11cd   :  { %1491 = vperm.xlu2 %2341, %v1488_v35  }
0x11d4   :  { %495 = vperm.xlu0 %2342, %v2768_v9  }
0x11d5   :  { %2344 = vset.pattern.permute.xlu2 %v2655_v30 }
0x11d6   :  { %1509 = vperm.xlu2 %2344, %v1488_v35  }
0x11dc   :  { %2347 = vset.pattern.permute.xlu0 %v2653_v25 }
0x11de   :  { %2345 = vset.pattern.permute.xlu2 %v2653_v25 }
0x11df   :  { %489 = vperm.xlu2 %2345, %v2768_v9  }
0x11e7   :  { %2346 = vset.pattern.permute.xlu2 %v2655_v30 }
0x11e8   :  { %507 = vperm.xlu2 %2346, %v2768_v9  }
0x11f0   :  { %2349 = vset.pattern.permute.xlu2 %v2654_v20 }
0x1227   :  { %v1492_v57 = vpop.permute.xlu2 %1491 }
0x1228   :  { %v1494_v59 = vmul.f32 %v1492_v57, %v2857_v50 }
0x122a   :  { %v1495_v46 = vadd.f32 %v3139_v16, %v1494_v59 }
0x1230   :  { %v1510_v54 = vpop.permute.xlu2 %1509 }
0x1231   :  { %v1512_v45 = vmul.f32 %v1510_v54, %v2870_v58 }
0x123e   :  { %v1504_v42 = vpop.permute.xlu1 %1503  ;;  %v1498_v41 = vpop.permute.xlu0 %1497 }
0x123f   :  { %v1500_v7 = vmul.f32 %v1498_v41, %v2865_v53  ;;  %v1506_v22 = vmul.f32 %v1504_v42, %v2867_v55  ;;  %v1549_v42 = vmul.f32 0.5, %v1481_v13  ;;  %v490_v13 = vpop.permute.xlu2 %489 }
0x1241   :  { %v1501_v4 = vadd.f32 %v1500_v7, %v1495_v46 }
0x1243   :  { %v1507_v51 = vadd.f32 %v1506_v22, %v1501_v4 }
0x1245   :  { %v1513_v52 = vadd.f32 %v1512_v45, %v1507_v51  ;;  %v492_v45 = vmul.f32 %v490_v13, %v2902_v49 }
0x1246   :  { %v496_v51 = vpop.permute.xlu0 %495 }
0x1247   :  { %v2212_v60 = vmul.f32 -1.442695, %v1513_v52 }
0x1249   :  { %2462 = vpow2.f32 %v2212_v60  ;;  %v493_v60 = vadd.f32 %v3161_v23, %v492_v45 }
0x124f   :  { %v2463_v3 = vpop.eup %2462 }
0x1250   :  { %v1517_v14 = vadd.f32 1.0, %v2463_v3  ;;  %v498_v3 = vmul.f32 %v496_v51, %v2907_v56 }
0x1252   :  { %2464 = vrcp.f32 %v1517_v14  ;;  %v1529_v6 = vand.u32 2147483648, %v1517_v14  ;;  %v1527_v20 = vand.u32 2147483647, %v1517_v14  ;;  %vm1523_vm3 = vweird.f32 %v1517_v14 }
0x1254   :  { %v1530_v35 = vor.u32 1.1754944e-38, %v1529_v6  ;;  %vm1528_vm5 = vcmp.eq.f32.partialorder %v1527_v20, 8.507059e+37 }
0x1258   :  { %v2465_v47 = vpop.eup %2464 }
0x1259   :  { %v1519_v15 = vmul.f32 %v2465_v47, %v1517_v14  ;;  %vm1524_vm2 = vweird.f32 %v2465_v47 }
0x125a   :  { %vm1525_vm4 = vmor %vm1523_vm3, %vm1524_vm2 }
0x125b   :  { %v1520_v29 = vsub.f32 1.0, %v1519_v15  ;;  %v499_v15 = vadd.f32 %v498_v3, %v493_v60 }
0x125d   :  { %v1521_v25 = vmul.f32 %v2465_v47, %v1520_v29 }
0x125f   :  { %v1522_v27 = vadd.f32 %v2465_v47, %v1521_v25 }
0x1261   :  { %v1526_v57 = vsel %vm1525_vm4, %v2465_v47, %v1522_v27  ;;  %v508_v47 = vpop.permute.xlu2 %507 }
0x1262   :  { %v3212_v59 = vsel %vm1528_vm5, %v1530_v35, %v1526_v57  ;;  %vm1756_vm5 = vcmask 189600  }
0x1263   :  { %v1548_v41 = vmul.f32 0.5, %v3212_v59 }
0x1265   :  { %v1550_v46 = vadd.f32 %v1549_v42, %v1548_v41 }
0x1267   :  { %v1551_v7 = vand.u32 2147483647, %v1550_v46 }
0x1269   :  { %1553 = vrot.lane.b32.xlu1 %v1551_v7, %s2651_s5 }
0x1271   :  { %501 = vperm.xlu1 %2343, %v2768_v9  }
0x1279   :  { %2348 = vset.pattern.permute.xlu1 %v2652_v18 }
0x12db   :  { %v1554_v54 = vpop.permute.xlu1 %1553 }
0x12dc   :  { %v1556_v22 = vmul.f32 %v1554_v54, %v2821_v33 }
0x12de   :  { %v1557_v4 = vadd.f32 %v1556_v22, %v2826_v37 }
0x12e0   :  { %1559 = vst.msk [vmem:[%s3503_s10] sm:$0x3] %vm1558_vm6, %v1557_v4  ;;  %1575 = vperm.xlu2 %2349, %v1557_v4   ;;  %1569 = vperm.xlu1 %2348, %v1557_v4  }
0x12e1   :  { %1563 = vperm.xlu0 %2347, %v1557_v4  }
0x12e3   :  { %v502_v52 = vpop.permute.xlu1 %501 }
0x12e4   :  { %v504_v14 = vmul.f32 %v502_v52, %v2914_v44 }
0x12e8   :  { %2350 = vset.pattern.permute.xlu1 %v2655_v30 }
0x12e9   :  { %238 = vperm.xlu0 %2347, %v2830_v39   ;;  %1581 = vperm.xlu1 %2350, %v1557_v4  }
0x12f1   :  { %2352 = vset.pattern.permute.xlu0 %v2655_v30  ;;  %2351 = vset.pattern.permute.xlu1 %v2652_v18  ;;  %v505_v30 = vadd.f32 %v504_v14, %v499_v15  ;;  %v510_v18 = vmul.f32 %v508_v47, %v2921_v63 }
0x12f2   :  { %256 = vperm.xlu0 %2352, %v2946_v36   ;;  %244 = vperm.xlu1 %2351, %v2892_v40  }
0x12f3   :  { %v511_v29 = vadd.f32 %v510_v18, %v505_v30 }
0x12f5   :  { %v1560_v20 = vadd.f32 %v3194_v5, %v511_v29 }
0x133a   :  { %v1576_v42 = vpop.permute.xlu2 %1575 }
0x133b   :  { %v1578_v46 = vmul.f32 %v1576_v42, %v2934_v17 }
0x1352   :  { %v1570_v6 = vpop.permute.xlu1 %1569 }
0x1353   :  { %v1564_v25 = vpop.permute.xlu0 %1563  ;;  %v1572_v57 = vmul.f32 %v1570_v6, %v2930_v10 }
0x1354   :  { %v1566_v27 = vmul.f32 %v1564_v25, %v2928_v8 }
0x1356   :  { %v1567_v35 = vadd.f32 %v1566_v27, %v1560_v20 }
0x1358   :  { %v1573_v41 = vadd.f32 %v1572_v57, %v1567_v35 }
0x135a   :  { %v1579_v54 = vadd.f32 %v1578_v46, %v1573_v41 }
0x135b   :  { %v1582_v7 = vpop.permute.xlu1 %1581  ;;  %v239_v29 = vpop.permute.xlu0 %238 }
0x135c   :  { %v1584_v22 = vmul.f32 %v1582_v7, %v2937_v21  ;;  %v241_v57 = vmul.f32 %v239_v29, %v2953_v62 }
0x135e   :  { %v1585_v4 = vadd.f32 %v1584_v22, %v1579_v54  ;;  %v242_v41 = vadd.f32 %v3180_v0, %v241_v57 }
0x1360   :  { %2466 = vtanh.f32 %v1585_v4  ;;  %v2213_v5 = vmul.f32 -1.442695, %v1585_v4 }
0x1362   :  { %2468 = vpow2.f32 %v2213_v5 }
0x1364   :  { %v245_v35 = vpop.permute.xlu1 %244  ;;  %v257_v46 = vpop.permute.xlu0 %256 }
0x1365   :  { %v247_v42 = vmul.f32 %v245_v35, %v2955_v2  ;;  %v259_v4 = vmul.f32 %v257_v46, %v2968_v19 }
0x1366   :  { %v2467_v13 = vpop.eup %2466 }
0x1367   :  { %1608 = vrot.lane.b32.xlu2 %v2467_v13, %s2633_s7  ;;  %v248_v54 = vadd.f32 %v247_v42, %v242_v41 }
0x1368   :  { %v2469_v45 = vpop.eup %2468 }
0x1369   :  { %v1589_v51 = vadd.f32 1.0, %v2469_v45 }
0x136b   :  { %2470 = vrcp.f32 %v1589_v51  ;;  %v1601_v15 = vand.u32 2147483648, %v1589_v51  ;;  %vm1595_vm8 = vweird.f32 %v1589_v51  ;;  %v1599_v30 = vand.u32 2147483647, %v1589_v51 }
0x136d   :  { %v1602_v6 = vor.u32 1.1754944e-38, %v1601_v15  ;;  %vm1600_vm10 = vcmp.eq.f32.partialorder %v1599_v30, 8.507059e+37 }
0x136f   :  { %250 = vperm.xlu2 %2349, %v2912_v12  }
0x1371   :  { %v2471_v52 = vpop.eup %2470 }
0x1372   :  { %v1591_v60 = vmul.f32 %v2471_v52, %v1589_v51  ;;  %vm1596_vm7 = vweird.f32 %v2471_v52 }
0x1373   :  { %vm1597_vm9 = vmor %vm1595_vm8, %vm1596_vm7 }
0x1374   :  { %v1592_v3 = vsub.f32 1.0, %v1591_v60 }
0x1376   :  { %v1593_v14 = vmul.f32 %v2471_v52, %v1592_v3 }
0x1378   :  { %v1594_v47 = vadd.f32 %v2471_v52, %v1593_v14 }
0x137a   :  { %v1598_v18 = vsel %vm1597_vm9, %v2471_v52, %v1594_v47 }
0x137b   :  { %v1603_v20 = vsel %vm1600_vm10, %v1602_v6, %v1598_v18 }
0x137c   :  { %v1606_v3 = vmul.f32 %v1603_v20, %v3187_v43 }
0x13c1   :  { %v1609_v25 = vpop.permute.xlu2 %1608 }
0x13c2   :  { %v1611_v27 = vmul.f32 %v1609_v25, %v1603_v20 }
0x13c4   :  { %1613 = vrot.lane.b32.xlu1 %v1611_v27, %s2634_s13 }
0x13c9   :  { %v251_v7 = vpop.permute.xlu2 %250 }
0x13ca   :  { %v253_v22 = vmul.f32 %v251_v7, %v2963_v11 }
0x13cc   :  { %v254_v13 = vadd.f32 %v253_v22, %v248_v54 }
0x13ce   :  { %v260_v5 = vadd.f32 %v259_v4, %v254_v13 }
0x13d0   :  { %v261_v45 = vmax.f32 %v260_v5, 0.0 }
0x13d2   :  { %v262_v51 = vsub.f32 0.0, %v261_v45 }
0x13d4   :  { %v263_v52 = vmul.f32 1.442695, %v262_v51 }
0x13d6   :  { %2472 = vpow2.f32 %v263_v52 }
0x13dc   :  { %v2473_v60 = vpop.eup %2472 }
0x13dd   :  { %1624 = vrot.lane.b32.xlu1 %v2473_v60, %s2635_s1 }
0x1436   :  { %v1614_v14 = vpop.permute.xlu1 %1613 }
0x1437   :  { %v3247_v47 = vadd.f32 %v1614_v14, %v1606_v3  ;;  %v2657_v3 = vmov 20   ;;  %v2658_v14 = vmov 22  }
0x1438   :  { %2353 = vset.pattern.permute.xlu1 %v2657_v3  ;;  %2355 = vset.pattern.permute.xlu0 %v2658_v14 }
0x1439   :  { %2474 = vtanh.f32 %v3247_v47 }
0x143f   :  { %v2475_v15 = vpop.eup %2474 }
0x1440   :  { %1619 = vrot.lane.b32.xlu2 %v2475_v15, %s2633_s7  ;;  %v2659_v15 = vmov 21  }
0x1441   :  { %2354 = vset.pattern.permute.xlu2 %v2659_v15 }
0x144f   :  { %v1625_v29 = vpop.permute.xlu1 %1624 }
0x149a   :  { %v1620_v30 = vpop.permute.xlu2 %1619 }
0x149b   :  { %v1622_v18 = vmul.f32 %v1620_v30, %v1603_v20 }
0x149d   :  { %v1627_v6 = vmul.f32 %v1625_v29, %v1622_v18 }
0x149f   :  { %v1628_v25 = vpack.c.bf16 %v1627_v6, %v1627_v6  ;;  %v2660_v6 = vmov 23  }
0x14a1   :  { %1630 = vrot.lane.b32.xlu2 %v1628_v25, %s2634_s13 }
0x14fb   :  { %v1631_v27 = vpop.permute.xlu2 %1630 }
0x14fc   :  { %2214 = vmatmul.msk.bf16.vlgmr.msra.gmra.mxu2 %vm644_vm0, %v1631_v27  ;;  %2215 = vmatmul.msk.bf16.vlgmr.msra.gmra.mxu3 %vm644_vm0, %v1631_v27 }
0x157f   :  { %v3254_v43 = vpop.f32.mrf.mxu2  ;;  %v1657_v35 = vpop.f32.mrf.mxu3 }
0x1580   :  { %v1661_v57 = vadd.f32 %v3121_v24, %v1657_v35 }
0x1582   :  { %v2216_v42 = vmul.f32 -1.442695, %v1661_v57 }
0x1584   :  { %2476 = vpow2.f32 %v2216_v42 }
0x1587   :  { %v1646_v41 = vpop.f32.mrf.mxu2  ;;  %v1659_v46 = vpop.f32.mrf.mxu3 }
0x158a   :  { %v2477_v20 = vpop.eup %2476 }
0x158b   :  { %v1665_v7 = vadd.f32 1.0, %v2477_v20 }
0x158d   :  { %2478 = vrcp.f32 %v1665_v7  ;;  %v1677_v13 = vand.u32 2147483648, %v1665_v7  ;;  %v1675_v45 = vand.u32 2147483647, %v1665_v7  ;;  %vm1671_vm13 = vweird.f32 %v1665_v7 }
0x158f   :  { %v1678_v52 = vor.u32 1.1754944e-38, %v1677_v13  ;;  %vm1676_vm15 = vcmp.eq.f32.partialorder %v1675_v45, 8.507059e+37 }
0x1593   :  { %v2479_v54 = vpop.eup %2478 }
0x1594   :  { %v1667_v22 = vmul.f32 %v2479_v54, %v1665_v7  ;;  %vm1672_vm12 = vweird.f32 %v2479_v54 }
0x1595   :  { %vm1673_vm14 = vmor %vm1671_vm13, %vm1672_vm12 }
0x1596   :  { %v1668_v4 = vsub.f32 1.0, %v1667_v22 }
0x1598   :  { %v1669_v5 = vmul.f32 %v2479_v54, %v1668_v4 }
0x159a   :  { %v1670_v51 = vadd.f32 %v2479_v54, %v1669_v5 }
0x159c   :  { %v1674_v60 = vsel %vm1673_vm14, %v2479_v54, %v1670_v51 }
0x159d   :  { %v1679_v24 = vsel %vm1676_vm15, %v1678_v52, %v1674_v60 }
0x159e   :  { %1682 = vrot.lane.b32.xlu0 %v1679_v24, %s2656_s12 }
0x1610   :  { %v3259_v30 = vpop.permute.xlu0 %1682 }
0x1611   :  { %v1685_v18 = vmul.f32 %v3259_v30, %v2821_v33 }
0x1613   :  { %v1686_v29 = vadd.f32 %v1685_v18, %v2826_v37 }
0x1615   :  { %1701 = vperm.xlu0 %2355, %v1686_v29   ;;  %1695 = vperm.xlu2 %2354, %v1686_v29  }
0x1616   :  { %1689 = vperm.xlu1 %2353, %v1686_v29  }
0x161d   :  { %541 = vperm.xlu0 %2355, %v2768_v9  }
0x161e   :  { %2356 = vset.pattern.permute.xlu1 %v2660_v6 }
0x161f   :  { %1707 = vperm.xlu1 %2356, %v1686_v29  }
0x1625   :  { %2360 = vset.pattern.permute.xlu0 %v2659_v15 }
0x1627   :  { %2357 = vset.pattern.permute.xlu1 %v2657_v3 }
0x1628   :  { %529 = vperm.xlu1 %2357, %v2768_v9  }
0x1630   :  { %2358 = vset.pattern.permute.xlu1 %v2660_v6 }
0x1631   :  { %547 = vperm.xlu1 %2358, %v2768_v9  }
0x1639   :  { %2361 = vset.pattern.permute.xlu1 %v2658_v14 }
0x166f   :  { %v1696_v27 = vpop.permute.xlu2 %1695 }
0x1670   :  { %v1698_v42 = vmul.f32 %v1696_v27, %v2865_v53 }
0x1687   :  { %v1702_v41 = vpop.permute.xlu0 %1701 }
0x1688   :  { %v1690_v25 = vpop.permute.xlu1 %1689  ;;  %v1704_v20 = vmul.f32 %v1702_v41, %v2867_v55 }
0x1689   :  { %v1692_v35 = vmul.f32 %v1690_v25, %v2857_v50 }
0x168b   :  { %v1693_v57 = vadd.f32 %v3139_v16, %v1692_v35  ;;  %v1747_v35 = vmul.f32 0.5, %v1679_v24 }
0x168d   :  { %v1699_v46 = vadd.f32 %v1698_v42, %v1693_v57 }
0x168f   :  { %v1705_v54 = vadd.f32 %v1704_v20, %v1699_v46 }
0x1691   :  { %v1708_v7 = vpop.permute.xlu1 %1707 }
0x1692   :  { %v1710_v22 = vmul.f32 %v1708_v7, %v2870_v58 }
0x1694   :  { %v1711_v4 = vadd.f32 %v1710_v22, %v1705_v54 }
0x1696   :  { %v2217_v13 = vmul.f32 -1.442695, %v1711_v4 }
0x1698   :  { %2480 = vpow2.f32 %v2217_v13 }
0x169a   :  { %v530_v24 = vpop.permute.xlu1 %529 }
0x169b   :  { %v532_v54 = vmul.f32 %v530_v24, %v2902_v49 }
0x169d   :  { %v533_v4 = vadd.f32 %v3161_v23, %v532_v54 }
0x169e   :  { %v2481_v5 = vpop.eup %2480 }
0x169f   :  { %v1715_v45 = vadd.f32 1.0, %v2481_v5  ;;  %v542_v5 = vpop.permute.xlu0 %541 }
0x16a1   :  { %2482 = vrcp.f32 %v1715_v45  ;;  %v1727_v16 = vand.u32 2147483648, %v1715_v45  ;;  %v1725_v15 = vand.u32 2147483647, %v1715_v45  ;;  %vm1721_vm2 = vweird.f32 %v1715_v45 }
0x16a3   :  { %v1728_v29 = vor.u32 1.1754944e-38, %v1727_v16  ;;  %vm1726_vm4 = vcmp.eq.f32.partialorder %v1725_v15, 8.507059e+37 }
0x16a7   :  { %v2483_v51 = vpop.eup %2482 }
0x16a8   :  { %v1717_v52 = vmul.f32 %v2483_v51, %v1715_v45  ;;  %vm1722_vm1 = vweird.f32 %v2483_v51 }
0x16a9   :  { %vm1723_vm3 = vmor %vm1721_vm2, %vm1722_vm1 }
0x16aa   :  { %v1718_v60 = vsub.f32 1.0, %v1717_v52  ;;  %v544_v52 = vmul.f32 %v542_v5, %v2914_v44 }
0x16ac   :  { %v1719_v14 = vmul.f32 %v2483_v51, %v1718_v60 }
0x16ae   :  { %v1720_v18 = vadd.f32 %v2483_v51, %v1719_v14 }
0x16b0   :  { %v1724_v25 = vsel %vm1723_vm3, %v2483_v51, %v1720_v18  ;;  %v548_v51 = vpop.permute.xlu1 %547 }
0x16b1   :  { %v3273_v27 = vsel %vm1726_vm4, %v1728_v29, %v1724_v25  ;;  %vm1954_vm4 = vcmask 222400  }
0x16b2   :  { %v1746_v57 = vmul.f32 0.5, %v3273_v27 }
0x16b4   :  { %v1748_v42 = vadd.f32 %v1747_v35, %v1746_v57 }
0x16b6   :  { %v1749_v41 = vand.u32 2147483647, %v1748_v42 }
0x16b8   :  { %1751 = vrot.lane.b32.xlu2 %v1749_v41, %s2656_s12 }
0x16c0   :  { %535 = vperm.xlu2 %2354, %v2768_v9  }
0x16c8   :  { %2359 = vset.pattern.permute.xlu2 %v2657_v3 }
0x1712   :  { %v1752_v46 = vpop.permute.xlu2 %1751 }
0x1713   :  { %v1754_v20 = vmul.f32 %v1752_v46, %v2821_v33 }
0x1715   :  { %v1755_v7 = vadd.f32 %v1754_v20, %v2826_v37 }
0x1717   :  { %1757 = vst.msk [vmem:[%s3503_s10] sm:$0x3] %vm1756_vm5, %v1755_v7  ;;  %1773 = vperm.xlu1 %2361, %v1755_v7   ;;  %1767 = vperm.xlu0 %2360, %v1755_v7  }
0x1718   :  { %1761 = vperm.xlu2 %2359, %v1755_v7  }
0x171a   :  { %v536_v22 = vpop.permute.xlu2 %535 }
0x171b   :  { %v538_v13 = vmul.f32 %v536_v22, %v2907_v56 }
0x171d   :  { %v539_v45 = vadd.f32 %v538_v13, %v533_v4 }
0x171f   :  { %272 = vperm.xlu0 %2360, %v2892_v40   ;;  %v545_v60 = vadd.f32 %v544_v52, %v539_v45 }
0x1720   :  { %2362 = vset.pattern.permute.xlu2 %v2660_v6 }
0x1721   :  { %1779 = vperm.xlu2 %2362, %v1755_v7  }
0x1729   :  { %2363 = vset.pattern.permute.xlu2 %v2657_v3  ;;  %v550_v3 = vmul.f32 %v548_v51, %v2921_v63 }
0x172a   :  { %266 = vperm.xlu2 %2363, %v2830_v39  }
0x1732   :  { %2364 = vset.pattern.permute.xlu2 %v2660_v6  ;;  %v551_v6 = vadd.f32 %v550_v3, %v545_v60 }
0x1733   :  { %284 = vperm.xlu2 %2364, %v2946_v36  }
0x1734   :  { %v1758_v15 = vadd.f32 %v3254_v43, %v551_v6 }
0x1772   :  { %v1762_v16 = vpop.permute.xlu2 %1761 }
0x1773   :  { %v1764_v14 = vmul.f32 %v1762_v16, %v2928_v8 }
0x1775   :  { %v1765_v25 = vadd.f32 %v1764_v14, %v1758_v15 }
0x177b   :  { %v1780_v35 = vpop.permute.xlu2 %1779 }
0x177c   :  { %v1782_v41 = vmul.f32 %v1780_v35, %v2937_v21 }
0x1784   :  { %v267_v3 = vpop.permute.xlu2 %266 }
0x1789   :  { %v1774_v18 = vpop.permute.xlu1 %1773  ;;  %v1768_v29 = vpop.permute.xlu0 %1767 }
0x178a   :  { %v1770_v23 = vmul.f32 %v1768_v29, %v2930_v10  ;;  %v1776_v57 = vmul.f32 %v1774_v18, %v2934_v17  ;;  %v269_v29 = vmul.f32 %v267_v3, %v2953_v62 }
0x178c   :  { %v1771_v42 = vadd.f32 %v1770_v23, %v1765_v25  ;;  %v270_v23 = vadd.f32 %v3180_v0, %v269_v29 }
0x178d   :  { %v285_v35 = vpop.permute.xlu2 %284 }
0x178e   :  { %v1777_v46 = vadd.f32 %v1776_v57, %v1771_v42 }
0x1790   :  { %v1783_v20 = vadd.f32 %v1782_v41, %v1777_v46  ;;  %v287_v46 = vmul.f32 %v285_v35, %v2968_v19 }
0x1791   :  { %v273_v18 = vpop.permute.xlu0 %272 }
0x1792   :  { %2484 = vtanh.f32 %v1783_v20  ;;  %v2218_v43 = vmul.f32 -1.442695, %v1783_v20  ;;  %v275_v25 = vmul.f32 %v273_v18, %v2955_v2 }
0x1794   :  { %2486 = vpow2.f32 %v2218_v43  ;;  %v276_v42 = vadd.f32 %v275_v25, %v270_v23 }
0x1798   :  { %v2485_v7 = vpop.eup %2484 }
0x1799   :  { %1806 = vrot.lane.b32.xlu1 %v2485_v7, %s2633_s7 }
0x179a   :  { %v2487_v24 = vpop.eup %2486 }
0x179b   :  { %v1787_v54 = vadd.f32 1.0, %v2487_v24 }
0x179d   :  { %2488 = vrcp.f32 %v1787_v54  ;;  %v1799_v51 = vand.u32 2147483648, %v1787_v54  ;;  %vm1793_vm7 = vweird.f32 %v1787_v54  ;;  %v1797_v52 = vand.u32 2147483647, %v1787_v54 }
0x179f   :  { %v1800_v16 = vor.u32 1.1754944e-38, %v1799_v51  ;;  %vm1798_vm9 = vcmp.eq.f32.partialorder %v1797_v52, 8.507059e+37 }
0x17a1   :  { %278 = vperm.xlu1 %2361, %v2912_v12  }
0x17a3   :  { %v2489_v22 = vpop.eup %2488 }
0x17a4   :  { %v1789_v4 = vmul.f32 %v2489_v22, %v1787_v54  ;;  %vm1794_vm6 = vweird.f32 %v2489_v22 }
0x17a5   :  { %vm1795_vm8 = vmor %vm1793_vm7, %vm1794_vm6 }
0x17a6   :  { %v1790_v13 = vsub.f32 1.0, %v1789_v4 }
0x17a8   :  { %v1791_v5 = vmul.f32 %v2489_v22, %v1790_v13 }
0x17aa   :  { %v1792_v45 = vadd.f32 %v2489_v22, %v1791_v5 }
0x17ac   :  { %v1796_v60 = vsel %vm1795_vm8, %v2489_v22, %v1792_v45 }
0x17ad   :  { %v1801_v14 = vsel %vm1798_vm9, %v1800_v16, %v1796_v60 }
0x17ae   :  { %v1804_v4 = vmul.f32 %v1801_v14, %v3247_v47 }
0x180b   :  { %v1807_v6 = vpop.permute.xlu1 %1806 }
0x180c   :  { %v1809_v15 = vmul.f32 %v1807_v6, %v1801_v14 }
0x180e   :  { %1811 = vrot.lane.b32.xlu0 %v1809_v15, %s2634_s13  ;;  %v3320_v15 = vld [vmem:[%s3497_s4] ss:$0 sm:$0xff]  ;;  %s2661_s4 = smov 24  }
0x1813   :  { %v279_v57 = vpop.permute.xlu1 %278 }
0x1814   :  { %v281_v41 = vmul.f32 %v279_v57, %v2963_v11 }
0x1816   :  { %v282_v20 = vadd.f32 %v281_v41, %v276_v42 }
0x1818   :  { %v288_v7 = vadd.f32 %v287_v46, %v282_v20 }
0x181a   :  { %v289_v43 = vmax.f32 %v288_v7, 0.0 }
0x181c   :  { %v290_v24 = vsub.f32 0.0, %v289_v43 }
0x181e   :  { %v291_v54 = vmul.f32 1.442695, %v290_v24 }
0x1820   :  { %2490 = vpow2.f32 %v291_v54 }
0x1826   :  { %v2491_v22 = vpop.eup %2490 }
0x1827   :  { %1822 = vrot.lane.b32.xlu2 %v2491_v22, %s2635_s1 }
0x1880   :  { %v1812_v13 = vpop.permute.xlu0 %1811 }
0x1881   :  { %v3308_v0 = vadd.f32 %v1812_v13, %v1804_v4  ;;  %v1823_v52 = vpop.permute.xlu2 %1822  ;;  %v2662_v4 = vmov 25   ;;  %v2663_v13 = vmov 24  }
0x1882   :  { %2366 = vset.pattern.permute.xlu0 %v2662_v4  ;;  %2365 = vset.pattern.permute.xlu2 %v2663_v13 }
0x1883   :  { %2492 = vtanh.f32 %v3308_v0 }
0x1889   :  { %v2493_v5 = vpop.eup %2492 }
0x188a   :  { %1817 = vrot.lane.b32.xlu1 %v2493_v5, %s2633_s7  ;;  %v2664_v5 = vmov 26  }
0x188b   :  { %2367 = vset.pattern.permute.xlu1 %v2664_v5 }
0x18fc   :  { %v1818_v45 = vpop.permute.xlu1 %1817 }
0x18fd   :  { %v1820_v51 = vmul.f32 %v1818_v45, %v1801_v14 }
0x18ff   :  { %v1825_v60 = vmul.f32 %v1823_v52, %v1820_v51 }
0x1901   :  { %v1826_v3 = vpack.c.bf16 %v1825_v60, %v1825_v60  ;;  %v2665_v60 = vmov 27  }
0x1903   :  { %1828 = vrot.lane.b32.xlu0 %v1826_v3, %s2634_s13 }
0x1975   :  { %v1829_v16 = vpop.permute.xlu0 %1828 }
0x1976   :  { %2219 = vmatmul.msk.bf16.vlgmr.msrb.gmra.mxu0 %vm644_vm0, %v1829_v16  ;;  %2220 = vmatmul.msk.bf16.vlgmr.msrb.gmra.mxu1 %vm644_vm0, %v1829_v16 }
0x19f3   :  { %v3315_v47 = vpop.f32.mrf.mxu0  ;;  %v1855_v6 = vpop.f32.mrf.mxu1 }
0x19f4   :  { %v1859_v14 = vadd.f32 %v3320_v15, %v1855_v6 }
0x19f6   :  { %v2221_v18 = vmul.f32 -1.442695, %v1859_v14 }
0x19f8   :  { %2494 = vpow2.f32 %v2221_v18  ;;  %v3337_v18 = vld [vmem:[%s3499_s6] ss:$0 sm:$0xff] }
0x19fb   :  { %v1844_v29 = vpop.f32.mrf.mxu0  ;;  %v1857_v25 = vpop.f32.mrf.mxu1 }
0x19fe   :  { %v2495_v23 = vpop.eup %2494 }
0x19ff   :  { %v1863_v35 = vadd.f32 1.0, %v2495_v23 }
0x1a01   :  { %2496 = vrcp.f32 %v1863_v35  ;;  %v1875_v46 = vand.u32 2147483648, %v1863_v35  ;;  %v1873_v7 = vand.u32 2147483647, %v1863_v35  ;;  %vm1869_vm12 = vweird.f32 %v1863_v35 }
0x1a03   :  { %v1876_v24 = vor.u32 1.1754944e-38, %v1875_v46  ;;  %vm1874_vm14 = vcmp.eq.f32.partialorder %v1873_v7, 8.507059e+37 }
0x1a07   :  { %v2497_v57 = vpop.eup %2496 }
0x1a08   :  { %v1865_v42 = vmul.f32 %v2497_v57, %v1863_v35  ;;  %vm1870_vm10 = vweird.f32 %v2497_v57 }
0x1a09   :  { %vm1871_vm13 = vmor %vm1869_vm12, %vm1870_vm10 }
0x1a0a   :  { %v1866_v41 = vsub.f32 1.0, %v1865_v42 }
0x1a0c   :  { %v1867_v20 = vmul.f32 %v2497_v57, %v1866_v41 }
0x1a0e   :  { %v1868_v43 = vadd.f32 %v2497_v57, %v1867_v20 }
0x1a10   :  { %v1872_v54 = vsel %vm1871_vm13, %v2497_v57, %v1868_v43  ;;  %vm357_vm13 = vcmask 1041408  }
0x1a11   :  { %v1877_v22 = vsel %vm1874_vm14, %v1876_v24, %v1872_v54 }
0x1a12   :  { %1880 = vrot.lane.b32.xlu1 %v1877_v22, %s2661_s4 }
0x1a84   :  { %v3325_v45 = vpop.permute.xlu1 %1880 }
0x1a85   :  { %v1883_v51 = vmul.f32 %v3325_v45, %v2821_v33 }
0x1a87   :  { %v1884_v52 = vadd.f32 %v1883_v51, %v2826_v37 }
0x1a89   :  { %1899 = vperm.xlu1 %2367, %v1884_v52   ;;  %1893 = vperm.xlu0 %2366, %v1884_v52  }
0x1a8a   :  { %1887 = vperm.xlu2 %2365, %v1884_v52  }
0x1a91   :  { %575 = vperm.xlu0 %2366, %v2768_v9  }
0x1a92   :  { %2368 = vset.pattern.permute.xlu2 %v2665_v60 }
0x1a93   :  { %1905 = vperm.xlu2 %2368, %v1884_v52  }
0x1a99   :  { %2371 = vset.pattern.permute.xlu0 %v2663_v13 }
0x1a9b   :  { %2369 = vset.pattern.permute.xlu2 %v2663_v13 }
0x1a9c   :  { %569 = vperm.xlu2 %2369, %v2768_v9  }
0x1aa4   :  { %2370 = vset.pattern.permute.xlu2 %v2665_v60 }
0x1aa5   :  { %587 = vperm.xlu2 %2370, %v2768_v9  }
0x1aad   :  { %2373 = vset.pattern.permute.xlu2 %v2664_v5 }
0x1ae4   :  { %v1888_v3 = vpop.permute.xlu2 %1887 }
0x1ae5   :  { %v1890_v16 = vmul.f32 %v1888_v3, %v2857_v50 }
0x1ae7   :  { %v1891_v29 = vadd.f32 %v3337_v18, %v1890_v16 }
0x1aed   :  { %v1906_v23 = vpop.permute.xlu2 %1905 }
0x1aee   :  { %v1908_v42 = vmul.f32 %v1906_v23, %v2870_v58 }
0x1afb   :  { %v1900_v6 = vpop.permute.xlu1 %1899  ;;  %v1894_v14 = vpop.permute.xlu0 %1893 }
0x1afc   :  { %v1896_v25 = vmul.f32 %v1894_v14, %v2865_v53  ;;  %v1902_v35 = vmul.f32 %v1900_v6, %v2867_v55 }
0x1afe   :  { %v1897_v57 = vadd.f32 %v1896_v25, %v1891_v29  ;;  %v1945_v29 = vmul.f32 0.5, %v1877_v22  ;;  %v354_v22 = vsel %vm353_vm11, %v2768_v9, 0.0 }
0x1b00   :  { %v1903_v41 = vadd.f32 %v1902_v35, %v1897_v57 }
0x1b02   :  { %v1909_v46 = vadd.f32 %v1908_v42, %v1903_v41 }
0x1b04   :  { %v2222_v20 = vmul.f32 -1.442695, %v1909_v46  ;;  %v570_v46 = vpop.permute.xlu2 %569 }
0x1b06   :  { %2498 = vpow2.f32 %v2222_v20  ;;  %v572_v20 = vmul.f32 %v570_v46, %v2902_v49 }
0x1b0c   :  { %v2499_v7 = vpop.eup %2498 }
0x1b0d   :  { %v1913_v43 = vadd.f32 1.0, %v2499_v7  ;;  %v576_v7 = vpop.permute.xlu0 %575 }
0x1b0f   :  { %2500 = vrcp.f32 %v1913_v43  ;;  %v1925_v5 = vand.u32 2147483648, %v1913_v43  ;;  %v1923_v52 = vand.u32 2147483647, %v1913_v43  ;;  %vm1919_vm1 = vweird.f32 %v1913_v43 }
0x1b11   :  { %v1926_v16 = vor.u32 1.1754944e-38, %v1925_v5  ;;  %vm1924_vm3 = vcmp.eq.f32.partialorder %v1923_v52, 8.507059e+37 }
0x1b15   :  { %v2501_v24 = vpop.eup %2500 }
0x1b16   :  { %v1915_v54 = vmul.f32 %v2501_v24, %v1913_v43  ;;  %vm1920_vm15 = vweird.f32 %v2501_v24 }
0x1b17   :  { %vm1921_vm2 = vmor %vm1919_vm1, %vm1920_vm15 }
0x1b18   :  { %v1916_v13 = vsub.f32 1.0, %v1915_v54 }
0x1b1a   :  { %v1917_v51 = vmul.f32 %v2501_v24, %v1916_v13 }
0x1b1c   :  { %v1918_v3 = vadd.f32 %v2501_v24, %v1917_v51 }
0x1b1e   :  { %v1922_v6 = vsel %vm1921_vm2, %v2501_v24, %v1918_v3  ;;  %v2542_v24 = vld [vmem:[#allocation5] ss:$0 sm:$0xff] }
0x1b1f   :  { %v3343_v14 = vsel %vm1924_vm3, %v1926_v16, %v1922_v6  ;;  %v573_v54 = vadd.f32 %v2542_v24, %v572_v20  ;;  %vm2139_vm3 = vcmask 255200  }
0x1b20   :  { %v1944_v25 = vmul.f32 0.5, %v3343_v14 }
0x1b22   :  { %v1946_v23 = vadd.f32 %v1945_v29, %v1944_v25 }
0x1b24   :  { %v1947_v35 = vand.u32 2147483647, %v1946_v23 }
0x1b26   :  { %1949 = vrot.lane.b32.xlu1 %v1947_v35, %s2661_s4 }
0x1b2e   :  { %581 = vperm.xlu1 %2367, %v2768_v9  }
0x1b36   :  { %2372 = vset.pattern.permute.xlu1 %v2662_v4 }
0x1b98   :  { %v1950_v57 = vpop.permute.xlu1 %1949 }
0x1b99   :  { %v1952_v42 = vmul.f32 %v1950_v57, %v2821_v33 }
0x1b9b   :  { %v1953_v41 = vadd.f32 %v1952_v42, %v2826_v37 }
0x1b9d   :  { %1971 = vperm.xlu2 %2373, %v1953_v41   ;;  %1965 = vperm.xlu1 %2372, %v1953_v41   ;;  %1955 = vst.msk [vmem:[%s3503_s10] sm:$0x3] %vm1954_vm4, %v1953_v41  ;;  %vm2151_vm4 = vcmask 0  }
0x1b9e   :  { %1959 = vperm.xlu0 %2371, %v1953_v41  }
0x1ba0   :  { %v582_v43 = vpop.permute.xlu1 %581 }
0x1ba5   :  { %2374 = vset.pattern.permute.xlu1 %v2665_v60 }
0x1ba6   :  { %294 = vperm.xlu0 %2371, %v2830_v39   ;;  %1977 = vperm.xlu1 %2374, %v1953_v41   ;;  %v578_v39 = vmul.f32 %v576_v7, %v2907_v56 }
0x1ba8   :  { %v579_v13 = vadd.f32 %v578_v39, %v573_v54 }
0x1bae   :  { %2376 = vset.pattern.permute.xlu0 %v2665_v60  ;;  %2375 = vset.pattern.permute.xlu1 %v2662_v4  ;;  %v584_v60 = vmul.f32 %v582_v43, %v2914_v44  ;;  %v588_v4 = vpop.permute.xlu2 %587 }
0x1baf   :  { %312 = vperm.xlu0 %2376, %v2946_v36   ;;  %300 = vperm.xlu1 %2375, %v2892_v40   ;;  %v590_v40 = vmul.f32 %v588_v4, %v2921_v63 }
0x1bb0   :  { %v585_v36 = vadd.f32 %v584_v60, %v579_v13 }
0x1bb2   :  { %v591_v5 = vadd.f32 %v590_v40, %v585_v36  ;;  %v2543_v36 = vld [vmem:[%s3495_s2] ss:$0 sm:$0xff]  ;;  %s2666_s2 = smov 124  }
0x1bb4   :  { %v1956_v3 = vadd.f32 %v3315_v47, %v591_v5 }
0x1bd9   :  { %355 = vadd.xlane.f32.xlu0 %v354_v22 }
0x1bed   :  { %472 = vrot.lane.b32.xlu0 %v2768_v9, %s2667_s24 }
0x1bf5   :  { %512 = vrot.lane.b32.xlu0 %v2768_v9, %s2668_s3 }
0x1bf7   :  { %v1972_v29 = vpop.permute.xlu2 %1971 }
0x1bf8   :  { %v1974_v56 = vmul.f32 %v1972_v29, %v2934_v17 }
0x1bfd   :  { %608 = vrot.lane.b32.xlu0 %v2768_v9, %s2671_s26 }
0x1c0f   :  { %v1966_v51 = vpop.permute.xlu1 %1965 }
0x1c10   :  { %v1960_v52 = vpop.permute.xlu0 %1959  ;;  %v1968_v6 = vmul.f32 %v1966_v51, %v2930_v10 }
0x1c11   :  { %v1962_v49 = vmul.f32 %v1960_v52, %v2928_v8 }
0x1c13   :  { %v1963_v16 = vadd.f32 %v1962_v49, %v1956_v3 }
0x1c15   :  { %v1969_v25 = vadd.f32 %v1968_v6, %v1963_v16 }
0x1c17   :  { %v1975_v23 = vadd.f32 %v1974_v56, %v1969_v25 }
0x1c18   :  { %v1978_v44 = vpop.permute.xlu1 %1977  ;;  %v295_v43 = vpop.permute.xlu0 %294 }
0x1c19   :  { %v1980_v35 = vmul.f32 %v1978_v44, %v2937_v21  ;;  %v297_v4 = vmul.f32 %v295_v43, %v2953_v62 }
0x1c1b   :  { %v1981_v57 = vadd.f32 %v1980_v35, %v1975_v23  ;;  %v298_v40 = vadd.f32 %v2543_v36, %v297_v4 }
0x1c1d   :  { %2502 = vtanh.f32 %v1981_v57  ;;  %v2223_v47 = vmul.f32 -1.442695, %v1981_v57 }
0x1c1f   :  { %2504 = vpow2.f32 %v2223_v47 }
0x1c21   :  { %v301_v60 = vpop.permute.xlu1 %300  ;;  %v313_v5 = vpop.permute.xlu0 %312 }
0x1c22   :  { %v303_v13 = vmul.f32 %v301_v60, %v2955_v2  ;;  %v315_v49 = vmul.f32 %v313_v5, %v2968_v19 }
0x1c23   :  { %v2503_v63 = vpop.eup %2502 }
0x1c24   :  { %2004 = vrot.lane.b32.xlu2 %v2503_v63, %s2633_s7  ;;  %v304_v52 = vadd.f32 %v303_v13, %v298_v40 }
0x1c25   :  { %v2505_v8 = vpop.eup %2504 }
0x1c26   :  { %v1985_v42 = vadd.f32 1.0, %v2505_v8 }
0x1c28   :  { %2506 = vrcp.f32 %v1985_v42  ;;  %v1997_v20 = vand.u32 2147483648, %v1985_v42  ;;  %vm1991_vm6 = vweird.f32 %v1985_v42  ;;  %v1995_v21 = vand.u32 2147483647, %v1985_v42 }
0x1c2a   :  { %v1998_v24 = vor.u32 1.1754944e-38, %v1997_v20  ;;  %vm1996_vm8 = vcmp.eq.f32.partialorder %v1995_v21, 8.507059e+37 }
0x1c2c   :  { %306 = vperm.xlu2 %2373, %v2912_v12  }
0x1c2e   :  { %v2507_v10 = vpop.eup %2506 }
0x1c2f   :  { %v1987_v41 = vmul.f32 %v2507_v10, %v1985_v42  ;;  %vm1992_vm5 = vweird.f32 %v2507_v10 }
0x1c30   :  { %vm1993_vm7 = vmor %vm1991_vm6, %vm1992_vm5 }
0x1c31   :  { %v1988_v22 = vsub.f32 1.0, %v1987_v41 }
0x1c33   :  { %v1989_v17 = vmul.f32 %v2507_v10, %v1988_v22 }
0x1c35   :  { %v1990_v46 = vadd.f32 %v2507_v10, %v1989_v17 }
0x1c37   :  { %v1994_v7 = vsel %vm1993_vm7, %v2507_v10, %v1990_v46 }
0x1c38   :  { %v1999_v54 = vsel %vm1996_vm8, %v1998_v24, %v1994_v7 }
0x1c39   :  { %v2002_v2 = vmul.f32 %v1999_v54, %v3308_v0 }
0x1c4c   :  { %v3401_v4 = vpop.xlane.xlu0 %355 }
0x1c5f   :  { %v473_v5 = vpop.permute.xlu0 %472 }
0x1c7e   :  { %v2005_v12 = vpop.permute.xlu2 %2004 }
0x1c7f   :  { %v2007_v39 = vmul.f32 %v2005_v12, %v1999_v54 }
0x1c81   :  { %2009 = vrot.lane.b32.xlu1 %v2007_v39, %s2634_s13 }
0x1c86   :  { %v307_v51 = vpop.permute.xlu2 %306 }
0x1c87   :  { %v309_v3 = vmul.f32 %v307_v51, %v2963_v11  ;;  %v513_v51 = vpop.permute.xlu0 %512 }
0x1c89   :  { %v310_v16 = vadd.f32 %v309_v3, %v304_v52  ;;  %v515_v52 = vsel %vm353_vm11, %v513_v51, 0.0  ;;  %v475_v3 = vsel %vm353_vm11, %v473_v5, 0.0 }
0x1c8b   :  { %v316_v6 = vadd.f32 %v315_v49, %v310_v16  ;;  %v2674_v49 = vmov 28   ;;  %v2675_v16 = vmov 30  }
0x1c8c   :  { %2377 = vset.pattern.permute.xlu1 %v2674_v49  ;;  %2379 = vset.pattern.permute.xlu0 %v2675_v16 }
0x1c8d   :  { %v317_v29 = vmax.f32 %v316_v6, 0.0  ;;  %v2676_v6 = vmov 29  }
0x1c8e   :  { %2378 = vset.pattern.permute.xlu2 %v2676_v6 }
0x1c8f   :  { %v318_v62 = vsub.f32 0.0, %v317_v29 }
0x1c91   :  { %v319_v25 = vmul.f32 1.442695, %v318_v62 }
0x1c93   :  { %2508 = vpow2.f32 %v319_v25 }
0x1c99   :  { %v2509_v56 = vpop.eup %2508 }
0x1c9a   :  { %2020 = vrot.lane.b32.xlu1 %v2509_v56, %s2635_s1  ;;  %s2670_s1 = smov 108  }
0x1ca2   :  { %392 = vrot.lane.b32.xlu1 %v2768_v9, %s2666_s2 }
0x1cf3   :  { %v2010_v44 = vpop.permute.xlu1 %2009 }
0x1cf4   :  { %v2012_v23 = vadd.f32 %v2010_v44, %v2002_v2  ;;  %v2677_v44 = vmov 31  }
0x1cf6   :  { %2510 = vtanh.f32 %v2012_v23 }
0x1cfc   :  { %v2511_v35 = vpop.eup %2510 }
0x1cfd   :  { %2015 = vrot.lane.b32.xlu2 %v2511_v35, %s2633_s7  ;;  %s2669_s7 = smov 120  }
0x1d0c   :  { %v2021_v0 = vpop.permute.xlu1 %2020 }
0x1d14   :  { %v393_v10 = vpop.permute.xlu1 %392 }
0x1d15   :  { %v395_v41 = vsel %vm353_vm11, %v393_v10, 0.0 }
0x1d16   :  { %396 = vadd.xlane.f32.xlu1 %v395_v41 }
0x1d57   :  { %v2016_v11 = vpop.permute.xlu2 %2015 }
0x1d58   :  { %v2018_v19 = vmul.f32 %v2016_v11, %v1999_v54 }
0x1d5a   :  { %v2023_v57 = vmul.f32 %v2021_v0, %v2018_v19  ;;  %v609_v0 = vpop.permute.xlu0 %608 }
0x1d5c   :  { %v2024_v63 = vpack.c.bf16 %v2023_v57, %v2023_v57  ;;  %v611_v57 = vsel %vm353_vm11, %v609_v0, 0.0 }
0x1d5e   :  { %2026 = vrot.lane.b32.xlu2 %v2024_v63, %s2634_s13  ;;  %s2672_s13 = smov 104  }
0x1d5f   :  { %592 = vrot.lane.b32.xlu1 %v2768_v9, %s2672_s13 }
0x1d66   :  { %432 = vrot.lane.b32.xlu2 %v2768_v9, %s2669_s7 }
0x1d89   :  { %516 = vadd.xlane.f32.xlu1 %v515_v52  ;;  %v397_v23 = vpop.xlane.xlu1 %396 }
0x1db8   :  { %v2027_v47 = vpop.permute.xlu2 %2026 }
0x1db9   :  { %2224 = vmatmul.msk.bf16.vlgmr.msrb.gmra.mxu2 %vm644_vm0, %v2027_v47 }
0x1dc0   :  { %v433_v8 = vpop.permute.xlu2 %432 }
0x1dc1   :  { %v435_v42 = vsel %vm353_vm11, %v433_v8, 0.0 }
0x1dc2   :  { %436 = vadd.xlane.f32.xlu2 %v435_v42 }
0x1dd1   :  { %v593_v35 = vpop.permute.xlu1 %592 }
0x1dd2   :  { %v595_v11 = vsel %vm353_vm11, %v593_v35, 0.0 }
0x1dda   :  { %552 = vrot.lane.b32.xlu2 %v2768_v9, %s2670_s1 }
0x1dfc   :  { %v517_v63 = vpop.xlane.xlu1 %516 }
0x1e35   :  { %v437_v29 = vpop.xlane.xlu2 %436 }
0x1e3c   :  { %v2040_v22 = vpop.f32.mrf.mxu2 }
0x1e3d   :  { %v2044_v17 = vadd.f32 %v3320_v15, %v2040_v22  ;;  %v553_v62 = vpop.permute.xlu2 %552 }
0x1e3e   :  { %v555_v19 = vsel %vm353_vm11, %v553_v62, 0.0 }
0x1e3f   :  { %v2225_v46 = vmul.f32 -1.442695, %v2044_v17 }
0x1e41   :  { %2512 = vpow2.f32 %v2225_v46  ;;  %v438_v46 = vsel %vm357_vm13, %v437_v29, 0.0 }
0x1e44   :  { %v2042_v20 = vpop.f32.mrf.mxu2 }
0x1e47   :  { %v2513_v21 = vpop.eup %2512 }
0x1e48   :  { %v2048_v7 = vadd.f32 1.0, %v2513_v21  ;;  %v439_v21 = vrot.slane %v438_v46, 4 }
0x1e4a   :  { %2514 = vrcp.f32 %v2048_v7  ;;  %v2060_v54 = vand.u32 2147483648, %v2048_v7  ;;  %v2058_v60 = vand.u32 2147483647, %v2048_v7  ;;  %vm2054_vm9 = vweird.f32 %v2048_v7 }
0x1e4c   :  { %v2061_v13 = vor.u32 1.1754944e-38, %v2060_v54  ;;  %vm2059_vm12 = vcmp.eq.f32.partialorder %v2058_v60, 8.507059e+37  ;;  %v518_v60 = vsel %vm357_vm13, %v517_v63, 0.0 }
0x1e50   :  { %v2515_v43 = vpop.eup %2514 }
0x1e51   :  { %v2050_v24 = vmul.f32 %v2515_v43, %v2048_v7  ;;  %vm2055_vm0 = vweird.f32 %v2515_v43 }
0x1e52   :  { %vm2056_vm10 = vmor %vm2054_vm9, %vm2055_vm0 }
0x1e53   :  { %v2051_v12 = vsub.f32 1.0, %v2050_v24 }
0x1e55   :  { %v2052_v39 = vmul.f32 %v2515_v43, %v2051_v12 }
0x1e57   :  { %v2053_v15 = vadd.f32 %v2515_v43, %v2052_v39 }
0x1e59   :  { %v2057_v36 = vsel %vm2056_vm10, %v2515_v43, %v2053_v15 }
0x1e5a   :  { %v3403_v40 = vsel %vm2059_vm12, %v2061_v13, %v2057_v36 }
0x1e5b   :  { %2065 = vrot.lane.b32.xlu2 %v3403_v40, %s2673_s8 }
0x1e84   :  { %476 = vadd.xlane.f32.xlu2 %v475_v3  ;;  %v519_v3 = vrot.slane %v518_v60, 4 }
0x1eb5   :  { %v3409_v25 = vpop.permute.xlu2 %2065 }
0x1eb6   :  { %v2068_v56 = vmul.f32 %v3409_v25, %v2821_v33 }
0x1eb8   :  { %v2069_v2 = vadd.f32 %v2068_v56, %v2826_v37 }
0x1eba   :  { %2084 = vperm.xlu0 %2379, %v2069_v2   ;;  %2078 = vperm.xlu2 %2378, %v2069_v2  }
0x1ebb   :  { %2072 = vperm.xlu1 %2377, %v2069_v2  }
0x1ec2   :  { %2381 = vset.pattern.permute.xlu0 %v2677_v44 }
0x1ec3   :  { %2380 = vset.pattern.permute.xlu1 %v2677_v44 }
0x1ec4   :  { %2090 = vperm.xlu1 %2380, %v2069_v2   ;;  %v520_v2 = vadd.f32 %v519_v3, %v518_v60  ;;  %v1731_v60 = vsub.f32 %v2818_v32, %v3259_v30 }
0x1ec6   :  { %v521_v63 = vrot.slane %v520_v2, 2 }
0x1ee3   :  { %596 = vadd.xlane.f32.xlu2 %v595_v11 }
0x1ee4   :  { %556 = vadd.xlane.f32.xlu0 %v555_v19 }
0x1eee   :  { %612 = vadd.xlane.f32.xlu1 %v611_v57 }
0x1ef7   :  { %v477_v47 = vpop.xlane.xlu2 %476 }
0x1ef8   :  { %942 = vrot.lane.b32.xlu0 %v3006_v48, %s2636_s17  ;;  %v478_v56 = vsel %vm357_vm13, %v477_v47, 0.0 }
0x1ef9   :  { %v479_v19 = vrot.slane %v478_v56, 4 }
0x1efb   :  { %1140 = vrot.lane.b32.xlu2 %v3072_v61, %s2641_s20 }
0x1f00   :  { %1536 = vrot.lane.b32.xlu0 %v3212_v59, %s2651_s5 }
0x1f03   :  { %1734 = vrot.lane.b32.xlu2 %v3273_v27, %s2656_s12 }
0x1f07   :  { %1338 = vrot.lane.b32.xlu1 %v3145_v38, %s2646_s25 }
0x1f08   :  { %1932 = vrot.lane.b32.xlu0 %v3343_v14, %s2661_s4 }
0x1f14   :  { %v2079_v42 = vpop.permute.xlu2 %2078 }
0x1f15   :  { %v2081_v10 = vmul.f32 %v2079_v42, %v2865_v53  ;;  %v398_v53 = vsel %vm357_vm13, %v397_v23, 0.0  ;;  %v1137_v42 = vsub.f32 %v2818_v32, %v3059_v28 }
0x1f2c   :  { %v2085_v59 = vpop.permute.xlu0 %2084 }
0x1f2d   :  { %v2073_v8 = vpop.permute.xlu1 %2072  ;;  %v2087_v27 = vmul.f32 %v2085_v59, %v2867_v55  ;;  %v399_v55 = vrot.slane %v398_v53, 4 }
0x1f2e   :  { %v2075_v48 = vmul.f32 %v2073_v8, %v2857_v50  ;;  %v440_v50 = vadd.f32 %v439_v21, %v438_v46 }
0x1f30   :  { %v2076_v61 = vadd.f32 %v3337_v18, %v2075_v48  ;;  %v441_v43 = vrot.slane %v440_v50, 2  ;;  %v480_v48 = vadd.f32 %v479_v19, %v478_v56 }
0x1f32   :  { %v2082_v41 = vadd.f32 %v2081_v10, %v2076_v61  ;;  %v442_v24 = vadd.f32 %v441_v43, %v440_v50  ;;  %v522_v10 = vadd.f32 %v521_v63, %v520_v2 }
0x1f34   :  { %v2088_v17 = vadd.f32 %v2087_v27, %v2082_v41  ;;  %v443_v54 = vrot.slane %v442_v24, 1 }
0x1f36   :  { %v2091_v22 = vpop.permute.xlu1 %2090  ;;  %v444_v36 = vadd.f32 %v443_v54, %v442_v24 }
0x1f37   :  { %v2093_v38 = vmul.f32 %v2091_v22, %v2870_v58  ;;  %v400_v58 = vadd.f32 %v399_v55, %v398_v53 }
0x1f38   :  { %v445_v6 = vadd.f32 1e-05, %v444_v36 }
0x1f39   :  { %v2094_v14 = vadd.f32 %v2093_v38, %v2088_v17  ;;  %v401_v52 = vrot.slane %v400_v58, 2  ;;  %v1138_v38 = vand.u32 2147483647, %v1137_v42 }
0x1f3b   :  { %v2226_v20 = vmul.f32 -1.442695, %v2094_v14  ;;  %v402_v62 = vadd.f32 %v401_v52, %v400_v58  ;;  %v481_v14 = vrot.slane %v480_v48, 2 }
0x1f3d   :  { %2516 = vpow2.f32 %v2226_v20  ;;  %v403_v57 = vrot.slane %v402_v62, 1  ;;  %v482_v53 = vadd.f32 %v481_v14, %v480_v48  ;;  %v2130_v48 = vmul.f32 0.5, %v3403_v40 }
0x1f3f   :  { %v404_v47 = vadd.f32 %v403_v57, %v402_v62  ;;  %v1533_v57 = vsub.f32 %v2818_v32, %v3199_v26 }
0x1f41   :  { %v405_v50 = vadd.f32 1e-05, %v404_v47 }
0x1f43   :  { %v2517_v7 = vpop.eup %2516 }
0x1f44   :  { %v2098_v18 = vadd.f32 1.0, %v2517_v7  ;;  %v523_v7 = vrot.slane %v522_v10, 1 }
0x1f46   :  { %2518 = vrcp.f32 %v2098_v18  ;;  %v2110_v13 = vand.u32 2147483648, %v2098_v18  ;;  %v2108_v51 = vand.u32 2147483647, %v2098_v18  ;;  %vm2104_vm15 = vweird.f32 %v2098_v18 }
0x1f47   :  { %2520 = vrcp.f32 %v445_v6  ;;  %v524_v54 = vadd.f32 %v523_v7, %v522_v10 }
0x1f48   :  { %v2111_v16 = vor.u32 1.1754944e-38, %v2110_v13  ;;  %vm2109_vm2 = vcmp.eq.f32.partialorder %v2108_v51, 8.507059e+37  ;;  %2522 = vrcp.f32 %v405_v50  ;;  %v483_v13 = vrot.slane %v482_v53, 1 }
0x1f4a   :  { %v484_v62 = vadd.f32 %v483_v13, %v482_v53 }
0x1f4c   :  { %v2519_v12 = vpop.eup %2518  ;;  %v485_v63 = vadd.f32 1e-05, %v484_v62 }
0x1f4d   :  { %v2100_v39 = vmul.f32 %v2519_v12, %v2098_v18  ;;  %vm2105_vm14 = vweird.f32 %v2519_v12  ;;  %v2521_v17 = vpop.eup %2520 }
0x1f4e   :  { %vm2106_vm1 = vmor %vm2104_vm15, %vm2105_vm14  ;;  %v447_v28 = vmul.f32 %v2521_v17, %v2768_v9  ;;  %v1335_v17 = vsub.f32 %v2818_v32, %v3126_v1  ;;  %v1929_v1 = vsub.f32 %v2818_v32, %v3325_v45  ;;  %v358_v45 = vsel %vm357_vm13, %v3401_v4, 0.0 }
0x1f4f   :  { %v2101_v15 = vsub.f32 1.0, %v2100_v39 }
0x1f50   :  { %v1336_v7 = vand.u32 2147483647, %v1335_v17 }
0x1f51   :  { %v2102_v5 = vmul.f32 %v2519_v12, %v2101_v15  ;;  %v939_v15 = vsub.f32 %v2818_v32, %v2990_v34 }
0x1f53   :  { %v2103_v49 = vadd.f32 %v2519_v12, %v2102_v5  ;;  %v525_v5 = vadd.f32 1e-05, %v524_v54 }
0x1f55   :  { %v2107_v29 = vsel %vm2106_vm1, %v2519_v12, %v2103_v49  ;;  %v2523_v49 = vpop.eup %2522 }
0x1f56   :  { %v2112_v44 = vsel %vm2109_vm2, %v2111_v16, %v2107_v29  ;;  %v597_v23 = vpop.xlane.xlu2 %596  ;;  %v1732_v16 = vand.u32 2147483647, %v1731_v60  ;;  %v940_v29 = vand.u32 2147483647, %v939_v15  ;;  %v407_v34 = vmul.f32 %v2523_v49, %v2768_v9 }
0x1f57   :  { %2117 = vrot.lane.b32.xlu1 %v2112_v44, %s2673_s8  ;;  %v557_v35 = vpop.xlane.xlu0 %556  ;;  %v598_v59 = vsel %vm357_vm13, %v597_v23, 0.0  ;;  %v2129_v19 = vmul.f32 0.5, %v2112_v44 }
0x1f58   :  { %v558_v11 = vsel %vm357_vm13, %v557_v35, 0.0  ;;  %v599_v46 = vrot.slane %v598_v59, 4 }
0x1f59   :  { %v559_v0 = vrot.slane %v558_v11, 4 }
0x1f5a   :  { %v600_v24 = vadd.f32 %v599_v46, %v598_v59  ;;  %v2131_v59 = vadd.f32 %v2130_v48, %v2129_v19 }
0x1f5b   :  { %v560_v8 = vadd.f32 %v559_v0, %v558_v11 }
0x1f5c   :  { %v601_v36 = vrot.slane %v600_v24, 2  ;;  %v2132_v40 = vand.u32 2147483647, %v2131_v59 }
0x1f5d   :  { %v561_v61 = vrot.slane %v560_v8, 2 }
0x1f5e   :  { %v1141_v41 = vpop.permute.xlu2 %1140  ;;  %v602_v56 = vadd.f32 %v601_v36, %v600_v24  ;;  %v359_v36 = vrot.slane %v358_v45, 4 }
0x1f5f   :  { %v562_v27 = vadd.f32 %v561_v61, %v560_v8  ;;  %v1143_v22 = vsub.f32 %v2818_v32, %v1141_v41  ;;  %v1534_v41 = vand.u32 2147483647, %v1533_v57 }
0x1f60   :  { %v603_v8 = vrot.slane %v602_v56, 1 }
0x1f61   :  { %v563_v20 = vrot.slane %v562_v27, 1  ;;  %v1144_v21 = vand.u32 2147483647, %v1143_v22  ;;  %v613_v11 = vpop.xlane.xlu1 %612 }
0x1f62   :  { %v604_v44 = vadd.f32 %v603_v8, %v602_v56  ;;  %v614_v15 = vsel %vm357_vm13, %v613_v11, 0.0 }
0x1f63   :  { %v564_v18 = vadd.f32 %v563_v20, %v562_v27  ;;  %v1145_v43 = vadd.f32 %v1144_v21, %v1138_v38  ;;  %v615_v13 = vrot.slane %v614_v15, 4 }
0x1f64   :  { %v605_v38 = vadd.f32 1e-05, %v604_v44 }
0x1f65   :  { %v565_v55 = vadd.f32 1e-05, %v564_v18  ;;  %v1146_v12 = vmul.f32 %v1145_v43, %v447_v28 }
0x1f66   :  { %v1735_v39 = vpop.permute.xlu2 %1734 }
0x1f67   :  { %2524 = vrcp.f32 %v565_v55  ;;  %v1737_v58 = vsub.f32 %v2818_v32, %v1735_v39  ;;  %1148 = vrot.lane.b32.xlu0 %v1146_v12, %s2669_s7  ;;  %v1930_v12 = vand.u32 2147483647, %v1929_v1 }
0x1f68   :  { %2526 = vrcp.f32 %v525_v5  ;;  %v616_v5 = vadd.f32 %v615_v13, %v614_v15 }
0x1f69   :  { %v1738_v51 = vand.u32 2147483647, %v1737_v58  ;;  %2528 = vrcp.f32 %v485_v63 }
0x1f6a   :  { %v943_v52 = vpop.permute.xlu0 %942  ;;  %2530 = vrcp.f32 %v605_v38 }
0x1f6b   :  { %v945_v3 = vsub.f32 %v2818_v32, %v943_v52  ;;  %v1739_v23 = vadd.f32 %v1738_v51, %v1732_v16  ;;  %v360_v51 = vadd.f32 %v359_v36, %v358_v45  ;;  %v617_v52 = vrot.slane %v616_v5, 2 }
0x1f6d   :  { %v2525_v6 = vpop.eup %2524  ;;  %v946_v2 = vand.u32 2147483647, %v945_v3  ;;  %v361_v3 = vrot.slane %v360_v51, 2  ;;  %v618_v49 = vadd.f32 %v617_v52, %v616_v5 }
0x1f6e   :  { %v567_v30 = vmul.f32 %v2525_v6, %v2768_v9  ;;  %v2527_v10 = vpop.eup %2526 }
0x1f6f   :  { %v947_v35 = vadd.f32 %v946_v2, %v940_v29  ;;  %v527_v26 = vmul.f32 %v2527_v10, %v2768_v9  ;;  %v2529_v50 = vpop.eup %2528  ;;  %v362_v16 = vadd.f32 %v361_v3, %v360_v51  ;;  %v619_v6 = vrot.slane %v618_v49, 1 }
0x1f70   :  { %v1740_v0 = vmul.f32 %v1739_v23, %v567_v30  ;;  %v487_v43 = vmul.f32 %v2529_v50, %v2768_v9  ;;  %v2531_v54 = vpop.eup %2530  ;;  %v2114_v23 = vsub.f32 %v2818_v32, %v3409_v25 }
0x1f71   :  { %v948_v42 = vmul.f32 %v947_v35, %v407_v34  ;;  %v607_v58 = vmul.f32 %v2531_v54, %v2768_v9  ;;  %v363_v29 = vrot.slane %v362_v16, 1  ;;  %v620_v62 = vadd.f32 %v619_v6, %v618_v49 }
0x1f72   :  { %v1537_v61 = vpop.permute.xlu0 %1536  ;;  %1742 = vrot.lane.b32.xlu0 %v1740_v0, %s2670_s1  ;;  %v2115_v11 = vand.u32 2147483647, %v2114_v23 }
0x1f73   :  { %v1539_v47 = vsub.f32 %v2818_v32, %v1537_v61  ;;  %950 = vrot.lane.b32.xlu2 %v948_v42, %s2666_s2  ;;  %v364_v56 = vadd.f32 %v363_v29, %v362_v16  ;;  %v621_v2 = vadd.f32 1e-05, %v620_v62 }
0x1f75   :  { %v1540_v27 = vand.u32 2147483647, %v1539_v47  ;;  %v365_v30 = vadd.f32 1e-05, %v364_v56  ;;  %2532 = vrcp.f32 %v621_v2 }
0x1f77   :  { %v1541_v22 = vadd.f32 %v1540_v27, %v1534_v41  ;;  %2534 = vrcp.f32 %v365_v30 }
0x1f79   :  { %v1542_v14 = vmul.f32 %v1541_v22, %v527_v26  ;;  %v1339_v46 = vpop.permute.xlu1 %1338 }
0x1f7a   :  { %v1341_v20 = vsub.f32 %v2818_v32, %v1339_v46  ;;  %v1933_v21 = vpop.permute.xlu0 %1932  ;;  %2134 = vrot.lane.b32.xlu0 %v2132_v40, %s2673_s8 }
0x1f7b   :  { %1544 = vrot.lane.b32.xlu2 %v1542_v14, %s2668_s3  ;;  %v1935_v28 = vsub.f32 %v2818_v32, %v1933_v21  ;;  %v2533_v35 = vpop.eup %2532 }
0x1f7c   :  { %v1342_v18 = vand.u32 2147483647, %v1341_v20  ;;  %v623_v0 = vmul.f32 %v2533_v35, %v2768_v9 }
0x1f7d   :  { %v1936_v55 = vand.u32 2147483647, %v1935_v28  ;;  %v2535_v63 = vpop.eup %2534 }
0x1f7e   :  { %v1343_v53 = vadd.f32 %v1342_v18, %v1336_v7  ;;  %v367_v42 = vmul.f32 %v2535_v63, %v2768_v9 }
0x1f7f   :  { %v1937_v39 = vadd.f32 %v1936_v55, %v1930_v12 }
0x1f80   :  { %v1344_v24 = vmul.f32 %v1343_v53, %v487_v43  ;;  %v755_v61 = vmul.f32 %v2879_v31, %v367_v42 }
0x1f81   :  { %v1938_v60 = vmul.f32 %v1937_v39, %v607_v58 }
0x1f82   :  { %1346 = vrot.lane.b32.xlu1 %v1344_v24, %s2667_s24 }
0x1f8a   :  { %1940 = vrot.lane.b32.xlu1 %v1938_v60, %s2672_s13 }
0x1fc9   :  { %v2118_v34 = vpop.permute.xlu1 %2117 }
0x1fca   :  { %v2120_v4 = vsub.f32 %v2818_v32, %v2118_v34 }
0x1fcc   :  { %v2121_v19 = vand.u32 2147483647, %v2120_v4 }
0x1fcd   :  { %v951_v48 = vpop.permute.xlu2 %950 }
0x1fce   :  { %v2122_v57 = vadd.f32 %v2121_v19, %v2115_v11  ;;  %v953_v25 = vadd.f32 %v951_v48, %v755_v61 }
0x1fd0   :  { %v2123_v8 = vmul.f32 %v2122_v57, %v623_v0 }
0x1fd2   :  { %2125 = vrot.lane.b32.xlu2 %v2123_v8, %s2671_s26 }
0x1fd5   :  { %v1545_v26 = vpop.permute.xlu2 %1544 }
0x1fd9   :  { %v1149_v47 = vpop.permute.xlu0 %1148 }
0x1fda   :  { %v1151_v10 = vadd.f32 %v1149_v47, %v953_v25 }
0x1fe4   :  { %v1743_v59 = vpop.permute.xlu0 %1742 }
0x1fec   :  { %v2135_v32 = vpop.permute.xlu0 %2134 }
0x1fed   :  { %v2137_v41 = vmul.f32 %v2135_v32, %v2821_v33 }
0x1fef   :  { %v2138_v44 = vadd.f32 %v2137_v41, %v2826_v37 }
0x1ff1   :  { %2140 = vst.msk [vmem:[%s3503_s10] sm:$0x3] %vm2139_vm3, %v2138_v44  ;;  %s2678_s10 = smov [#allocation7]  }
0x1ff2   :  { %s2160_s25 = sshll.u32 %s2678_s10, 4  ;;  %s2161_s25 = int_to_ptr.vmem [resolvable:$true] %s2160_s25 }
0x1ff4   :  { %v1347_v9 = vpop.permute.xlu1 %1346 }
0x1ff5   :  { %v1349_v27 = vadd.f32 %v1347_v9, %v1151_v10 }
0x1ff7   :  { %v1547_v22 = vadd.f32 %v1545_v26, %v1349_v27 }
0x1ff9   :  { %v1745_v17 = vadd.f32 %v1743_v59, %v1547_v22 }
0x1ffc   :  { %v1941_v31 = vpop.permute.xlu1 %1940 }
0x1ffd   :  { %v1943_v40 = vadd.f32 %v1941_v31, %v1745_v17 }
0x202c   :  { %v2126_v38 = vpop.permute.xlu2 %2125 }
0x202d   :  { %v2128_v14 = vadd.f32 %v2126_v38, %v1943_v40 }
0x202f   :  { %v2141_v46 = vsel %vm353_vm11, %v2128_v14, 0.0 }
0x2030   :  { %2142 = vadd.xlane.f32.xlu1 %v2141_v46 }
0x20a3   :  { %v2143_v33 = vpop.xlane.xlu1 %2142 }
0x20a4   :  { %v2144_v20 = vsel %vm357_vm13, %v2143_v33, 0.0 }
0x20a5   :  { %v2145_v37 = vrot.slane %v2144_v20, 4 }
0x20a7   :  { %v2146_v21 = vadd.f32 %v2145_v37, %v2144_v20 }
0x20a9   :  { %v2147_v50 = vrot.slane %v2146_v21, 2 }
0x20ab   :  { %v2148_v7 = vadd.f32 %v2147_v50, %v2146_v21 }
0x20ad   :  { %v2149_v18 = vrot.slane %v2148_v7, 1 }
0x20af   :  { %v2150_v28 = vadd.f32 %v2149_v18, %v2148_v7 }
0x20b1   :  { %2152 = vst.msk [vmem:[#allocation7] sm:$0x1] %vm2151_vm4, %v2150_v28 }
0x20b2   :  { %2165 = dma.vmem_to_hbm [thread:$0]  %s2161_s25, 16, %s2163_s28, [#allocation4]  }
0x20b3   :  { %2620 = dma.done.wait [#allocation4], 16  }
0x20b4   :  { %2621 = vsyncadd [#allocation4], 4294967280 }
0x20b5   :  { %2172 = vsyncpa [#allocation3], 1 }
0x20b6   :  { %2173 = vsyncpa [#allocation6], 1 }
0x20b7   :  { %2174 = vsyncpa [#allocation4], 1 }

</bundles_post_ra>
